<compile_context>
chip_gen: v7x
topology: tpu7x:2x2x1
jax: 0.10.0
libtpu: 0.0.40
codegen_flags: <defaults>
</compile_context>

<pallas_src>
import jax
import jax.numpy as jnp
from jax.experimental import pallas as pl
from jax.experimental.pallas import tpu as pltpu

NPL = 512
IN_DIM = 16


def branchnet_kernel(
    xT_ref,            # (16, tb)  bf16 — input tile, batch along lanes
    w1_ref, b1_ref,    # (512, 16)  bf16, (512, 1) f32
    w2_ref, b2_ref,    # (512, 512) bf16, (512, 1) f32
    w3_ref, b3_ref,    # (256, 512) bf16, (256, 1) f32
    w4_ref, b4_ref,    # (256, 1)   f32,  (1, 1)   f32
    o_ref,             # (1, tb)    f32 — lane-dense output row
):
    xT = xT_ref[...]

    # layer 1: (512,16) @ (16,tb) -> (512,tb); bf16 MXU, f32 accumulate
    h = jnp.dot(w1_ref[...], xT, preferred_element_type=jnp.float32) + b1_ref[...]
    h = jnp.tanh(h).astype(jnp.bfloat16)

    # layer 2: (512,512) @ (512,tb)
    h = jnp.dot(w2_ref[...], h, preferred_element_type=jnp.float32) + b2_ref[...]
    h = jnp.tanh(h).astype(jnp.bfloat16)

    # layer 3: (256,512) @ (512,tb)
    h = jnp.dot(w3_ref[...], h, preferred_element_type=jnp.float32) + b3_ref[...]
    h = jnp.tanh(h)  # stays f32: final layer runs on the VPU/XLU

    # layer 4 (out_features = 1): VPU multiply + sublane reduction instead of an
    # N=1 MXU matmul; the result is already a lane-dense (1, tb) row.
    out = jnp.sum(h * w4_ref[...], axis=0, keepdims=True) + b4_ref[...]
    o_ref[...] = out.astype(o_ref.dtype)


def branchnet_forward(x, params, *, tb=512):
    """x: (B, 16). Returns (B, 1) float32.

    params are in PyTorch layout: w (out_features, in_features), b (out_features,).
    tb: batch tile (lane dim); multiple of 128 (512 default is also a multiple
    of 256 for v6e/v7x). Batch is zero-padded to a multiple of tb.
    """
    (w1, b1), (w2, b2), (w3, b3), (w4, b4) = params
    B = x.shape[0]
    n_blocks = pl.cdiv(B, tb)
    B_pad = n_blocks * tb

    # Pad the batch and transpose to (features, batch) so batch is lane-dense.
    x_pad = jnp.pad(x.astype(jnp.float32), ((0, B_pad - B), (0, 0)))
    xT = x_pad.T.astype(jnp.bfloat16)                     # (16, B_pad)

    # bf16 weights for the MXU; biases and the tiny final layer stay f32.
    w1k = w1.astype(jnp.bfloat16)
    w2k = w2.astype(jnp.bfloat16)
    w3k = w3.astype(jnp.bfloat16)
    b1k = b1.reshape(NPL, 1).astype(jnp.float32)
    b2k = b2.reshape(NPL, 1).astype(jnp.float32)
    b3k = b3.reshape(NPL // 2, 1).astype(jnp.float32)
    w4k = w4.reshape(NPL // 2, 1).astype(jnp.float32)
    b4k = b4.reshape(1, 1).astype(jnp.float32)

    def resident(shape):
        # Full-array block with a constant index_map: fetched once, stays
        # VMEM-resident across all grid steps (no per-step weight DMA).
        return pl.BlockSpec(shape, lambda i: (0, 0))

    grid_spec = pltpu.PrefetchScalarGridSpec(
        num_scalar_prefetch=0,
        grid=(n_blocks,),
        in_specs=[
            pl.BlockSpec((IN_DIM, tb), lambda i: (0, i)),
            resident(w1k.shape), resident(b1k.shape),
            resident(w2k.shape), resident(b2k.shape),
            resident(w3k.shape), resident(b3k.shape),
            resident(w4k.shape), resident(b4k.shape),
        ],
        # Output is (n_blocks, 1, tb); the leading dim is squeezed so the
        # kernel writes a lane-dense (1, tb) row per grid step.
        out_specs=pl.BlockSpec((None, 1, tb), lambda i: (i, 0, 0)),
    )

    per_row_flops = 2 * (IN_DIM * NPL + NPL * NPL + NPL * (NPL // 2) + (NPL // 2))
    cost = pl.CostEstimate(
        flops=B_pad * per_row_flops,
        transcendentals=B_pad * (NPL + NPL + NPL // 2),
        bytes_accessed=(
            2 * (w1k.size + w2k.size + w3k.size)
            + 4 * (b1k.size + b2k.size + b3k.size + w4k.size + b4k.size)
            + 2 * xT.size
            + 4 * B_pad
        ),
    )

    out = pl.pallas_call(
        branchnet_kernel,
        out_shape=jax.ShapeDtypeStruct((n_blocks, 1, tb), jnp.float32),
        grid_spec=grid_spec,
        compiler_params=pltpu.CompilerParams(
            dimension_semantics=("parallel",),
        ),
        cost_estimate=cost,
    )(xT, w1k, b1k, w2k, b2k, w3k, b3k, w4k, b4k)

    return out.reshape(B_pad)[:B].reshape(B, 1)


def init_params(key):
    """PyTorch-style init; w stored as (out_features, in_features), b as (out,)."""
    dims = [(IN_DIM, NPL), (NPL, NPL), (NPL, NPL // 2), (NPL // 2, 1)]
    params = []
    for fan_in, fan_out in dims:
        key, kw, kb = jax.random.split(key, 3)
        bound = 1.0 / jnp.sqrt(fan_in)
        w = jax.random.uniform(kw, (fan_out, fan_in), jnp.float32, -bound, bound)
        b = jax.random.uniform(kb, (fan_out,), jnp.float32, -bound, bound)
        params.append((w, b))
    return params


def branchnet_ref(x, params, *, matmul_dtype=jnp.float32):
    """Pure-JAX reference. matmul_dtype=bf16 mirrors the kernel's quantization."""
    (w1, b1), (w2, b2), (w3, b3), (w4, b4) = params
    d = matmul_dtype
    h = x.astype(jnp.float32)
    h = jnp.tanh(jnp.dot(h.astype(d), w1.T.astype(d),
                         preferred_element_type=jnp.float32) + b1)
    h = jnp.tanh(jnp.dot(h.astype(d), w2.T.astype(d),
                         preferred_element_type=jnp.float32) + b2)
    h = jnp.tanh(jnp.dot(h.astype(d), w3.T.astype(d),
                         preferred_element_type=jnp.float32) + b3)
    return jnp.dot(h, w4.T) + b4   # final layer in f32, matching the kernel


if __name__ == "__main__":
    key = jax.random.PRNGKey(0)
    key, kx = jax.random.split(key)

    # Small test: B not a multiple of the tile (exercises padding) and tb=128
    # so the grid has 3 steps (exercises resident weights + output tiling).
    B = 300
    x = jax.random.normal(kx, (B, IN_DIM), jnp.float32)
    params = init_params(key)

    out = branchnet_forward(x, params, tb=128)
    out = jax.block_until_ready(out)
    assert out.shape == (B, 1)

    ref_f32 = branchnet_ref(x, params)                                  # exact module semantics
    ref_bf16 = branchnet_ref(x, params, matmul_dtype=jnp.bfloat16)      # kernel-matched quantization

    err_bf16 = float(jnp.max(jnp.abs(out - ref_bf16)))
    err_f32 = float(jnp.max(jnp.abs(out - ref_f32)))
    assert jnp.allclose(out, ref_bf16, atol=1e-2, rtol=1e-2), (
        f"bf16-matched reference mismatch: max abs err {err_bf16}"
    )
    assert jnp.allclose(out, ref_f32, atol=1e-1, rtol=1e-1), (
        f"f32 reference mismatch: max abs err {err_f32}"
    )

    print("KERNEL_OK")
</pallas_src>

<mosaic_0001>
module attributes {stable_mosaic.version = 11 : i64} {
  func.func @branchnet_kernel(%arg0: i32, %arg1: memref<16x128xbf16, #tpu.memory_space<vmem>>, %arg2: memref<512x16xbf16, #tpu.memory_space<vmem>>, %arg3: memref<512x1xf32, #tpu.memory_space<vmem>>, %arg4: memref<512x512xbf16, #tpu.memory_space<vmem>>, %arg5: memref<512x1xf32, #tpu.memory_space<vmem>>, %arg6: memref<256x512xbf16, #tpu.memory_space<vmem>>, %arg7: memref<256x1xf32, #tpu.memory_space<vmem>>, %arg8: memref<256x1xf32, #tpu.memory_space<vmem>>, %arg9: memref<1x1xf32, #tpu.memory_space<vmem>>, %arg10: memref<1x1x128xf32, #tpu.memory_space<vmem>>) attributes {dimension_semantics = [#tpu.dimension_semantics<parallel>], iteration_bounds = array<i64: 3>, scalar_prefetch = 0 : i64, scratch_operands = 0 : i64, tpu.core_type = #tpu.core_type<tc>, window_params = [{transform_indices = @transform_0, window_bounds = array<i64: 16, 128>}, {pipeline_mode = #tpu.pipeline_mode<synchronous>, transform_indices = @transform_1, window_bounds = array<i64: 512, 16>}, {pipeline_mode = #tpu.pipeline_mode<synchronous>, transform_indices = @transform_2, window_bounds = array<i64: 512, 1>}, {pipeline_mode = #tpu.pipeline_mode<synchronous>, transform_indices = @transform_3, window_bounds = array<i64: 512, 512>}, {pipeline_mode = #tpu.pipeline_mode<synchronous>, transform_indices = @transform_4, window_bounds = array<i64: 512, 1>}, {pipeline_mode = #tpu.pipeline_mode<synchronous>, transform_indices = @transform_5, window_bounds = array<i64: 256, 512>}, {pipeline_mode = #tpu.pipeline_mode<synchronous>, transform_indices = @transform_6, window_bounds = array<i64: 256, 1>}, {pipeline_mode = #tpu.pipeline_mode<synchronous>, transform_indices = @transform_7, window_bounds = array<i64: 256, 1>}, {pipeline_mode = #tpu.pipeline_mode<synchronous>, transform_indices = @transform_8, window_bounds = array<i64: 1, 1>}, {transform_indices = @transform_9, window_bounds = array<i64: 1, 1, 128>}]} {
    %c0 = arith.constant 0 : index
    %c0_0 = arith.constant 0 : index
    %0 = vector.load %arg1[%c0, %c0_0] : memref<16x128xbf16, #tpu.memory_space<vmem>>, vector<16x128xbf16>
    %c0_1 = arith.constant 0 : index
    %c0_2 = arith.constant 0 : index
    %1 = vector.load %arg2[%c0_1, %c0_2] : memref<512x16xbf16, #tpu.memory_space<vmem>>, vector<512x16xbf16>
    %cst = arith.constant dense<0.000000e+00> : vector<512x128xf32>
    %2 = tpu.matmul %1, %0, %cst {dimension_numbers = #tpu.dot_dimension_numbers<[1], [0], [0], [1], [0, 0, 1, 1], [], []>} : vector<512x16xbf16>, vector<16x128xbf16>, vector<512x128xf32> -> vector<512x128xf32>
    %c0_3 = arith.constant 0 : index
    %c0_4 = arith.constant 0 : index
    %3 = vector.load %arg3[%c0_3, %c0_4] : memref<512x1xf32, #tpu.memory_space<vmem>>, vector<512x1xf32>
    %4 = vector.broadcast %3 : vector<512x1xf32> to vector<512x128xf32>
    %5 = arith.addf %2, %4 : vector<512x128xf32>
    %6 = math.tanh %5 : vector<512x128xf32>
    %7 = arith.truncf %6 : vector<512x128xf32> to vector<512x128xbf16>
    %c0_5 = arith.constant 0 : index
    %c0_6 = arith.constant 0 : index
    %8 = vector.load %arg4[%c0_5, %c0_6] : memref<512x512xbf16, #tpu.memory_space<vmem>>, vector<512x512xbf16>
    %cst_7 = arith.constant dense<0.000000e+00> : vector<512x128xf32>
    %9 = tpu.matmul %8, %7, %cst_7 {dimension_numbers = #tpu.dot_dimension_numbers<[1], [0], [0], [1], [0, 0, 1, 1], [], []>} : vector<512x512xbf16>, vector<512x128xbf16>, vector<512x128xf32> -> vector<512x128xf32>
    %c0_8 = arith.constant 0 : index
    %c0_9 = arith.constant 0 : index
    %10 = vector.load %arg5[%c0_8, %c0_9] : memref<512x1xf32, #tpu.memory_space<vmem>>, vector<512x1xf32>
    %11 = vector.broadcast %10 : vector<512x1xf32> to vector<512x128xf32>
    %12 = arith.addf %9, %11 : vector<512x128xf32>
    %13 = math.tanh %12 : vector<512x128xf32>
    %14 = arith.truncf %13 : vector<512x128xf32> to vector<512x128xbf16>
    %c0_10 = arith.constant 0 : index
    %c0_11 = arith.constant 0 : index
    %15 = vector.load %arg6[%c0_10, %c0_11] : memref<256x512xbf16, #tpu.memory_space<vmem>>, vector<256x512xbf16>
    %cst_12 = arith.constant dense<0.000000e+00> : vector<256x128xf32>
    %16 = tpu.matmul %15, %14, %cst_12 {dimension_numbers = #tpu.dot_dimension_numbers<[1], [0], [0], [1], [0, 0, 1, 1], [], []>} : vector<256x512xbf16>, vector<512x128xbf16>, vector<256x128xf32> -> vector<256x128xf32>
    %c0_13 = arith.constant 0 : index
    %c0_14 = arith.constant 0 : index
    %17 = vector.load %arg7[%c0_13, %c0_14] : memref<256x1xf32, #tpu.memory_space<vmem>>, vector<256x1xf32>
    %18 = vector.broadcast %17 : vector<256x1xf32> to vector<256x128xf32>
    %19 = arith.addf %16, %18 : vector<256x128xf32>
    %20 = math.tanh %19 : vector<256x128xf32>
    %c0_15 = arith.constant 0 : index
    %c0_16 = arith.constant 0 : index
    %21 = vector.load %arg8[%c0_15, %c0_16] : memref<256x1xf32, #tpu.memory_space<vmem>>, vector<256x1xf32>
    %22 = vector.broadcast %21 : vector<256x1xf32> to vector<256x128xf32>
    %23 = arith.mulf %20, %22 : vector<256x128xf32>
    %cst_17 = arith.constant dense<0.000000e+00> : vector<128xf32>
    %24 = vector.multi_reduction <add>, %23, %cst_17 [0] : vector<256x128xf32> to vector<128xf32>
    %25 = vector.shape_cast %24 : vector<128xf32> to vector<1x128xf32>
    %c0_18 = arith.constant 0 : index
    %c0_19 = arith.constant 0 : index
    %26 = vector.load %arg9[%c0_18, %c0_19] : memref<1x1xf32, #tpu.memory_space<vmem>>, vector<1x1xf32>
    %27 = vector.broadcast %26 : vector<1x1xf32> to vector<1x128xf32>
    %28 = arith.addf %25, %27 : vector<1x128xf32>
    %c0_20 = arith.constant 0 : index
    %c0_21 = arith.constant 0 : index
    %c0_22 = arith.constant 0 : index
    %29 = vector.load %arg10[%c0_20, %c0_21, %c0_22] : memref<1x1x128xf32, #tpu.memory_space<vmem>>, vector<1x1x128xf32>
    %30 = vector.shape_cast %29 : vector<1x1x128xf32> to vector<1x128xf32>
    %31 = vector.shape_cast %28 : vector<1x128xf32> to vector<1x1x128xf32>
    tpu.vector_store %arg10[%c0_20, %c0_21, %c0_22], %31 {strides = array<i32>} : memref<1x1x128xf32, #tpu.memory_space<vmem>>, vector<1x1x128xf32>,
    return
  }
  func.func @transform_0(%arg0: i32) -> (i32, i32) {
    %c0_i32 = arith.constant 0 : i32
    %c0_i32_0 = arith.constant 0 : i32
    return %c0_i32, %arg0 : i32, i32
  }
  func.func @transform_1(%arg0: i32) -> (i32, i32) {
    %c0_i32 = arith.constant 0 : i32
    %c0_i32_0 = arith.constant 0 : i32
    %c0_i32_1 = arith.constant 0 : i32
    return %c0_i32, %c0_i32_0 : i32, i32
  }
  func.func @transform_2(%arg0: i32) -> (i32, i32) {
    %c0_i32 = arith.constant 0 : i32
    %c0_i32_0 = arith.constant 0 : i32
    %c0_i32_1 = arith.constant 0 : i32
    return %c0_i32, %c0_i32_0 : i32, i32
  }
  func.func @transform_3(%arg0: i32) -> (i32, i32) {
    %c0_i32 = arith.constant 0 : i32
    %c0_i32_0 = arith.constant 0 : i32
    %c0_i32_1 = arith.constant 0 : i32
    return %c0_i32, %c0_i32_0 : i32, i32
  }
  func.func @transform_4(%arg0: i32) -> (i32, i32) {
    %c0_i32 = arith.constant 0 : i32
    %c0_i32_0 = arith.constant 0 : i32
    %c0_i32_1 = arith.constant 0 : i32
    return %c0_i32, %c0_i32_0 : i32, i32
  }
  func.func @transform_5(%arg0: i32) -> (i32, i32) {
    %c0_i32 = arith.constant 0 : i32
    %c0_i32_0 = arith.constant 0 : i32
    %c0_i32_1 = arith.constant 0 : i32
    return %c0_i32, %c0_i32_0 : i32, i32
  }
  func.func @transform_6(%arg0: i32) -> (i32, i32) {
    %c0_i32 = arith.constant 0 : i32
    %c0_i32_0 = arith.constant 0 : i32
    %c0_i32_1 = arith.constant 0 : i32
    return %c0_i32, %c0_i32_0 : i32, i32
  }
  func.func @transform_7(%arg0: i32) -> (i32, i32) {
    %c0_i32 = arith.constant 0 : i32
    %c0_i32_0 = arith.constant 0 : i32
    %c0_i32_1 = arith.constant 0 : i32
    return %c0_i32, %c0_i32_0 : i32, i32
  }
  func.func @transform_8(%arg0: i32) -> (i32, i32) {
    %c0_i32 = arith.constant 0 : i32
    %c0_i32_0 = arith.constant 0 : i32
    %c0_i32_1 = arith.constant 0 : i32
    return %c0_i32, %c0_i32_0 : i32, i32
  }
  func.func @transform_9(%arg0: i32) -> (i32, i32, i32) {
    %c0_i32 = arith.constant 0 : i32
    %c0_i32_0 = arith.constant 0 : i32
    %c0_i32_1 = arith.constant 0 : i32
    return %arg0, %c0_i32, %c0_i32_0 : i32, i32, i32
  }
}

</mosaic_0001>

<bundles_post_ra>
// kernel: tpu_custom_call.1
= control target key start
LH: loop header
LB: loop body
LE: loop exit
PB: predicated region body
PF: predicated region fallthrough
CT: control target
= control target key end

     0   :  { %s8339_s0 = inlined_call_operand.vmem [shape: bf16[16,384], index: 0, kind: input, shape index: {}]   ;;  %s8340_s1 = inlined_call_operand.vmem [shape: bf16[512,16], index: 1, kind: input, shape index: {}]   ;;  %s8341_s2 = inlined_call_operand.vmem [shape: f32[512,1], index: 2, kind: input, shape index: {}]   ;;  %s8342_s3 = inlined_call_operand.vmem [shape: bf16[512,512], index: 3, kind: input, shape index: {}]   ;;  %s8343_s4 = inlined_call_operand.vmem [shape: f32[512,1], index: 4, kind: input, shape index: {}]   ;;  %s8344_s5 = inlined_call_operand.vmem [shape: bf16[256,512], index: 5, kind: input, shape index: {}]   ;;  %s8345_s6 = inlined_call_operand.vmem [shape: f32[256,1], index: 6, kind: input, shape index: {}]   ;;  %s8346_s7 = inlined_call_operand.vmem [shape: f32[256,1], index: 7, kind: input, shape index: {}]   ;;  %s8347_s8 = inlined_call_operand.<no memory space> [shape: f32[1,1], index: 8, kind: input, shape index: {}]   ;;  %s8348_s9 = inlined_call_operand.hbm [shape: f32[3,1,128], index: 9, kind: output, shape index: {}]  }
   0x1   :  { %v14_v0 = vstv %s8347_s8 }
   0x2   :  { %15 = vst [vmem:[#allocation2] sm:$0x1] %v14_v0 }
   0x3   :  { %16 = vsyncpa [#allocation5], 0 }
   0x4   :  { %18 = vsyncpa [#allocation5 + $0x1], 0  ;;  %s6173_s11 = smov 0   ;;  %s6175_s12 = smov 0  }
   0x5   :  { %s6177_s13 = smov 0   ;;  %s6179_s14 = smov 0  }
   0x6 LB: > { %s4578_s8 = sadd.s32 4294967295, %s6116_s14   ;;  %s4579_s15 = sadd.s32 4294967294, %s6116_s14   ;;  %s6116_s14 = sphi %s6179_s14, %s8376_s14   ;;  %s6112_s13 = sphi %s6177_s13, %s8375_s13   ;;  %s6108_s12 = sphi %s6175_s12, %s8374_s12   ;;  %s6104_s11 = sphi %s6173_s11, %s8373_s11  }
   0x7   : > { %s6196_s16 = sadd.s32 1, %s6116_s14   ;;  %s31_s17 = sadd.s32 1, %s6112_s13 }
   0x8   : > { %s28_s18 = ssub.s32 %s6116_s14, %s6196_s16  ;;  %p38_p0 = scmp.ne.s32.totalorder %s6112_s13, %s6108_s12 }
   0x9   : > { %p29_p1 = scmp.eq.s32.totalorder %s28_s18, 0  ;;  %p39_p2 = scmp.eq.s32.totalorder %s6116_s14, 0 }
   0xa   : > { %p236_p3 = scmp.eq.s32.totalorder %s4578_s8, 2  ;;  %p241_p4 = scmp.ne.s32.totalorder %s6108_s12, %s6104_s11 }
   0xb   : > { %s6209_s19 = scalar_select %p29_p1, %s6112_s13, %s31_s17  }
   0xc   : > { %p40_p5 = por %p39_p2, %p38_p0  ;;  %p6211_p6 = por %p236_p3, %p38_p0 }
   0xd   : > { %p242_p7 = scmp.eq.s32.totalorder %s4579_s15, 2  ;;  %p4581_p9 = scmp.ge.s32.totalorder %s6116_s14, 3 }
   0xf   : > { %p6215_p8 = por %p242_p7, %p241_p4  ;;  %282 = sbr.rel (%p4581_p9) target bundleno = 29 (0x1d), region = 48 }
  0x16   : > { %285 = sbr.rel (!%p40_p5) target bundleno = 29 (0x1d), region = 52  ;;  %s287_s22 = sand.u32 (%p40_p5), 1, %s6112_s13  }
  0x17   : > { %s4583_s23 = sshll.u32 (%p40_p5), %s6116_s14, 2  ;;  %s4582_s24 = sshll.u32 (%p40_p5), %s287_s22, 3 }
  0x18   : > { %s291_s27 = scalar_lea.vmem (%p40_p5), %s8339_s0, %s4583_s23  ;;  %s289_s28 = scalar_lea.vmem (%p40_p5), [#allocation3], %s4582_s24 }
  0x19   : > { %v307_v1 = vld [vmem:[%s291_s27] sm:$0xf] (%p40_p5)  ;;  %v309_v2 = vld [vmem:[%s291_s27 + $0xc] sm:$0xf] (%p40_p5) }
  0x1a   : > { %308 = vst [vmem:[%s289_s28] sm:$0xf] (%p40_p5), %v307_v1  ;;  %310 = vst [vmem:[%s289_s28 + $0x4] sm:$0xf] (%p40_p5), %v309_v2 }
  0x1d PF: > { %p4584_p10 = scmp.ge.s32.totalorder %s6116_s14, 1  ;;  %p336_p11 = scmp.lt.s32.totalorder %s6116_s14, 4 }
  0x1f   : > { %p337_p12 = pnand %p4584_p10, %p336_p11 }
  0x21   : > { %340 = sbr.rel (%p337_p12) target bundleno = 1374 (0x55e), region = 93 }
  0x28   : > { %v446_v3 = vld [vmem:[%s8341_s2 + $0x10] sm:$0xff]  ;;  %v444_v4 = vld [vmem:[%s8341_s2] sm:$0xff]  ;;  %s6234_s17 = sand.u32 1, %s6108_s12   ;;  %v6118_v5 = vmov 0   ;;  %vm994_vm0 = vcmask 130048   ;;  %v447_v6 = vld [vmem:[%s8341_s2 + $0x18] sm:$0xff] }
  0x29   : > { %5412 = vset.pattern.permute.xlu1 %v6118_v5  ;;  %5411 = vset.pattern.permute.xlu0 %v6118_v5  ;;  %s4585_s18 = sshll.u32 %s6234_s17, 3  ;;  %v445_v7 = vld [vmem:[%s8341_s2 + $0x8] sm:$0xff]  ;;  %v5414_v8 = vld [vmem:[%s8340_s1] sm:$0xff]   ;;  %v5416_v13 = vld [vmem:[%s8340_s1 + $0x10] sm:$0xff]   ;;  %s376_s24 = scalar_lea.vmem [#allocation4], %s6234_s17 }
  0x2a   : > { %520 = vperm.xlu1 %5412, %v446_v3   ;;  %510 = vperm.xlu0 %5411, %v444_v4   ;;  %s345_s28 = scalar_lea.vmem [#allocation3], %s4585_s18  ;;  %v449_v10 = vld [vmem:[%s8341_s2 + $0x28] sm:$0xff]  ;;  %v448_v11 = vld [vmem:[%s8341_s2 + $0x20] sm:$0xff]  ;;  %v451_v14 = vld [vmem:[%s8341_s2 + $0x38] sm:$0xff]  ;;  %s4843_s18 = sshll.u32 %s4578_s8, 4 }
  0x2b   : > { %v5413_v9 = vld [vmem:[%s345_s28] sm:$0xff]   ;;  %5169 = vmatprep.subr.bf16.mxu1 %v6118_v5  ;;  %5105 = vmatprep.mubr.msk.bf16.mxu0 %vm994_vm0, %v5414_v8  ;;  %v5417_v18 = vld [vmem:[%s8340_s1 + $0x18] sm:$0xff]   ;;  %s4518_s25 = sshll.u32 %s376_s24, 4  ;;  %s8296_s28 = scalar_lea.hbm %s8348_s9, %s4843_s18  ;;  %s8298_s25 = int_to_ptr.vmem [resolvable:$true] %s4518_s25 }
  0x2c   : > { %5103 = vmatprep.subr.bf16.mxu0 %v5413_v9  ;;  %v5415_v12 = vld [vmem:[%s8340_s1 + $0x8] sm:$0xff]   ;;  %v450_v15 = vld [vmem:[%s8341_s2 + $0x30] sm:$0xff]  ;;  %v452_v17 = vld [vmem:[%s8341_s2 + $0x40] sm:$0xff]  ;;  %s4506_s29 = scalar_lea.sflag [#allocation5], %s6234_s17  ;;  %s6054_s30 = scalar_lea.vmem %s8298_s25, 16 }
  0x2d   : > { %5104 = vmatpush3.bf16.msra.mxu0 %v5413_v9  ;;  %v453_v16 = vld [vmem:[%s8341_s2 + $0x48] sm:$0xff]  ;;  %v5418_v19 = vld [vmem:[%s8340_s1 + $0x20] sm:$0xff]   ;;  %v455_v20 = vld [vmem:[%s8341_s2 + $0x58] sm:$0xff]  ;;  %p6055_p13 = scmp.ne.s32.totalorder %s8298_s25, %s6054_s30  ;;  %s6119_s8 = smov [#allocation4]  }
  0x2e   : > { %525 = vperm.xlu1 %5412, %v447_v6   ;;  %515 = vperm.xlu0 %5411, %v445_v7   ;;  %v454_v21 = vld [vmem:[%s8341_s2 + $0x50] sm:$0xff]  ;;  %v457_v22 = vld [vmem:[%s8341_s2 + $0x68] sm:$0xff]  ;;  %v456_v23 = vld [vmem:[%s8341_s2 + $0x60] sm:$0xff]  ;;  %s6058_s10 = sshll.u32 %s6119_s8, 4  ;;  %s6059_s10 = int_to_ptr.vmem [resolvable:$false] %s6058_s10 }
  0x2f   : > { %2628 = vmatprep.subr.bf16.mxu0 %v6118_v5  ;;  %v5419_v24 = vld [vmem:[%s8340_s1 + $0x28] sm:$0xff]   ;;  %v5420_v25 = vld [vmem:[%s8340_s1 + $0x30] sm:$0xff]   ;;  %v459_v26 = vld [vmem:[%s8341_s2 + $0x78] sm:$0xff]  ;;  %p6056_p0 = pnand %p6055_p13, %p6211_p6  ;;  %s6060_s15 = scalar_lea.vmem %s6059_s10, 32 }
  0x30   : > { %5106 = vmatmul.mubr.msk.bf16.vlgmr.msra.gmra.mrb[0].mxu0 %vm994_vm0, %v5415_v12  ;;  %v458_v27 = vld [vmem:[%s8341_s2 + $0x70] sm:$0xff]  ;;  %v461_v28 = vld [vmem:[%s8341_s2 + $0x88] sm:$0xff]  ;;  %v460_v29 = vld [vmem:[%s8341_s2 + $0x80] sm:$0xff]  ;;  %p6061_p2 = scmp.lt.s32.totalorder %s8298_s25, %s6059_s10  ;;  %p6062_p3 = scmp.lt.s32.totalorder %s6060_s15, %s6054_s30 }
  0x31   : > { %5109 = vmatprep.mubr.msk.bf16.mxu0 %vm994_vm0, %v5416_v13  ;;  %v5421_v30 = vld [vmem:[%s8340_s1 + $0x38] sm:$0xff]   ;;  %v5422_v31 = vld [vmem:[%s8340_s1 + $0x40] sm:$0xff]   ;;  %v462_v33 = vld [vmem:[%s8341_s2 + $0x90] sm:$0xff]  ;;  %p6057_p1 = pneg %p6056_p0 }
  0x32   : > { %535 = vperm.xlu1 %5412, %v449_v10   ;;  %530 = vperm.xlu0 %5411, %v448_v11   ;;  %v463_v32 = vld [vmem:[%s8341_s2 + $0x98] sm:$0xff]  ;;  %v465_v34 = vld [vmem:[%s8341_s2 + $0xa8] sm:$0xff]  ;;  %v464_v35 = vld [vmem:[%s8341_s2 + $0xa0] sm:$0xff]  ;;  %p6063_p4 = por %p6062_p3, %p6061_p2 }
  0x33   : > { %v5423_v36 = vld [vmem:[%s8340_s1 + $0x48] sm:$0xff]   ;;  %v5424_v37 = vld [vmem:[%s8340_s1 + $0x50] sm:$0xff]   ;;  %v467_v38 = vld [vmem:[%s8341_s2 + $0xb8] sm:$0xff] }
  0x34   : > { %v466_v39 = vld [vmem:[%s8341_s2 + $0xb0] sm:$0xff]  ;;  %v469_v40 = vld [vmem:[%s8341_s2 + $0xc8] sm:$0xff]  ;;  %v468_v41 = vld [vmem:[%s8341_s2 + $0xc0] sm:$0xff]  ;;  %p6064_p5 = pnand %p6063_p4, %p6057_p1 }
  0x35   : > { %v5425_v42 = vld [vmem:[%s8340_s1 + $0x58] sm:$0xff]   ;;  %v5426_v43 = vld [vmem:[%s8340_s1 + $0x60] sm:$0xff]   ;;  %v470_v45 = vld [vmem:[%s8341_s2 + $0xd0] sm:$0xff] }
  0x36   : > { %545 = vperm.xlu1 %5412, %v451_v14   ;;  %540 = vperm.xlu0 %5411, %v450_v15   ;;  %v471_v44 = vld [vmem:[%s8341_s2 + $0xd8] sm:$0xff]  ;;  %v473_v46 = vld [vmem:[%s8341_s2 + $0xe8] sm:$0xff]  ;;  %v472_v47 = vld [vmem:[%s8341_s2 + $0xe0] sm:$0xff] }
  0x37   : > { %v5427_v48 = vld [vmem:[%s8340_s1 + $0x68] sm:$0xff]   ;;  %v5428_v49 = vld [vmem:[%s8340_s1 + $0x70] sm:$0xff]   ;;  %v475_v50 = vld [vmem:[%s8341_s2 + $0xf8] sm:$0xff] }
  0x38   : > { %5110 = vmatmul.mubr.msk.bf16.gmra.mrb[4].mxu0 %vm994_vm0, %v5417_v18  ;;  %v474_v51 = vld [vmem:[%s8341_s2 + $0xf0] sm:$0xff]  ;;  %v477_v52 = vld [vmem:[%s8341_s2 + $0x108] sm:$0xff]  ;;  %v476_v53 = vld [vmem:[%s8341_s2 + $0x100] sm:$0xff] }
  0x39   : > { %5113 = vmatprep.mubr.msk.bf16.mxu0 %vm994_vm0, %v5418_v19  ;;  %v5429_v54 = vld [vmem:[%s8340_s1 + $0x78] sm:$0xff]   ;;  %v5430_v55 = vld [vmem:[%s8340_s1 + $0x80] sm:$0xff]   ;;  %v478_v57 = vld [vmem:[%s8341_s2 + $0x110] sm:$0xff] }
  0x3a   : > { %555 = vperm.xlu1 %5412, %v453_v16   ;;  %550 = vperm.xlu0 %5411, %v452_v17   ;;  %v479_v56 = vld [vmem:[%s8341_s2 + $0x118] sm:$0xff]  ;;  %v481_v58 = vld [vmem:[%s8341_s2 + $0x128] sm:$0xff]  ;;  %v480_v59 = vld [vmem:[%s8341_s2 + $0x120] sm:$0xff] }
  0x3b   : > { %v5431_v60 = vld [vmem:[%s8340_s1 + $0x88] sm:$0xff]   ;;  %v5432_v61 = vld [vmem:[%s8340_s1 + $0x90] sm:$0xff]   ;;  %v483_v62 = vld [vmem:[%s8341_s2 + $0x138] sm:$0xff] }
  0x3c   : > { %v482_v63 = vld [vmem:[%s8341_s2 + $0x130] sm:$0xff]  ;;  %v485_v0 = vld [vmem:[%s8341_s2 + $0x148] sm:$0xff]  ;;  %v484_v1 = vld [vmem:[%s8341_s2 + $0x140] sm:$0xff] }
  0x3d   : > { %v5433_v2 = vld [vmem:[%s8340_s1 + $0x98] sm:$0xff]   ;;  %v5434_v3 = vld [vmem:[%s8340_s1 + $0xa0] sm:$0xff]   ;;  %v486_v6 = vld [vmem:[%s8341_s2 + $0x150] sm:$0xff] }
  0x3e   : > { %565 = vperm.xlu1 %5412, %v455_v20   ;;  %560 = vperm.xlu0 %5411, %v454_v21   ;;  %v487_v4 = vld [vmem:[%s8341_s2 + $0x158] sm:$0xff]  ;;  %v489_v7 = vld [vmem:[%s8341_s2 + $0x168] sm:$0xff]  ;;  %v488_v8 = vld [vmem:[%s8341_s2 + $0x160] sm:$0xff] }
  0x3f   : > { %v5435_v9 = vld [vmem:[%s8340_s1 + $0xa8] sm:$0xff]   ;;  %v5436_v10 = vld [vmem:[%s8340_s1 + $0xb0] sm:$0xff]   ;;  %v491_v11 = vld [vmem:[%s8341_s2 + $0x178] sm:$0xff] }
  0x40   : > { %5114 = vmatmul.mubr.msk.bf16.gmra.mrb[8].mxu0 %vm994_vm0, %v5419_v24  ;;  %v490_v12 = vld [vmem:[%s8341_s2 + $0x170] sm:$0xff]  ;;  %v493_v13 = vld [vmem:[%s8341_s2 + $0x188] sm:$0xff]  ;;  %v492_v14 = vld [vmem:[%s8341_s2 + $0x180] sm:$0xff] }
  0x41   : > { %5117 = vmatprep.mubr.msk.bf16.mxu0 %vm994_vm0, %v5420_v25  ;;  %v5437_v15 = vld [vmem:[%s8340_s1 + $0xb8] sm:$0xff]   ;;  %v5438_v16 = vld [vmem:[%s8340_s1 + $0xc0] sm:$0xff]   ;;  %v494_v18 = vld [vmem:[%s8341_s2 + $0x190] sm:$0xff] }
  0x42   : > { %575 = vperm.xlu1 %5412, %v457_v22   ;;  %570 = vperm.xlu0 %5411, %v456_v23   ;;  %v495_v17 = vld [vmem:[%s8341_s2 + $0x198] sm:$0xff]  ;;  %v497_v19 = vld [vmem:[%s8341_s2 + $0x1a8] sm:$0xff]  ;;  %v496_v20 = vld [vmem:[%s8341_s2 + $0x1a0] sm:$0xff] }
  0x43   : > { %v5439_v21 = vld [vmem:[%s8340_s1 + $0xc8] sm:$0xff]   ;;  %v5440_v22 = vld [vmem:[%s8340_s1 + $0xd0] sm:$0xff]   ;;  %v499_v23 = vld [vmem:[%s8341_s2 + $0x1b8] sm:$0xff] }
  0x44   : > { %v498_v24 = vld [vmem:[%s8341_s2 + $0x1b0] sm:$0xff]  ;;  %v501_v25 = vld [vmem:[%s8341_s2 + $0x1c8] sm:$0xff] }
  0x46   : > { %585 = vperm.xlu1 %5412, %v459_v26   ;;  %580 = vperm.xlu0 %5411, %v458_v27   ;;  %v500_v26 = vld [vmem:[%s8341_s2 + $0x1c0] sm:$0xff]  ;;  %v5441_v27 = vld [vmem:[%s8340_s1 + $0xd8] sm:$0xff]  }
  0x48   : > { %5118 = vmatmul.mubr.msk.bf16.gmra.mrb[12].mxu0 %vm994_vm0, %v5421_v30  ;;  %v502_v30 = vld [vmem:[%s8341_s2 + $0x1d0] sm:$0xff] }
  0x49   : > { %5121 = vmatprep.mubr.msk.bf16.mxu0 %vm994_vm0, %v5422_v31  ;;  %v505_v31 = vld [vmem:[%s8341_s2 + $0x1e8] sm:$0xff] }
  0x4a   : > { %595 = vperm.xlu1 %5412, %v461_v28   ;;  %590 = vperm.xlu0 %5411, %v460_v29   ;;  %v5442_v28 = vld [vmem:[%s8340_s1 + $0xe0] sm:$0xff]   ;;  %v503_v29 = vld [vmem:[%s8341_s2 + $0x1d8] sm:$0xff] }
  0x4e   : > { %605 = vperm.xlu1 %5412, %v463_v32   ;;  %600 = vperm.xlu0 %5411, %v462_v33   ;;  %v504_v32 = vld [vmem:[%s8341_s2 + $0x1e0] sm:$0xff]  ;;  %v5443_v33 = vld [vmem:[%s8340_s1 + $0xe8] sm:$0xff]  }
  0x50   : > { %5122 = vmatmul.mubr.msk.bf16.gmra.mrb[16].mxu0 %vm994_vm0, %v5423_v36  ;;  %v506_v36 = vld [vmem:[%s8341_s2 + $0x1f0] sm:$0xff] }
  0x51   : > { %5125 = vmatprep.mubr.msk.bf16.mxu0 %vm994_vm0, %v5424_v37  ;;  %v1621_v37 = vld [vmem:[%s8343_s4 + $0x88] sm:$0xff] }
  0x52   : > { %615 = vperm.xlu1 %5412, %v465_v34   ;;  %610 = vperm.xlu0 %5411, %v464_v35   ;;  %v5444_v34 = vld [vmem:[%s8340_s1 + $0xf0] sm:$0xff]   ;;  %v507_v35 = vld [vmem:[%s8341_s2 + $0x1f8] sm:$0xff] }
  0x56   : > { %625 = vperm.xlu1 %5412, %v467_v38   ;;  %620 = vperm.xlu0 %5411, %v466_v39   ;;  %v1620_v38 = vld [vmem:[%s8343_s4 + $0x80] sm:$0xff]  ;;  %v5445_v39 = vld [vmem:[%s8340_s1 + $0xf8] sm:$0xff]  }
  0x58   : > { %5126 = vmatmul.mubr.msk.bf16.gmra.mrb[20].mxu0 %vm994_vm0, %v5425_v42  ;;  %v1605_v42 = vld [vmem:[%s8343_s4 + $0x8] sm:$0xff] }
  0x59   : > { %5129 = vmatprep.mubr.msk.bf16.mxu0 %vm994_vm0, %v5426_v43  ;;  %v1604_v43 = vld [vmem:[%s8343_s4] sm:$0xff] }
  0x5a   : > { %635 = vperm.xlu1 %5412, %v469_v40   ;;  %630 = vperm.xlu0 %5411, %v468_v41  }
  0x5e   : > { %645 = vperm.xlu1 %5412, %v471_v44   ;;  %640 = vperm.xlu0 %5411, %v470_v45  }
  0x60   : > { %5130 = vmatmul.mubr.msk.bf16.gmra.mrb[24].mxu0 %vm994_vm0, %v5427_v48 }
  0x61   : > { %5133 = vmatprep.mubr.msk.bf16.mxu0 %vm994_vm0, %v5428_v49 }
  0x62   : > { %655 = vperm.xlu1 %5412, %v473_v46   ;;  %650 = vperm.xlu0 %5411, %v472_v47   ;;  %v1623_v46 = vld [vmem:[%s8343_s4 + $0x98] sm:$0xff]  ;;  %v1622_v47 = vld [vmem:[%s8343_s4 + $0x90] sm:$0xff] }
  0x66   : > { %665 = vperm.xlu1 %5412, %v475_v50   ;;  %660 = vperm.xlu0 %5411, %v474_v51   ;;  %v1607_v50 = vld [vmem:[%s8343_s4 + $0x18] sm:$0xff]  ;;  %v1606_v51 = vld [vmem:[%s8343_s4 + $0x10] sm:$0xff] }
  0x68   : > { %5134 = vmatmul.mubr.msk.bf16.gmra.mrb[28].mxu0 %vm994_vm0, %v5429_v54  ;;  %v1625_v54 = vld [vmem:[%s8343_s4 + $0xa8] sm:$0xff] }
  0x69   : > { %5137 = vmatprep.mubr.msk.bf16.mxu0 %vm994_vm0, %v5430_v55  ;;  %v1624_v55 = vld [vmem:[%s8343_s4 + $0xa0] sm:$0xff] }
  0x6a   : > { %675 = vperm.xlu1 %5412, %v477_v52   ;;  %670 = vperm.xlu0 %5411, %v476_v53  }
  0x6e   : > { %685 = vperm.xlu1 %5412, %v479_v56   ;;  %680 = vperm.xlu0 %5411, %v478_v57  }
  0x70   : > { %5138 = vmatmul.mubr.msk.bf16.gmra.mrb[32].mxu0 %vm994_vm0, %v5431_v60 }
  0x71   : > { %5141 = vmatprep.mubr.msk.bf16.mxu0 %vm994_vm0, %v5432_v61 }
  0x72   : > { %695 = vperm.xlu1 %5412, %v481_v58   ;;  %690 = vperm.xlu0 %5411, %v480_v59   ;;  %v1609_v58 = vld [vmem:[%s8343_s4 + $0x28] sm:$0xff]  ;;  %v1608_v59 = vld [vmem:[%s8343_s4 + $0x20] sm:$0xff] }
  0x76   : > { %705 = vperm.xlu1 %5412, %v483_v62   ;;  %700 = vperm.xlu0 %5411, %v482_v63   ;;  %v1611_v62 = vld [vmem:[%s8343_s4 + $0x38] sm:$0xff]  ;;  %v1610_v63 = vld [vmem:[%s8343_s4 + $0x30] sm:$0xff] }
  0x78   : > { %5142 = vmatmul.mubr.msk.bf16.gmra.mrb[36].mxu0 %vm994_vm0, %v5433_v2  ;;  %v1627_v2 = vld [vmem:[%s8343_s4 + $0xb8] sm:$0xff] }
  0x79   : > { %5145 = vmatprep.mubr.msk.bf16.mxu0 %vm994_vm0, %v5434_v3  ;;  %v1626_v3 = vld [vmem:[%s8343_s4 + $0xb0] sm:$0xff] }
  0x7a   : > { %715 = vperm.xlu1 %5412, %v485_v0   ;;  %710 = vperm.xlu0 %5411, %v484_v1  }
  0x7e   : > { %725 = vperm.xlu1 %5412, %v487_v4   ;;  %720 = vperm.xlu0 %5411, %v486_v6  }
  0x80   : > { %5146 = vmatmul.mubr.msk.bf16.gmra.mrb[40].mxu0 %vm994_vm0, %v5435_v9 }
  0x81   : > { %5149 = vmatprep.mubr.msk.bf16.mxu0 %vm994_vm0, %v5436_v10 }
  0x82   : > { %735 = vperm.xlu1 %5412, %v489_v7   ;;  %730 = vperm.xlu0 %5411, %v488_v8   ;;  %v1613_v7 = vld [vmem:[%s8343_s4 + $0x48] sm:$0xff]  ;;  %v1612_v8 = vld [vmem:[%s8343_s4 + $0x40] sm:$0xff] }
  0x86   : > { %745 = vperm.xlu1 %5412, %v491_v11   ;;  %740 = vperm.xlu0 %5411, %v490_v12   ;;  %v1629_v11 = vld [vmem:[%s8343_s4 + $0xc8] sm:$0xff]  ;;  %v1628_v12 = vld [vmem:[%s8343_s4 + $0xc0] sm:$0xff] }
  0x88   : > { %5150 = vmatmul.mubr.msk.bf16.gmra.mrb[44].mxu0 %vm994_vm0, %v5437_v15  ;;  %v1615_v15 = vld [vmem:[%s8343_s4 + $0x58] sm:$0xff] }
  0x89   : > { %5153 = vmatprep.mubr.msk.bf16.mxu0 %vm994_vm0, %v5438_v16  ;;  %v1614_v16 = vld [vmem:[%s8343_s4 + $0x50] sm:$0xff] }
  0x8a   : > { %755 = vperm.xlu1 %5412, %v493_v13   ;;  %750 = vperm.xlu0 %5411, %v492_v14  }
  0x8e   : > { %765 = vperm.xlu1 %5412, %v495_v17   ;;  %760 = vperm.xlu0 %5411, %v494_v18  }
  0x90   : > { %5154 = vmatmul.mubr.msk.bf16.gmra.mrb[48].mxu0 %vm994_vm0, %v5439_v21 }
  0x91   : > { %5157 = vmatprep.mubr.msk.bf16.mxu0 %vm994_vm0, %v5440_v22 }
  0x92   : > { %775 = vperm.xlu1 %5412, %v497_v19   ;;  %770 = vperm.xlu0 %5411, %v496_v20   ;;  %v1631_v19 = vld [vmem:[%s8343_s4 + $0xd8] sm:$0xff]  ;;  %v1630_v20 = vld [vmem:[%s8343_s4 + $0xd0] sm:$0xff] }
  0x96   : > { %785 = vperm.xlu1 %5412, %v499_v23   ;;  %780 = vperm.xlu0 %5411, %v498_v24   ;;  %v5448_v23 = vld [vmem:[%s8342_s3 + $0x164] ss:$16 sps:$4 sm:$0xff]  }
  0x97   : > { %v5451_v24 = vld [vmem:[%s8342_s3 + $0x4] ss:$16 sps:$4 sm:$0xff]   ;;  %2748 = vmatprep.mubr.bf16.mxu1 %v5448_v23  ;;  %v1643_v23 = vld [vmem:[%s8343_s4 + $0x138] sm:$0xff] }
  0x98   : > { %5158 = vmatmul.mubr.msk.bf16.gmra.mrb[52].mxu0 %vm994_vm0, %v5441_v27 }
  0x99   : > { %5161 = vmatprep.mubr.msk.bf16.mxu0 %vm994_vm0, %v5442_v28 }
  0x9a   : > { %795 = vperm.xlu1 %5412, %v501_v25   ;;  %790 = vperm.xlu0 %5411, %v500_v26   ;;  %v1617_v25 = vld [vmem:[%s8343_s4 + $0x68] sm:$0xff]  ;;  %v1616_v26 = vld [vmem:[%s8343_s4 + $0x60] sm:$0xff] }
  0x9e   : > { %805 = vperm.xlu1 %5412, %v503_v29   ;;  %800 = vperm.xlu0 %5411, %v502_v30   ;;  %v1633_v29 = vld [vmem:[%s8343_s4 + $0xe8] sm:$0xff]  ;;  %v1632_v30 = vld [vmem:[%s8343_s4 + $0xe0] sm:$0xff] }
  0xa0   : > { %5162 = vmatmul.mubr.msk.bf16.gmra.mrb[56].mxu0 %vm994_vm0, %v5443_v33  ;;  %v1618_v33 = vld [vmem:[%s8343_s4 + $0x70] sm:$0xff] }
  0xa1   : > { %5165 = vmatprep.mubr.msk.bf16.mxu0 %vm994_vm0, %v5444_v34 }
  0xa2   : > { %815 = vperm.xlu1 %5412, %v505_v31   ;;  %810 = vperm.xlu0 %5411, %v504_v32   ;;  %v1619_v32 = vld [vmem:[%s8343_s4 + $0x78] sm:$0xff] }
  0xa6   : > { %825 = vperm.xlu1 %5412, %v507_v35   ;;  %820 = vperm.xlu0 %5411, %v506_v36   ;;  %v1635_v35 = vld [vmem:[%s8343_s4 + $0xf8] sm:$0xff]  ;;  %v1634_v36 = vld [vmem:[%s8343_s4 + $0xf0] sm:$0xff] }
  0xa8   : > { %5166 = vmatmul.mubr.msk.bf16.gmra.mrb[60].mxu0 %vm994_vm0, %v5445_v39  ;;  %v1653_v39 = vld [vmem:[%s8343_s4 + $0x188] sm:$0xff] }
  0xa9   : > { %v6560_v40 = vpop.permute.xlu1 %520  ;;  %v6562_v41 = vpop.permute.xlu0 %510  ;;  %2660 = vmatprep.mubr.bf16.mxu0 %v5451_v24  ;;  %v1642_v24 = vld [vmem:[%s8343_s4 + $0x130] sm:$0xff] }
  0xaa   : > { %1755 = vperm.xlu1 %5412, %v1621_v37   ;;  %1750 = vperm.xlu0 %5411, %v1620_v38  }
  0xad   : > { %v6571_v44 = vpop.permute.xlu1 %525  ;;  %v6573_v45 = vpop.permute.xlu0 %515 }
  0xae   : > { %1675 = vperm.xlu1 %5412, %v1605_v42   ;;  %1670 = vperm.xlu0 %5411, %v1604_v43   ;;  %v1652_v42 = vld [vmem:[%s8343_s4 + $0x180] sm:$0xff] }
  0xb1   : > { %v6581_v48 = vpop.permute.xlu1 %535  ;;  %v6583_v49 = vpop.permute.xlu0 %530 }
  0xb2   : > { %1765 = vperm.xlu1 %5412, %v1623_v46   ;;  %1760 = vperm.xlu0 %5411, %v1622_v47   ;;  %v1637_v46 = vld [vmem:[%s8343_s4 + $0x108] sm:$0xff]  ;;  %v1636_v47 = vld [vmem:[%s8343_s4 + $0x100] sm:$0xff] }
  0xb5   : > { %v6591_v52 = vpop.permute.xlu1 %545  ;;  %v6593_v53 = vpop.permute.xlu0 %540 }
  0xb6   : > { %1685 = vperm.xlu1 %5412, %v1607_v50   ;;  %1680 = vperm.xlu0 %5411, %v1606_v51   ;;  %v1655_v51 = vld [vmem:[%s8343_s4 + $0x198] sm:$0xff] }
  0xb9   : > { %v6601_v56 = vpop.permute.xlu1 %555  ;;  %v6603_v57 = vpop.permute.xlu0 %550 }
  0xba   : > { %1775 = vperm.xlu1 %5412, %v1625_v54   ;;  %1770 = vperm.xlu0 %5411, %v1624_v55   ;;  %v1654_v54 = vld [vmem:[%s8343_s4 + $0x190] sm:$0xff] }
  0xbd   : > { %v6611_v60 = vpop.permute.xlu1 %565  ;;  %v6613_v61 = vpop.permute.xlu0 %560 }
  0xbe   : > { %1695 = vperm.xlu1 %5412, %v1609_v58   ;;  %1690 = vperm.xlu0 %5411, %v1608_v59   ;;  %v1639_v59 = vld [vmem:[%s8343_s4 + $0x118] sm:$0xff] }
  0xc1   : > { %v6621_v0 = vpop.permute.xlu1 %575  ;;  %v6623_v1 = vpop.permute.xlu0 %570 }
  0xc2   : > { %1705 = vperm.xlu1 %5412, %v1611_v62   ;;  %1700 = vperm.xlu0 %5411, %v1610_v63   ;;  %v1638_v62 = vld [vmem:[%s8343_s4 + $0x110] sm:$0xff] }
  0xc5   : > { %v6631_v4 = vpop.permute.xlu1 %585  ;;  %v6633_v6 = vpop.permute.xlu0 %580 }
  0xc6   : > { %1785 = vperm.xlu1 %5412, %v1627_v2   ;;  %1780 = vperm.xlu0 %5411, %v1626_v3   ;;  %v1657_v2 = vld [vmem:[%s8343_s4 + $0x1a8] sm:$0xff]  ;;  %v1656_v3 = vld [vmem:[%s8343_s4 + $0x1a0] sm:$0xff] }
  0xc9   : > { %v6641_v9 = vpop.permute.xlu1 %595  ;;  %v6643_v10 = vpop.permute.xlu0 %590 }
  0xca   : > { %1715 = vperm.xlu1 %5412, %v1613_v7   ;;  %1710 = vperm.xlu0 %5411, %v1612_v8   ;;  %v1641_v8 = vld [vmem:[%s8343_s4 + $0x128] sm:$0xff] }
  0xcd   : > { %v6651_v13 = vpop.permute.xlu1 %605  ;;  %v6653_v14 = vpop.permute.xlu0 %600 }
  0xce   : > { %1795 = vperm.xlu1 %5412, %v1629_v11   ;;  %1790 = vperm.xlu0 %5411, %v1628_v12   ;;  %v1640_v11 = vld [vmem:[%s8343_s4 + $0x120] sm:$0xff] }
  0xd1   : > { %v6661_v17 = vpop.permute.xlu1 %615  ;;  %v6663_v18 = vpop.permute.xlu0 %610 }
  0xd2   : > { %1725 = vperm.xlu1 %5412, %v1615_v15   ;;  %1720 = vperm.xlu0 %5411, %v1614_v16   ;;  %v1659_v16 = vld [vmem:[%s8343_s4 + $0x1b8] sm:$0xff] }
  0xd5   : > { %v6671_v21 = vpop.permute.xlu1 %625  ;;  %v6673_v22 = vpop.permute.xlu0 %620 }
  0xd6   : > { %1805 = vperm.xlu1 %5412, %v1631_v19   ;;  %1800 = vperm.xlu0 %5411, %v1630_v20   ;;  %v1658_v19 = vld [vmem:[%s8343_s4 + $0x1b0] sm:$0xff] }
  0xd9   : > { %v6687_v27 = vpop.permute.xlu0 %630  ;;  %v6689_v28 = vpop.permute.xlu1 %635 }
  0xda   : > { %1735 = vperm.xlu1 %5412, %v1617_v25   ;;  %1730 = vperm.xlu0 %5411, %v1616_v26  }
  0xdd   : > { %v6697_v31 = vpop.permute.xlu0 %640  ;;  %v6705_v34 = vpop.permute.xlu1 %645 }
  0xde   : > { %1815 = vperm.xlu1 %5412, %v1633_v29   ;;  %1810 = vperm.xlu0 %5411, %v1632_v30  }
  0xe1   : > { %v6713_v37 = vpop.permute.xlu0 %650  ;;  %v6715_v38 = vpop.permute.xlu1 %655 }
  0xe2   : > { %1745 = vperm.xlu1 %5412, %v1619_v32   ;;  %1740 = vperm.xlu0 %5411, %v1618_v33   ;;  %v1661_v32 = vld [vmem:[%s8343_s4 + $0x1c8] sm:$0xff]  ;;  %v1660_v33 = vld [vmem:[%s8343_s4 + $0x1c0] sm:$0xff] }
  0xe5   : > { %v6723_v43 = vpop.permute.xlu0 %660  ;;  %v6731_v50 = vpop.permute.xlu1 %665 }
  0xe6   : > { %1825 = vperm.xlu1 %5412, %v1635_v35   ;;  %1820 = vperm.xlu0 %5411, %v1634_v36  }
  0xe9   : > { %v6739_v55 = vpop.permute.xlu0 %670  ;;  %v6741_v58 = vpop.permute.xlu1 %675 }
  0xea   : > { %1915 = vperm.xlu1 %5412, %v1653_v39   ;;  %1910 = vperm.xlu0 %5411, %v1652_v42  }
  0xed   : > { %v6749_v63 = vpop.permute.xlu0 %680  ;;  %v6757_v7 = vpop.permute.xlu1 %685 }
  0xee   : > { %1835 = vperm.xlu1 %5412, %v1637_v46   ;;  %1830 = vperm.xlu0 %5411, %v1636_v47  }
  0xf1   : > { %v6765_v12 = vpop.permute.xlu0 %690  ;;  %v6767_v15 = vpop.permute.xlu1 %695 }
  0xf2   : > { %1925 = vperm.xlu1 %5412, %v1655_v51   ;;  %1920 = vperm.xlu0 %5411, %v1654_v54   ;;  %v1645_v51 = vld [vmem:[%s8343_s4 + $0x148] sm:$0xff] }
  0xf5   : > { %v6775_v20 = vpop.permute.xlu0 %700  ;;  %v6783_v25 = vpop.permute.xlu1 %705 }
  0xf6   : > { %1845 = vperm.xlu1 %5412, %v1639_v59   ;;  %1840 = vperm.xlu0 %5411, %v1638_v62   ;;  %v1663_v62 = vld [vmem:[%s8343_s4 + $0x1d8] sm:$0xff] }
  0xf9   : > { %v6792_v35 = vpop.permute.xlu0 %710  ;;  %v6796_v47 = vpop.permute.xlu1 %715 }
  0xfa   : > { %1935 = vperm.xlu1 %5412, %v1657_v2   ;;  %1930 = vperm.xlu0 %5411, %v1656_v3   ;;  %v1662_v2 = vld [vmem:[%s8343_s4 + $0x1d0] sm:$0xff] }
  0xfd   : > { %v6805_v54 = vpop.permute.xlu0 %720  ;;  %v6814_v3 = vpop.permute.xlu1 %725 }
  0xfe   : > { %1855 = vperm.xlu1 %5412, %v1641_v8   ;;  %1850 = vperm.xlu0 %5411, %v1640_v11  }
 0x102   : > { %1945 = vperm.xlu1 %5412, %v1659_v16   ;;  %1940 = vperm.xlu0 %5411, %v1658_v19  }
 0x103   : > { %v5107_v26 = vpop.f32.mrb[0].mxu0 }
 0x104   : > { %v1134_v29 = vadd.f32 %v5107_v26, %v6560_v40  ;;  %v1125_v30 = vpop.f32.mrb[1].mxu0 }
 0x105   : > { %v1126_v36 = vadd.f32 %v1125_v30, %v6562_v41  ;;  %v5108_v39 = vpop.f32.mrb[2].mxu0  ;;  %v1644_v41 = vld [vmem:[%s8343_s4 + $0x140] sm:$0xff] }
 0x106   : > { %1865 = vperm.xlu1 %5412, %v1643_v23   ;;  %1860 = vperm.xlu0 %5411, %v1642_v24   ;;  %5734 = vtanh.f32 %v1134_v29  ;;  %v1137_v42 = vadd.f32 %v5108_v39, %v6571_v44  ;;  %v1128_v46 = vpop.f32.mrb[3].mxu0  ;;  %v1647_v24 = vld [vmem:[%s8343_s4 + $0x158] sm:$0xff]  ;;  %v6825_v29 = vpop.permute.xlu0 %730 }
 0x107   : > { %5736 = vtanh.f32 %v1126_v36  ;;  %v1129_v40 = vadd.f32 %v1128_v46, %v6573_v45  ;;  %v1665_v46 = vld [vmem:[%s8343_s4 + $0x1e8] sm:$0xff] }
 0x108   : > { %5738 = vtanh.f32 %v1137_v42 }
 0x109   : > { %5740 = vtanh.f32 %v1129_v40  ;;  %v1664_v40 = vld [vmem:[%s8343_s4 + $0x1e0] sm:$0xff] }
 0x10a   : > { %1955 = vperm.xlu1 %5412, %v1661_v32   ;;  %1950 = vperm.xlu0 %5411, %v1660_v33   ;;  %v6827_v32 = vpop.permute.xlu1 %735 }
 0x10b   : > { %v5111_v44 = vpop.f32.mrb[4].mxu0 }
 0x10c   : > { %v1150_v59 = vadd.f32 %v5111_v44, %v6593_v53  ;;  %v1141_v45 = vpop.f32.mrb[5].mxu0 }
 0x10d   : > { %v1142_v8 = vadd.f32 %v1141_v45, %v6583_v49  ;;  %v5112_v11 = vpop.f32.mrb[6].mxu0  ;;  %v1646_v49 = vld [vmem:[%s8343_s4 + $0x150] sm:$0xff] }
 0x10e   : > { %1875 = vperm.xlu1 %5412, %v1645_v51   ;;  %1870 = vperm.xlu0 %5411, %v1644_v41   ;;  %5742 = vtanh.f32 %v1150_v59  ;;  %v1153_v16 = vadd.f32 %v5112_v11, %v6591_v52  ;;  %v1144_v19 = vpop.f32.mrb[7].mxu0 }
 0x10f   : > { %5744 = vtanh.f32 %v1142_v8  ;;  %v1145_v53 = vadd.f32 %v1144_v19, %v6581_v48  ;;  %v6849_v8 = vpop.permute.xlu1 %745 }
 0x110   : > { %v5735_v23 = vpop.eup %5734  ;;  %5746 = vtanh.f32 %v1153_v16 }
 0x111   : > { %v5737_v26 = vpop.eup %5736  ;;  %5748 = vtanh.f32 %v1145_v53 }
 0x112   : > { %1965 = vperm.xlu1 %5412, %v1663_v62   ;;  %1960 = vperm.xlu0 %5411, %v1662_v2   ;;  %v5739_v52 = vpop.eup %5738 }
 0x113   : > { %v5741_v30 = vpop.eup %5740  ;;  %v5115_v48 = vpop.f32.mrb[8].mxu0  ;;  %v1445_v33 = vpack.c.bf16 %v5739_v52, %v5735_v23 }
 0x114   : > { %v1166_v36 = vadd.f32 %v5115_v48, %v6613_v61  ;;  %v1157_v39 = vpop.f32.mrb[9].mxu0  ;;  %v1444_v42 = vpack.c.bf16 %v5741_v30, %v5737_v26  ;;  %v6838_v61 = vpop.permute.xlu0 %740  ;;  %v1666_v26 = vld [vmem:[%s8343_s4 + $0x1f0] sm:$0xff] }
 0x115   : > { %v1158_v51 = vadd.f32 %v1157_v39, %v6603_v57  ;;  %v5116_v41 = vpop.f32.mrb[10].mxu0  ;;  %v1649_v57 = vld [vmem:[%s8343_s4 + $0x168] sm:$0xff] }
 0x116   : > { %1885 = vperm.xlu1 %5412, %v1647_v24   ;;  %1880 = vperm.xlu0 %5411, %v1646_v49   ;;  %5750 = vtanh.f32 %v1166_v36  ;;  %v1169_v44 = vadd.f32 %v5116_v41, %v6611_v60  ;;  %v1160_v59 = vpop.f32.mrb[11].mxu0  ;;  %v1648_v60 = vld [vmem:[%s8343_s4 + $0x160] sm:$0xff]  ;;  %v1667_v49 = vld [vmem:[%s8343_s4 + $0x1f8] sm:$0xff]  ;;  %v6864_v36 = vpop.permute.xlu1 %755 }
 0x117   : > { %2629 = vmatpush1.bf16.msra.mxu0 %v1444_v42  ;;  %5185 = vmatpush1.bf16.msra.mxu1 %v1444_v42  ;;  %5752 = vtanh.f32 %v1158_v51  ;;  %v1161_v45 = vadd.f32 %v1160_v59, %v6601_v56 }
 0x118   : > { %v5743_v62 = vpop.eup %5742  ;;  %5754 = vtanh.f32 %v1169_v44  ;;  %2630 = vmatprep.subr.bf16.mxu0 %v6118_v5  ;;  %5170 = vmatprep.subr.bf16.mxu1 %v6118_v5  ;;  %v6860_v52 = vpop.permute.xlu0 %750 }
 0x119   : > { %v5745_v2 = vpop.eup %5744  ;;  %5756 = vtanh.f32 %v1161_v45 }
 0x11a   : > { %1975 = vperm.xlu1 %5412, %v1665_v46   ;;  %1970 = vperm.xlu0 %5411, %v1664_v40   ;;  %v5747_v56 = vpop.eup %5746 }
 0x11b   : > { %2631 = vmatpush1.bf16.msra.mxu0 %v1445_v33  ;;  %5186 = vmatpush1.bf16.msra.mxu1 %v1445_v33  ;;  %v5749_v11 = vpop.eup %5748  ;;  %v5119_v16 = vpop.f32.mrb[12].mxu0  ;;  %v1447_v19 = vpack.c.bf16 %v5747_v56, %v5743_v62 }
 0x11c   : > { %v1182_v53 = vadd.f32 %v5119_v16, %v6633_v6  ;;  %v1173_v23 = vpop.f32.mrb[13].mxu0  ;;  %2632 = vmatprep.subr.bf16.mxu0 %v6118_v5  ;;  %5171 = vmatprep.subr.bf16.mxu1 %v6118_v5  ;;  %v1446_v24 = vpack.c.bf16 %v5749_v11, %v5745_v2  ;;  %v6875_v51 = vpop.permute.xlu0 %760 }
 0x11d   : > { %v1174_v30 = vadd.f32 %v1173_v23, %v6623_v1  ;;  %v5120_v48 = vpop.f32.mrb[14].mxu0  ;;  %v1651_v1 = vld [vmem:[%s8343_s4 + $0x178] sm:$0xff]  ;;  %v6886_v2 = vpop.permute.xlu1 %765 }
 0x11e   : > { %1895 = vperm.xlu1 %5412, %v1649_v57   ;;  %1890 = vperm.xlu0 %5411, %v1648_v60   ;;  %5758 = vtanh.f32 %v1182_v53  ;;  %v1185_v6 = vadd.f32 %v5120_v48, %v6631_v4  ;;  %v1176_v33 = vpop.f32.mrb[15].mxu0  ;;  %v1650_v4 = vld [vmem:[%s8343_s4 + $0x170] sm:$0xff]  ;;  %v3367_v57 = vld [vmem:[%s8345_s6 + $0x8] sm:$0xff]  ;;  %v3366_v60 = vld [vmem:[%s8345_s6] sm:$0xff] }
 0x11f   : > { %2633 = vmatpush1.bf16.msra.mxu0 %v1446_v24  ;;  %5187 = vmatpush1.bf16.msra.mxu1 %v1446_v24  ;;  %5760 = vtanh.f32 %v1174_v30  ;;  %v1177_v39 = vadd.f32 %v1176_v33, %v6621_v0 }
 0x120   : > { %v5751_v42 = vpop.eup %5750  ;;  %5762 = vtanh.f32 %v1185_v6  ;;  %2634 = vmatprep.subr.bf16.mxu0 %v6118_v5  ;;  %5172 = vmatprep.subr.bf16.mxu1 %v6118_v5  ;;  %v6899_v24 = vpop.permute.xlu0 %770 }
 0x121   : > { %v5753_v46 = vpop.eup %5752  ;;  %5764 = vtanh.f32 %v1177_v39 }
 0x122   : > { %1985 = vperm.xlu1 %5412, %v1667_v49   ;;  %1980 = vperm.xlu0 %5411, %v1666_v26   ;;  %v5755_v40 = vpop.eup %5754  ;;  %v6901_v26 = vpop.permute.xlu1 %775 }
 0x123   : > { %2635 = vmatpush1.bf16.msra.mxu0 %v1447_v19  ;;  %5188 = vmatpush1.bf16.msra.mxu1 %v1447_v19  ;;  %v5757_v0 = vpop.eup %5756  ;;  %v5123_v41 = vpop.f32.mrb[16].mxu0  ;;  %v1449_v44 = vpack.c.bf16 %v5755_v40, %v5751_v42  ;;  %v3371_v42 = vld [vmem:[%s8345_s6 + $0x28] sm:$0xff] }
 0x124   : > { %v1198_v59 = vadd.f32 %v5123_v41, %v6653_v14  ;;  %v1189_v45 = vpop.f32.mrb[17].mxu0  ;;  %2636 = vmatprep.subr.bf16.mxu0 %v6118_v5  ;;  %5173 = vmatprep.subr.bf16.mxu1 %v6118_v5  ;;  %v1448_v62 = vpack.c.bf16 %v5757_v0, %v5753_v46  ;;  %v6914_v0 = vpop.permute.xlu0 %780 }
 0x125   : > { %v1190_v56 = vadd.f32 %v1189_v45, %v6643_v10  ;;  %v5124_v11 = vpop.f32.mrb[18].mxu0  ;;  %v3369_v10 = vld [vmem:[%s8345_s6 + $0x18] sm:$0xff] }
 0x126   : > { %1905 = vperm.xlu1 %5412, %v1651_v1   ;;  %1900 = vperm.xlu0 %5411, %v1650_v4   ;;  %5766 = vtanh.f32 %v1198_v59  ;;  %v1201_v14 = vadd.f32 %v5124_v11, %v6651_v13  ;;  %v1192_v16 = vpop.f32.mrb[19].mxu0  ;;  %v3368_v13 = vld [vmem:[%s8345_s6 + $0x10] sm:$0xff]  ;;  %v3370_v1 = vld [vmem:[%s8345_s6 + $0x20] sm:$0xff]  ;;  %v6925_v45 = vpop.permute.xlu1 %785 }
 0x127   : > { %2637 = vmatpush1.bf16.msra.mxu0 %v1448_v62  ;;  %5189 = vmatpush1.bf16.msra.mxu1 %v1448_v62  ;;  %5768 = vtanh.f32 %v1190_v56  ;;  %v1193_v19 = vadd.f32 %v1192_v16, %v6641_v9  ;;  %v3375_v16 = vld [vmem:[%s8345_s6 + $0x48] sm:$0xff] }
 0x128   : > { %v5759_v53 = vpop.eup %5758  ;;  %5770 = vtanh.f32 %v1201_v14  ;;  %2638 = vmatprep.subr.bf16.mxu0 %v6118_v5  ;;  %5174 = vmatprep.subr.bf16.mxu1 %v6118_v5 }
 0x129   : > { %v5761_v23 = vpop.eup %5760  ;;  %5772 = vtanh.f32 %v1193_v19  ;;  %v3374_v19 = vld [vmem:[%s8345_s6 + $0x40] sm:$0xff] }
 0x12a   : > { %3405 = vperm.xlu1 %5412, %v3367_v57   ;;  %3400 = vperm.xlu0 %5411, %v3366_v60   ;;  %v5763_v9 = vpop.eup %5762 }
 0x12b   : > { %2639 = vmatpush1.bf16.msra.mxu0 %v1449_v44  ;;  %5190 = vmatpush1.bf16.msra.mxu1 %v1449_v44  ;;  %v5765_v49 = vpop.eup %5764  ;;  %v5127_v30 = vpop.f32.mrb[20].mxu0  ;;  %v1451_v48 = vpack.c.bf16 %v5763_v9, %v5759_v53 }
 0x12c   : > { %v1214_v6 = vadd.f32 %v5127_v30, %v6673_v22  ;;  %v1205_v33 = vpop.f32.mrb[21].mxu0  ;;  %2640 = vmatprep.subr.bf16.mxu0 %v6118_v5  ;;  %5175 = vmatprep.subr.bf16.mxu1 %v6118_v5  ;;  %v1450_v39 = vpack.c.bf16 %v5765_v49, %v5761_v23  ;;  %v6936_v53 = vpop.permute.xlu0 %790 }
 0x12d   : > { %v1206_v4 = vadd.f32 %v1205_v33, %v6663_v18  ;;  %v5128_v46 = vpop.f32.mrb[22].mxu0  ;;  %v3373_v18 = vld [vmem:[%s8345_s6 + $0x38] sm:$0xff]  ;;  %v6940_v9 = vpop.permute.xlu1 %795 }
 0x12e   : > { %3415 = vperm.xlu1 %5412, %v3369_v10   ;;  %3410 = vperm.xlu0 %5411, %v3368_v13   ;;  %5774 = vtanh.f32 %v1214_v6  ;;  %v1217_v22 = vadd.f32 %v5128_v46, %v6671_v21  ;;  %v1208_v40 = vpop.f32.mrb[23].mxu0  ;;  %v3372_v21 = vld [vmem:[%s8345_s6 + $0x30] sm:$0xff] }
 0x12f   : > { %2641 = vmatpush1.bf16.msra.mxu0 %v1450_v39  ;;  %5191 = vmatpush1.bf16.msra.mxu1 %v1450_v39  ;;  %5776 = vtanh.f32 %v1206_v4  ;;  %v1209_v41 = vadd.f32 %v1208_v40, %v6661_v17  ;;  %v3378_v40 = vld [vmem:[%s8345_s6 + $0x60] sm:$0xff] }
 0x130   : > { %v5767_v44 = vpop.eup %5766  ;;  %5778 = vtanh.f32 %v1217_v22  ;;  %2642 = vmatprep.subr.bf16.mxu0 %v6118_v5  ;;  %5176 = vmatprep.subr.bf16.mxu1 %v6118_v5  ;;  %v6951_v33 = vpop.permute.xlu0 %800  ;;  %v3379_v22 = vld [vmem:[%s8345_s6 + $0x68] sm:$0xff] }
 0x131   : > { %v5769_v59 = vpop.eup %5768  ;;  %5780 = vtanh.f32 %v1209_v41  ;;  %v6962_v41 = vpop.permute.xlu1 %805 }
 0x132   : > { %3425 = vperm.xlu1 %5412, %v3371_v42   ;;  %3420 = vperm.xlu0 %5411, %v3370_v1   ;;  %v5771_v17 = vpop.eup %5770 }
 0x133   : > { %2643 = vmatpush1.bf16.msra.mxu0 %v1451_v48  ;;  %5192 = vmatpush1.bf16.msra.mxu1 %v1451_v48  ;;  %v5773_v62 = vpop.eup %5772  ;;  %v5131_v57 = vpop.f32.mrb[24].mxu0  ;;  %v1453_v60 = vpack.c.bf16 %v5771_v17, %v5767_v44 }
 0x134   : > { %v1230_v56 = vadd.f32 %v5131_v57, %v6697_v31  ;;  %v1221_v11 = vpop.f32.mrb[25].mxu0  ;;  %2644 = vmatprep.subr.bf16.mxu0 %v6118_v5  ;;  %5177 = vmatprep.subr.bf16.mxu1 %v6118_v5  ;;  %v1452_v14 = vpack.c.bf16 %v5773_v62, %v5769_v59  ;;  %v6975_v57 = vpop.permute.xlu0 %810 }
 0x135   : > { %v1222_v10 = vadd.f32 %v1221_v11, %v6687_v27  ;;  %v5132_v13 = vpop.f32.mrb[26].mxu0  ;;  %v3377_v27 = vld [vmem:[%s8345_s6 + $0x58] sm:$0xff] }
 0x136   : > { %3435 = vperm.xlu1 %5412, %v3373_v18   ;;  %3430 = vperm.xlu0 %5411, %v3372_v21   ;;  %5782 = vtanh.f32 %v1230_v56  ;;  %v1233_v31 = vadd.f32 %v5132_v13, %v6705_v34  ;;  %v1224_v23 = vpop.f32.mrb[27].mxu0  ;;  %v3376_v34 = vld [vmem:[%s8345_s6 + $0x50] sm:$0xff]  ;;  %v6977_v56 = vpop.permute.xlu1 %815  ;;  %v3383_v13 = vld [vmem:[%s8345_s6 + $0x88] sm:$0xff] }
 0x137   : > { %2645 = vmatpush1.bf16.msra.mxu0 %v1452_v14  ;;  %5193 = vmatpush1.bf16.msra.mxu1 %v1452_v14  ;;  %5784 = vtanh.f32 %v1222_v10  ;;  %v1225_v49 = vadd.f32 %v1224_v23, %v6689_v28 }
 0x138   : > { %v5775_v30 = vpop.eup %5774  ;;  %5786 = vtanh.f32 %v1233_v31  ;;  %2646 = vmatprep.subr.bf16.mxu0 %v6118_v5  ;;  %5178 = vmatprep.subr.bf16.mxu1 %v6118_v5  ;;  %v3382_v31 = vld [vmem:[%s8345_s6 + $0x80] sm:$0xff] }
 0x139   : > { %v5777_v48 = vpop.eup %5776  ;;  %5788 = vtanh.f32 %v1225_v49 }
 0x13a   : > { %3445 = vperm.xlu1 %5412, %v3375_v16   ;;  %3440 = vperm.xlu0 %5411, %v3374_v19   ;;  %v5779_v6 = vpop.eup %5778 }
 0x13b   : > { %2647 = vmatpush1.bf16.msra.mxu0 %v1453_v60  ;;  %5194 = vmatpush1.bf16.msra.mxu1 %v1453_v60  ;;  %v5781_v28 = vpop.eup %5780  ;;  %v5135_v39 = vpop.f32.mrb[28].mxu0  ;;  %v1455_v42 = vpack.c.bf16 %v5779_v6, %v5775_v30 }
 0x13c   : > { %v1246_v1 = vadd.f32 %v5135_v39, %v6723_v43  ;;  %v1237_v4 = vpop.f32.mrb[29].mxu0  ;;  %2648 = vmatprep.subr.bf16.mxu0 %v6118_v5  ;;  %5179 = vmatprep.subr.bf16.mxu1 %v6118_v5  ;;  %v1454_v46 = vpack.c.bf16 %v5781_v28, %v5777_v48  ;;  %v7001_v28 = vpop.permute.xlu1 %825 }
 0x13d   : > { %v1238_v44 = vadd.f32 %v1237_v4, %v6713_v37  ;;  %v5136_v18 = vpop.f32.mrb[30].mxu0  ;;  %v3381_v37 = vld [vmem:[%s8345_s6 + $0x78] sm:$0xff] }
 0x13e   : > { %3455 = vperm.xlu1 %5412, %v3377_v27   ;;  %3450 = vperm.xlu0 %5411, %v3376_v34   ;;  %5790 = vtanh.f32 %v1246_v1  ;;  %v1249_v43 = vadd.f32 %v5136_v18, %v6731_v50  ;;  %v1240_v21 = vpop.f32.mrb[31].mxu0  ;;  %v3380_v50 = vld [vmem:[%s8345_s6 + $0x70] sm:$0xff]  ;;  %v6990_v27 = vpop.permute.xlu0 %820 }
 0x13f   : > { %2649 = vmatpush1.bf16.msra.mxu0 %v1454_v46  ;;  %5195 = vmatpush1.bf16.msra.mxu1 %v1454_v46  ;;  %5792 = vtanh.f32 %v1238_v44  ;;  %v1241_v59 = vadd.f32 %v1240_v21, %v6715_v38  ;;  %v3386_v44 = vld [vmem:[%s8345_s6 + $0xa0] sm:$0xff] }
 0x140   : > { %v5783_v17 = vpop.eup %5782  ;;  %5794 = vtanh.f32 %v1249_v43  ;;  %2650 = vmatprep.subr.bf16.mxu0 %v6118_v5  ;;  %5180 = vmatprep.subr.bf16.mxu1 %v6118_v5 }
 0x141   : > { %v5785_v62 = vpop.eup %5784  ;;  %5796 = vtanh.f32 %v1241_v59 }
 0x142   : > { %3465 = vperm.xlu1 %5412, %v3379_v22   ;;  %3460 = vperm.xlu0 %5411, %v3378_v40   ;;  %v5787_v38 = vpop.eup %5786  ;;  %v3387_v40 = vld [vmem:[%s8345_s6 + $0xa8] sm:$0xff]  ;;  %v7012_v18 = vpop.permute.xlu0 %1750 }
 0x143   : > { %2651 = vmatpush1.bf16.msra.mxu0 %v1455_v42  ;;  %5196 = vmatpush1.bf16.msra.mxu1 %v1455_v42  ;;  %v5789_v60 = vpop.eup %5788  ;;  %v5139_v11 = vpop.f32.mrb[32].mxu0  ;;  %v1457_v14 = vpack.c.bf16 %v5787_v38, %v5783_v17  ;;  %v5449_v38 = vld [vmem:[%s8342_s3] ss:$16 sps:$4 sm:$0xff]  }
 0x144   : > { %v1262_v16 = vadd.f32 %v5139_v11, %v6749_v63  ;;  %v1253_v19 = vpop.f32.mrb[33].mxu0  ;;  %2652 = vmatprep.subr.bf16.mxu0 %v6118_v5  ;;  %5181 = vmatprep.subr.bf16.mxu1 %v6118_v5  ;;  %v1456_v10 = vpack.c.bf16 %v5789_v60, %v5785_v62  ;;  %v7016_v17 = vpop.permute.xlu1 %1755  ;;  %v5452_v11 = vld [vmem:[%s8342_s3 + $0x24] ss:$16 sps:$4 sm:$0xff]  }
 0x145   : > { %v1254_v23 = vadd.f32 %v1253_v19, %v6739_v55  ;;  %v5140_v49 = vpop.f32.mrb[34].mxu0  ;;  %v3385_v55 = vld [vmem:[%s8345_s6 + $0x98] sm:$0xff] }
 0x146   : > { %3475 = vperm.xlu1 %5412, %v3381_v37   ;;  %3470 = vperm.xlu0 %5411, %v3380_v50   ;;  %5798 = vtanh.f32 %v1262_v16  ;;  %v1265_v63 = vadd.f32 %v5140_v49, %v6757_v7  ;;  %v1256_v30 = vpop.f32.mrb[35].mxu0  ;;  %v3384_v7 = vld [vmem:[%s8345_s6 + $0x90] sm:$0xff]  ;;  %v7036_v16 = vpop.permute.xlu0 %1670  ;;  %v3391_v49 = vld [vmem:[%s8345_s6 + $0xc8] sm:$0xff] }
 0x147   : > { %2653 = vmatpush1.bf16.msra.mxu0 %v1456_v10  ;;  %5197 = vmatpush1.bf16.msra.mxu1 %v1456_v10  ;;  %5800 = vtanh.f32 %v1254_v23  ;;  %v1257_v34 = vadd.f32 %v1256_v30, %v6741_v58  ;;  %v5454_v30 = vld [vmem:[%s8342_s3 + $0x184] ss:$16 sps:$4 sm:$0xff]  }
 0x148   : > { %v5791_v48 = vpop.eup %5790  ;;  %5802 = vtanh.f32 %v1265_v63  ;;  %2654 = vmatprep.subr.bf16.mxu0 %v6118_v5  ;;  %5182 = vmatprep.subr.bf16.mxu1 %v6118_v5  ;;  %v3390_v63 = vld [vmem:[%s8345_s6 + $0xc0] sm:$0xff] }
 0x149   : > { %v5793_v6 = vpop.eup %5792  ;;  %5804 = vtanh.f32 %v1257_v34  ;;  %v7049_v34 = vpop.permute.xlu1 %1675 }
 0x14a   : > { %3485 = vperm.xlu1 %5412, %v3383_v13   ;;  %3480 = vperm.xlu0 %5411, %v3382_v31   ;;  %v5795_v58 = vpop.eup %5794 }
 0x14b   : > { %2655 = vmatpush1.bf16.msra.mxu0 %v1457_v14  ;;  %5198 = vmatpush1.bf16.msra.mxu1 %v1457_v14  ;;  %v5797_v39 = vpop.eup %5796  ;;  %v5143_v42 = vpop.f32.mrb[36].mxu0  ;;  %v1459_v1 = vpack.c.bf16 %v5795_v58, %v5791_v48 }
 0x14c   : > { %v1278_v4 = vadd.f32 %v5143_v42, %v6775_v20  ;;  %v1269_v46 = vpop.f32.mrb[37].mxu0  ;;  %2656 = vmatprep.subr.bf16.mxu0 %v6118_v5  ;;  %5183 = vmatprep.subr.bf16.mxu1 %v6118_v5  ;;  %v1458_v22 = vpack.c.bf16 %v5797_v39, %v5793_v6  ;;  %v7061_v42 = vpop.permute.xlu0 %1760 }
 0x14d   : > { %v1270_v43 = vadd.f32 %v1269_v46, %v6765_v12  ;;  %v5144_v21 = vpop.f32.mrb[38].mxu0  ;;  %v3389_v12 = vld [vmem:[%s8345_s6 + $0xb8] sm:$0xff]  ;;  %v5458_v46 = vld [vmem:[%s8342_s3 + $0x44] ss:$16 sps:$4 sm:$0xff]  }
 0x14e   : > { %3495 = vperm.xlu1 %5412, %v3385_v55   ;;  %3490 = vperm.xlu0 %5411, %v3384_v7   ;;  %5806 = vtanh.f32 %v1278_v4  ;;  %v1281_v20 = vadd.f32 %v5144_v21, %v6783_v25  ;;  %v1272_v59 = vpop.f32.mrb[39].mxu0  ;;  %v3388_v25 = vld [vmem:[%s8345_s6 + $0xb0] sm:$0xff] }
 0x14f   : > { %2657 = vmatpush1.bf16.msra.mxu0 %v1458_v22  ;;  %5199 = vmatpush1.bf16.msra.mxu1 %v1458_v22  ;;  %5808 = vtanh.f32 %v1270_v43  ;;  %v1273_v37 = vadd.f32 %v1272_v59, %v6767_v15  ;;  %v5446_v15 = vld [vmem:[%s8342_s3 + $0x160] ss:$16 sps:$4 sm:$0xff]  }
 0x150   : > { %v5799_v50 = vpop.eup %5798  ;;  %5810 = vtanh.f32 %v1281_v20  ;;  %2658 = vmatprep.subr.bf16.mxu0 %v6118_v5  ;;  %5184 = vmatprep.subr.bf16.mxu1 %v6118_v5 }
 0x151   : > { %v5801_v62 = vpop.eup %5800  ;;  %5812 = vtanh.f32 %v1273_v37  ;;  %v4232_v37 = vld [vmem:[%s8346_s7] sm:$0xff] }
 0x152   : > { %3505 = vperm.xlu1 %5412, %v3387_v40   ;;  %3500 = vperm.xlu0 %5411, %v3386_v44   ;;  %v5803_v60 = vpop.eup %5802  ;;  %v7072_v40 = vpop.permute.xlu1 %1765 }
 0x153   : > { %2659 = vmatpush1.bf16.msra.mxu0 %v1459_v1  ;;  %5200 = vmatpush1.bf16.msra.mxu1 %v1459_v1  ;;  %v5805_v14 = vpop.eup %5804  ;;  %v5147_v19 = vpop.f32.mrb[40].mxu0  ;;  %v1461_v10 = vpack.c.bf16 %v5803_v60, %v5799_v50  ;;  %v5457_v1 = vld [vmem:[%s8342_s3 + $0x180] ss:$16 sps:$4 sm:$0xff]  }
 0x154   : > { %v1294_v13 = vadd.f32 %v5147_v19, %v6805_v54  ;;  %v1285_v31 = vpop.f32.mrb[41].mxu0  ;;  %2917 = vmatprep.subr.bf16.mxu1 %v6118_v5  ;;  %v1460_v23 = vpack.c.bf16 %v5805_v14, %v5801_v62  ;;  %v3394_v50 = vld [vmem:[%s8345_s6 + $0xe0] sm:$0xff] }
 0x155   : > { %v1286_v54 = vadd.f32 %v1285_v31, %v6792_v35  ;;  %v5148_v48 = vpop.f32.mrb[42].mxu0  ;;  %v3393_v35 = vld [vmem:[%s8345_s6 + $0xd8] sm:$0xff]  ;;  %v5464_v31 = vld [vmem:[%s8342_s3 + $0x64] ss:$16 sps:$4 sm:$0xff]  }
 0x156   : > { %3515 = vperm.xlu1 %5412, %v3389_v12   ;;  %3510 = vperm.xlu0 %5411, %v3388_v25   ;;  %5814 = vtanh.f32 %v1294_v13  ;;  %v1297_v55 = vadd.f32 %v5148_v48, %v6814_v3  ;;  %v1288_v7 = vpop.f32.mrb[43].mxu0  ;;  %v3392_v3 = vld [vmem:[%s8345_s6 + $0xd0] sm:$0xff]  ;;  %v7097_v19 = vpop.permute.xlu1 %1685 }
 0x157   : > { %2661 = vmatmul.mubr.bf16.vlgmr.msra.gmra.mrb[64].mxu0 %v5449_v38  ;;  %2749 = vmatmul.mubr.bf16.vlgmr.msra.gmra.mrb[0].mxu1 %v5446_v15  ;;  %5816 = vtanh.f32 %v1286_v54  ;;  %v1289_v6 = vadd.f32 %v1288_v7, %v6796_v47  ;;  %v5456_v47 = vld [vmem:[%s8342_s3 + $0x20] ss:$16 sps:$4 sm:$0xff]   ;;  %v5460_v12 = vld [vmem:[%s8342_s3 + $0x1a4] ss:$16 sps:$4 sm:$0xff]   ;;  %v7087_v38 = vpop.permute.xlu0 %1680  ;;  %v4235_v7 = vld [vmem:[%s8346_s7 + $0x18] sm:$0xff] }
 0x158   : > { %2918 = vmatpush1.bf16.msra.mxu1 %v1460_v23  ;;  %2668 = vmatprep.mubr.bf16.mxu0 %v5452_v11  ;;  %v5807_v58 = vpop.eup %5806  ;;  %5818 = vtanh.f32 %v1297_v55  ;;  %v4236_v55 = vld [vmem:[%s8346_s7 + $0x20] sm:$0xff] }
 0x159   : > { %2919 = vmatprep.subr.bf16.mxu1 %v6118_v5  ;;  %2756 = vmatprep.mubr.bf16.mxu1 %v5454_v30  ;;  %v5809_v39 = vpop.eup %5808  ;;  %5820 = vtanh.f32 %v1289_v6  ;;  %v5466_v6 = vld [vmem:[%s8342_s3 + $0x1c4] ss:$16 sps:$4 sm:$0xff]  }
 0x15a   : > { %3525 = vperm.xlu1 %5412, %v3391_v49   ;;  %3520 = vperm.xlu0 %5411, %v3390_v63   ;;  %v5811_v4 = vpop.eup %5810 }
 0x15b   : > { %v5813_v22 = vpop.eup %5812  ;;  %v5151_v44 = vpop.f32.mrb[44].mxu0  ;;  %v1463_v43 = vpack.c.bf16 %v5811_v4, %v5807_v58 }
 0x15c   : > { %2920 = vmatpush1.bf16.msra.mxu1 %v1461_v10  ;;  %v1310_v21 = vadd.f32 %v5151_v44, %v6838_v61  ;;  %v1301_v20 = vpop.f32.mrb[45].mxu0  ;;  %v1462_v59 = vpack.c.bf16 %v5813_v22, %v5809_v39  ;;  %v5463_v10 = vld [vmem:[%s8342_s3 + $0x1a0] ss:$16 sps:$4 sm:$0xff]   ;;  %v7119_v58 = vpop.permute.xlu0 %1770 }
 0x15d   : > { %2921 = vmatprep.subr.bf16.mxu1 %v6118_v5  ;;  %v1302_v25 = vadd.f32 %v1301_v20, %v6825_v29  ;;  %v5152_v62 = vpop.f32.mrb[46].mxu0  ;;  %v4234_v29 = vld [vmem:[%s8346_s7 + $0x10] sm:$0xff] }
 0x15e   : > { %3535 = vperm.xlu1 %5412, %v3393_v35   ;;  %3530 = vperm.xlu0 %5411, %v3392_v3   ;;  %5822 = vtanh.f32 %v1310_v21  ;;  %v1313_v61 = vadd.f32 %v5152_v62, %v6849_v8  ;;  %v1304_v15 = vpop.f32.mrb[47].mxu0  ;;  %v4233_v8 = vld [vmem:[%s8346_s7 + $0x8] sm:$0xff]  ;;  %v5469_v22 = vld [vmem:[%s8342_s3 + $0x1c0] ss:$16 sps:$4 sm:$0xff]  }
 0x15f   : > { %2669 = vmatmul.mubr.bf16.gmra.mrb[68].mxu0 %v5456_v47  ;;  %2757 = vmatmul.mubr.bf16.gmra.mrb[4].mxu1 %v5457_v1  ;;  %5824 = vtanh.f32 %v1302_v25  ;;  %v1305_v60 = vadd.f32 %v1304_v15, %v6827_v32  ;;  %v5462_v32 = vld [vmem:[%s8342_s3 + $0x40] ss:$16 sps:$4 sm:$0xff]   ;;  %v7123_v47 = vpop.permute.xlu1 %1775  ;;  %v5472_v15 = vld [vmem:[%s8342_s3 + $0x1e4] ss:$16 sps:$4 sm:$0xff]  }
 0x160   : > { %2922 = vmatpush1.bf16.msra.mxu1 %v1462_v59  ;;  %2676 = vmatprep.mubr.bf16.mxu0 %v5458_v46  ;;  %v5815_v11 = vpop.eup %5814  ;;  %5826 = vtanh.f32 %v1313_v61  ;;  %v7142_v20 = vpop.permute.xlu0 %1690  ;;  %v4240_v62 = vld [vmem:[%s8346_s7 + $0x40] sm:$0xff]  ;;  %v4239_v61 = vld [vmem:[%s8346_s7 + $0x38] sm:$0xff] }
 0x161   : > { %2923 = vmatprep.subr.bf16.mxu1 %v6118_v5  ;;  %2764 = vmatprep.mubr.bf16.mxu1 %v5460_v12  ;;  %v5817_v14 = vpop.eup %5816  ;;  %5828 = vtanh.f32 %v1305_v60 }
 0x162   : > { %4266 = vperm.xlu1 %5412, %v4232_v37   ;;  %3540 = vperm.xlu0 %5411, %v3394_v50   ;;  %v5819_v13 = vpop.eup %5818 }
 0x163   : > { %v5821_v23 = vpop.eup %5820  ;;  %v5155_v49 = vpop.f32.mrb[48].mxu0  ;;  %v1465_v63 = vpack.c.bf16 %v5819_v13, %v5815_v11 }
 0x164   : > { %2924 = vmatpush1.bf16.msra.mxu1 %v1463_v43  ;;  %v1326_v30 = vadd.f32 %v5155_v49, %v6875_v51  ;;  %v1317_v54 = vpop.f32.mrb[49].mxu0  ;;  %v1464_v48 = vpack.c.bf16 %v5821_v23, %v5817_v14  ;;  %v5470_v43 = vld [vmem:[%s8342_s3 + $0x84] ss:$16 sps:$4 sm:$0xff]   ;;  %v7155_v60 = vpop.permute.xlu1 %1695 }
 0x165   : > { %2925 = vmatprep.subr.bf16.mxu1 %v6118_v5  ;;  %v1318_v51 = vadd.f32 %v1317_v54, %v6860_v52  ;;  %v5156_v35 = vpop.f32.mrb[50].mxu0  ;;  %v4238_v52 = vld [vmem:[%s8346_s7 + $0x30] sm:$0xff]  ;;  %v7167_v13 = vpop.permute.xlu0 %1700 }
 0x166   : > { %4276 = vperm.xlu1 %5412, %v4234_v29   ;;  %4271 = vperm.xlu0 %5411, %v4233_v8   ;;  %5830 = vtanh.f32 %v1326_v30  ;;  %v1329_v3 = vadd.f32 %v5156_v35, %v6886_v2  ;;  %v1320_v39 = vpop.f32.mrb[51].mxu0  ;;  %v4237_v2 = vld [vmem:[%s8346_s7 + $0x28] sm:$0xff]  ;;  %v5476_v49 = vld [vmem:[%s8342_s3 + $0xa4] ss:$16 sps:$4 sm:$0xff]   ;;  %v4243_v35 = vld [vmem:[%s8346_s7 + $0x58] sm:$0xff] }
 0x167   : > { %2677 = vmatmul.mubr.bf16.gmra.mrb[72].mxu0 %v5462_v32  ;;  %2765 = vmatmul.mubr.bf16.gmra.mrb[8].mxu1 %v5463_v10  ;;  %5832 = vtanh.f32 %v1318_v51  ;;  %v1321_v1 = vadd.f32 %v1320_v39, %v6864_v36  ;;  %v5468_v36 = vld [vmem:[%s8342_s3 + $0x60] ss:$16 sps:$4 sm:$0xff]  }
 0x168   : > { %2926 = vmatpush1.bf16.msra.mxu1 %v1464_v48  ;;  %2684 = vmatprep.mubr.bf16.mxu0 %v5464_v31  ;;  %v5823_v4 = vpop.eup %5822  ;;  %5834 = vtanh.f32 %v1329_v3  ;;  %v5475_v31 = vld [vmem:[%s8342_s3 + $0x1e0] ss:$16 sps:$4 sm:$0xff]   ;;  %v7178_v30 = vpop.permute.xlu1 %1705  ;;  %v5478_v3 = vld [vmem:[%s8342_s3 + $0x204] ss:$16 sps:$4 sm:$0xff]  }
 0x169   : > { %2927 = vmatprep.subr.bf16.mxu1 %v6118_v5  ;;  %2772 = vmatprep.mubr.bf16.mxu1 %v5466_v6  ;;  %v5825_v46 = vpop.eup %5824  ;;  %5836 = vtanh.f32 %v1321_v1  ;;  %v4244_v51 = vld [vmem:[%s8346_s7 + $0x60] sm:$0xff] }
 0x16a   : > { %4286 = vperm.xlu1 %5412, %v4236_v55   ;;  %4281 = vperm.xlu0 %5411, %v4235_v7   ;;  %v5827_v44 = vpop.eup %5826 }
 0x16b   : > { %v5829_v21 = vpop.eup %5828  ;;  %v5159_v59 = vpop.f32.mrb[52].mxu0  ;;  %v1467_v37 = vpack.c.bf16 %v5827_v44, %v5823_v4  ;;  %v5481_v44 = vld [vmem:[%s8342_s3 + $0x200] ss:$16 sps:$4 sm:$0xff]  }
 0x16c   : > { %2928 = vmatpush1.bf16.msra.mxu1 %v1465_v63  ;;  %v1342_v50 = vadd.f32 %v5159_v59, %v6914_v0  ;;  %v1333_v12 = vpop.f32.mrb[53].mxu0  ;;  %v1466_v25 = vpack.c.bf16 %v5829_v21, %v5825_v46  ;;  %v5482_v21 = vld [vmem:[%s8342_s3 + $0xc4] ss:$16 sps:$4 sm:$0xff]  }
 0x16d   : > { %2929 = vmatprep.subr.bf16.mxu1 %v6118_v5  ;;  %v1334_v0 = vadd.f32 %v1333_v12, %v6899_v24  ;;  %v5160_v11 = vpop.f32.mrb[54].mxu0  ;;  %v4242_v24 = vld [vmem:[%s8346_s7 + $0x50] sm:$0xff] }
 0x16e   : > { %4296 = vperm.xlu1 %5412, %v4238_v52   ;;  %4291 = vperm.xlu0 %5411, %v4237_v2   ;;  %5838 = vtanh.f32 %v1342_v50  ;;  %v1345_v29 = vadd.f32 %v5160_v11, %v6925_v45  ;;  %v1336_v8 = vpop.f32.mrb[55].mxu0  ;;  %v4241_v45 = vld [vmem:[%s8346_s7 + $0x48] sm:$0xff]  ;;  %v7193_v52 = vpop.permute.xlu0 %1780 }
 0x16f   : > { %2685 = vmatmul.mubr.bf16.gmra.mrb[76].mxu0 %v5468_v36  ;;  %2773 = vmatmul.mubr.bf16.gmra.mrb[12].mxu1 %v5469_v22  ;;  %5840 = vtanh.f32 %v1334_v0  ;;  %v1337_v14 = vadd.f32 %v1336_v8, %v6901_v26  ;;  %v5474_v26 = vld [vmem:[%s8342_s3 + $0x80] ss:$16 sps:$4 sm:$0xff]   ;;  %v7203_v22 = vpop.permute.xlu1 %1785  ;;  %v5484_v0 = vld [vmem:[%s8342_s3 + $0x224] ss:$16 sps:$4 sm:$0xff]  }
 0x170   : > { %2930 = vmatpush1.bf16.msra.mxu1 %v1466_v25  ;;  %2692 = vmatprep.mubr.bf16.mxu0 %v5470_v43  ;;  %v5831_v32 = vpop.eup %5830  ;;  %5842 = vtanh.f32 %v1345_v29 }
 0x171   : > { %2931 = vmatprep.subr.bf16.mxu1 %v6118_v5  ;;  %2780 = vmatprep.mubr.bf16.mxu1 %v5472_v15  ;;  %v5833_v10 = vpop.eup %5832  ;;  %5844 = vtanh.f32 %v1337_v14  ;;  %v4247_v15 = vld [vmem:[%s8346_s7 + $0x78] sm:$0xff] }
 0x172   : > { %4306 = vperm.xlu1 %5412, %v4240_v62   ;;  %4301 = vperm.xlu0 %5411, %v4239_v61   ;;  %v5835_v23 = vpop.eup %5834  ;;  %v4248_v61 = vld [vmem:[%s8346_s7 + $0x80] sm:$0xff]  ;;  %v7225_v11 = vpop.permute.xlu0 %1710 }
 0x173   : > { %v5837_v63 = vpop.eup %5836  ;;  %v5163_v54 = vpop.f32.mrb[56].mxu0  ;;  %v1469_v48 = vpack.c.bf16 %v5835_v23, %v5831_v32  ;;  %v5488_v23 = vld [vmem:[%s8342_s3 + $0xe4] ss:$16 sps:$4 sm:$0xff]  }
 0x174   : > { %2932 = vmatpush1.bf16.msra.mxu1 %v1467_v37  ;;  %v1358_v55 = vadd.f32 %v5163_v54, %v6951_v33  ;;  %v1349_v7 = vpop.f32.mrb[57].mxu0  ;;  %v1468_v6 = vpack.c.bf16 %v5837_v63, %v5833_v10  ;;  %v7229_v32 = vpop.permute.xlu1 %1715 }
 0x175   : > { %2933 = vmatprep.subr.bf16.mxu1 %v6118_v5  ;;  %v1350_v39 = vadd.f32 %v1349_v7, %v6936_v53  ;;  %v5164_v1 = vpop.f32.mrb[58].mxu0  ;;  %v4246_v53 = vld [vmem:[%s8346_s7 + $0x70] sm:$0xff]  ;;  %v4251_v7 = vld [vmem:[%s8346_s7 + $0x98] sm:$0xff] }
 0x176   : > { %4316 = vperm.xlu1 %5412, %v4242_v24   ;;  %4311 = vperm.xlu0 %5411, %v4241_v45   ;;  %5846 = vtanh.f32 %v1358_v55  ;;  %v1361_v33 = vadd.f32 %v5164_v1, %v6962_v41  ;;  %v1352_v4 = vpop.f32.mrb[59].mxu0  ;;  %v4245_v41 = vld [vmem:[%s8346_s7 + $0x68] sm:$0xff]  ;;  %v7248_v63 = vpop.permute.xlu0 %1790  ;;  %v4252_v55 = vld [vmem:[%s8346_s7 + $0xa0] sm:$0xff] }
 0x177   : > { %2693 = vmatmul.mubr.bf16.gmra.mrb[80].mxu0 %v5474_v26  ;;  %2781 = vmatmul.mubr.bf16.gmra.mrb[16].mxu1 %v5475_v31  ;;  %5848 = vtanh.f32 %v1350_v39  ;;  %v1353_v2 = vadd.f32 %v1352_v4, %v6940_v9  ;;  %v5480_v9 = vld [vmem:[%s8342_s3 + $0xa0] ss:$16 sps:$4 sm:$0xff]   ;;  %v4253_v39 = vld [vmem:[%s8346_s7 + $0xa8] sm:$0xff] }
 0x178   : > { %2934 = vmatpush1.bf16.msra.mxu1 %v1468_v6  ;;  %2700 = vmatprep.mubr.bf16.mxu0 %v5476_v49  ;;  %v5839_v46 = vpop.eup %5838  ;;  %5850 = vtanh.f32 %v1361_v33  ;;  %v5487_v26 = vld [vmem:[%s8342_s3 + $0x220] ss:$16 sps:$4 sm:$0xff]   ;;  %v5490_v6 = vld [vmem:[%s8342_s3 + $0x244] ss:$16 sps:$4 sm:$0xff]  }
 0x179   : > { %2935 = vmatprep.subr.bf16.mxu1 %v6118_v5  ;;  %2788 = vmatprep.mubr.bf16.mxu1 %v5478_v3  ;;  %v5841_v36 = vpop.eup %5840  ;;  %5852 = vtanh.f32 %v1353_v2  ;;  %v3395_v3 = vld [vmem:[%s8345_s6 + $0xe8] sm:$0xff]  ;;  %v5492_v4 = vld [vmem:[%s8342_s3 + $0xe0] ss:$16 sps:$4 sm:$0xff]  }
 0x17a   : > { %4326 = vperm.xlu1 %5412, %v4244_v51   ;;  %4321 = vperm.xlu0 %5411, %v4243_v35   ;;  %v5843_v43 = vpop.eup %5842  ;;  %v7260_v51 = vpop.permute.xlu1 %1795  ;;  %v5493_v2 = vld [vmem:[%s8342_s3 + $0x240] ss:$16 sps:$4 sm:$0xff]  }
 0x17b   : > { %v5845_v59 = vpop.eup %5844  ;;  %v5167_v37 = vpop.f32.mrb[60].mxu0  ;;  %v1471_v50 = vpack.c.bf16 %v5843_v43, %v5839_v46  ;;  %v3396_v43 = vld [vmem:[%s8345_s6 + $0xf0] sm:$0xff] }
 0x17c   : > { %2936 = vmatpush1.bf16.msra.mxu1 %v1469_v48  ;;  %v1374_v12 = vadd.f32 %v5167_v37, %v6990_v27  ;;  %v1365_v25 = vpop.f32.mrb[61].mxu0  ;;  %v1470_v62 = vpack.c.bf16 %v5845_v59, %v5841_v36  ;;  %v7269_v33 = vpop.permute.xlu0 %1720  ;;  %v5496_v59 = vld [vmem:[%s8342_s3 + $0x264] ss:$16 sps:$4 sm:$0xff]  }
 0x17d   : > { %2937 = vmatprep.subr.bf16.mxu1 %v6118_v5  ;;  %v1366_v27 = vadd.f32 %v1365_v25, %v6975_v57  ;;  %v5168_v29 = vpop.f32.mrb[62].mxu0  ;;  %v4250_v57 = vld [vmem:[%s8346_s7 + $0x90] sm:$0xff] }
 0x17e   : > { %4336 = vperm.xlu1 %5412, %v4246_v53   ;;  %4331 = vperm.xlu0 %5411, %v4245_v41   ;;  %5854 = vtanh.f32 %v1374_v12  ;;  %v1377_v8 = vadd.f32 %v5168_v29, %v7001_v28  ;;  %v1368_v14 = vpop.f32.mrb[63].mxu0  ;;  %v4249_v28 = vld [vmem:[%s8346_s7 + $0x88] sm:$0xff]  ;;  %v5494_v53 = vld [vmem:[%s8342_s3 + $0x104] ss:$16 sps:$4 sm:$0xff]   ;;  %v7280_v36 = vpop.permute.xlu1 %1725  ;;  %v4255_v12 = vld [vmem:[%s8346_s7 + $0xb8] sm:$0xff] }
 0x17f   : > { %2701 = vmatmul.mubr.bf16.gmra.mrb[84].mxu0 %v5480_v9  ;;  %2789 = vmatmul.mubr.bf16.gmra.mrb[20].mxu1 %v5481_v44  ;;  %5856 = vtanh.f32 %v1366_v27  ;;  %v1369_v24 = vadd.f32 %v1368_v14, %v6977_v56  ;;  %v5486_v56 = vld [vmem:[%s8342_s3 + $0xc0] ss:$16 sps:$4 sm:$0xff]   ;;  %v4259_v14 = vld [vmem:[%s8346_s7 + $0xd8] sm:$0xff] }
 0x180   : > { %2938 = vmatpush1.bf16.msra.mxu1 %v1470_v62  ;;  %2708 = vmatprep.mubr.bf16.mxu0 %v5482_v21  ;;  %v5847_v45 = vpop.eup %5846  ;;  %5858 = vtanh.f32 %v1377_v8  ;;  %v4254_v21 = vld [vmem:[%s8346_s7 + $0xb0] sm:$0xff]  ;;  %v7292_v37 = vpop.permute.xlu0 %1800  ;;  %v4256_v27 = vld [vmem:[%s8346_s7 + $0xc0] sm:$0xff] }
 0x181   : > { %2939 = vmatprep.subr.bf16.mxu1 %v6118_v5  ;;  %2796 = vmatprep.mubr.bf16.mxu1 %v5484_v0  ;;  %v5849_v10 = vpop.eup %5848  ;;  %5860 = vtanh.f32 %v1369_v24  ;;  %v5498_v62 = vld [vmem:[%s8342_s3 + $0x100] ss:$16 sps:$4 sm:$0xff]   ;;  %v4257_v0 = vld [vmem:[%s8346_s7 + $0xc8] sm:$0xff] }
 0x182   : > { %4346 = vperm.xlu1 %5412, %v4248_v61   ;;  %4341 = vperm.xlu0 %5411, %v4247_v15   ;;  %v5851_v31 = vpop.eup %5850  ;;  %v7301_v25 = vpop.permute.xlu1 %1805  ;;  %v5499_v61 = vld [vmem:[%s8342_s3 + $0x260] ss:$16 sps:$4 sm:$0xff]   ;;  %v5502_v15 = vld [vmem:[%s8342_s3 + $0x284] ss:$16 sps:$4 sm:$0xff]  }
 0x183   : > { %v5853_v49 = vpop.eup %5852  ;;  %v1473_v54 = vpack.c.bf16 %v5851_v31, %v5847_v45  ;;  %v4258_v24 = vld [vmem:[%s8346_s7 + $0xd0] sm:$0xff]  ;;  %v4260_v31 = vld [vmem:[%s8346_s7 + $0xe0] sm:$0xff] }
 0x184   : > { %2940 = vmatpush1.bf16.msra.mxu1 %v1471_v50  ;;  %v1472_v48 = vpack.c.bf16 %v5853_v49, %v5849_v10  ;;  %v3397_v50 = vld [vmem:[%s8345_s6 + $0xf8] sm:$0xff]  ;;  %v7321_v29 = vpop.permute.xlu0 %1730  ;;  %v5504_v45 = vld [vmem:[%s8342_s3 + $0x120] ss:$16 sps:$4 sm:$0xff]   ;;  %v5508_v10 = vld [vmem:[%s8342_s3 + $0x2a4] ss:$16 sps:$4 sm:$0xff]  }
 0x185   : > { %2941 = vmatprep.subr.bf16.mxu1 %v6118_v5  ;;  %v4263_v49 = vld [vmem:[%s8346_s7 + $0xf8] sm:$0xff] }
 0x186   : > { %4356 = vperm.xlu1 %5412, %v4250_v57   ;;  %4351 = vperm.xlu0 %5411, %v4249_v28   ;;  %v7323_v8 = vpop.permute.xlu1 %1735  ;;  %v5505_v57 = vld [vmem:[%s8342_s3 + $0x280] ss:$16 sps:$4 sm:$0xff]   ;;  %v5506_v28 = vld [vmem:[%s8342_s3 + $0x144] ss:$16 sps:$4 sm:$0xff]  }
 0x187   : > { %2709 = vmatmul.mubr.bf16.gmra.mrb[88].mxu0 %v5486_v56  ;;  %2797 = vmatmul.mubr.bf16.gmra.mrb[24].mxu1 %v5487_v26  ;;  %v4261_v26 = vld [vmem:[%s8346_s7 + $0xe8] sm:$0xff] }
 0x188   : > { %2942 = vmatpush1.bf16.msra.mxu1 %v1472_v48  ;;  %2716 = vmatprep.mubr.bf16.mxu0 %v5488_v23  ;;  %v5855_v35 = vpop.eup %5854  ;;  %v7343_v56 = vpop.permute.xlu0 %1810 }
 0x189   : > { %2943 = vmatprep.subr.bf16.mxu1 %v6118_v5  ;;  %2804 = vmatprep.mubr.bf16.mxu1 %v5490_v6  ;;  %v5857_v1 = vpop.eup %5856  ;;  %v5512_v6 = vld [vmem:[%s8342_s3 + $0x2c4] ss:$16 sps:$4 sm:$0xff]  }
 0x18a   : > { %4366 = vperm.xlu1 %5412, %v4252_v55   ;;  %4361 = vperm.xlu0 %5411, %v4251_v7   ;;  %v5859_v46 = vpop.eup %5858  ;;  %v7351_v23 = vpop.permute.xlu1 %1815  ;;  %v5510_v55 = vld [vmem:[%s8342_s3 + $0x140] ss:$16 sps:$4 sm:$0xff]  }
 0x18b   : > { %v5861_v41 = vpop.eup %5860  ;;  %v1475_v9 = vpack.c.bf16 %v5859_v46, %v5855_v35  ;;  %v5511_v7 = vld [vmem:[%s8342_s3 + $0x2a0] ss:$16 sps:$4 sm:$0xff]   ;;  %v5518_v46 = vld [vmem:[%s8342_s3 + $0x304] ss:$16 sps:$4 sm:$0xff]  }
 0x18c   : > { %2944 = vmatpush1.bf16.msra.mxu1 %v1473_v54  ;;  %v1474_v44 = vpack.c.bf16 %v5861_v41, %v5857_v1  ;;  %v4262_v54 = vld [vmem:[%s8346_s7 + $0xf0] sm:$0xff]  ;;  %v7359_v48 = vpop.permute.xlu0 %1740 }
 0x18d   : > { %2945 = vmatprep.subr.bf16.mxu1 %v6118_v5  ;;  %v5514_v1 = vld [vmem:[%s8342_s3 + $0x2c0] ss:$16 sps:$4 sm:$0xff]   ;;  %v5521_v41 = vld [vmem:[%s8342_s3 + $0x324] ss:$16 sps:$4 sm:$0xff]  }
 0x18e   : > { %3545 = vperm.xlu1 %5412, %v3395_v3   ;;  %4371 = vperm.xlu0 %5411, %v4253_v39   ;;  %v7370_v35 = vpop.permute.xlu1 %1745  ;;  %v4493_v3 = vld [vmem:[#allocation2] sm:$0x1] }
 0x18f   : > { %2717 = vmatmul.mubr.bf16.gmra.mrb[92].mxu0 %v5492_v4  ;;  %2805 = vmatmul.mubr.bf16.gmra.mrb[28].mxu1 %v5493_v2  ;;  %v5515_v4 = vld [vmem:[%s8342_s3 + $0x2e4] ss:$16 sps:$4 sm:$0xff]   ;;  %v5517_v2 = vld [vmem:[%s8342_s3 + $0x2e0] ss:$16 sps:$4 sm:$0xff]  }
 0x190   : > { %2946 = vmatpush1.bf16.msra.mxu1 %v1474_v44  ;;  %2724 = vmatprep.mubr.bf16.mxu0 %v5494_v53  ;;  %v7372_v39 = vpop.permute.xlu0 %1820  ;;  %v5520_v53 = vld [vmem:[%s8342_s3 + $0x300] ss:$16 sps:$4 sm:$0xff]   ;;  %v5524_v44 = vld [vmem:[%s8342_s3 + $0x344] ss:$16 sps:$4 sm:$0xff]  }
 0x191   : > { %2947 = vmatprep.subr.bf16.mxu1 %v6118_v5  ;;  %2812 = vmatprep.mubr.bf16.mxu1 %v5496_v59  ;;  %v5500_v5 = vld [vmem:[%s8342_s3 + $0x124] ss:$16 sps:$4 sm:$0xff]   ;;  %v5529_v59 = vld [vmem:[%s8342_s3 + $0x360] ss:$16 sps:$4 sm:$0xff]  }
 0x192   : > { %3550 = vperm.xlu1 %5412, %v3396_v43   ;;  %4376 = vperm.xlu0 %5411, %v4254_v21   ;;  %v5526_v43 = vld [vmem:[%s8342_s3 + $0x340] ss:$16 sps:$4 sm:$0xff]   ;;  %v5527_v21 = vld [vmem:[%s8342_s3 + $0x364] ss:$16 sps:$4 sm:$0xff]  }
 0x194   : > { %2948 = vmatpush1.bf16.msra.mxu1 %v1475_v9  ;;  %v5523_v9 = vld [vmem:[%s8342_s3 + $0x320] ss:$16 sps:$4 sm:$0xff]  }
 0x196   : > { %3555 = vperm.xlu1 %5412, %v3397_v50   ;;  %4381 = vperm.xlu0 %5411, %v4255_v12   ;;  %v5530_v50 = vld [vmem:[%s8342_s3 + $0x384] ss:$16 sps:$4 sm:$0xff]   ;;  %v5532_v12 = vld [vmem:[%s8342_s3 + $0x380] ss:$16 sps:$4 sm:$0xff]  }
 0x197   : > { %2725 = vmatmul.mubr.bf16.gmra.mrb[96].mxu0 %v5498_v62  ;;  %2813 = vmatmul.mubr.bf16.gmra.mrb[32].mxu1 %v5499_v61  ;;  %v5533_v62 = vld [vmem:[%s8342_s3 + $0x3a4] ss:$16 sps:$4 sm:$0xff]   ;;  %v5535_v61 = vld [vmem:[%s8342_s3 + $0x3a0] ss:$16 sps:$4 sm:$0xff]  }
 0x198   : > { %2732 = vmatprep.mubr.bf16.mxu0 %v5500_v5  ;;  %2820 = vmatprep.mubr.bf16.mxu1 %v5502_v15  ;;  %v5536_v5 = vld [vmem:[%s8342_s3 + $0x3c4] ss:$16 sps:$4 sm:$0xff]   ;;  %v5538_v15 = vld [vmem:[%s8342_s3 + $0x3c0] ss:$16 sps:$4 sm:$0xff]  }
 0x19a   : > { %4391 = vperm.xlu1 %5412, %v4257_v0   ;;  %4386 = vperm.xlu0 %5411, %v4256_v27   ;;  %v5539_v0 = vld [vmem:[%s8342_s3 + $0x3e4] ss:$16 sps:$4 sm:$0xff]   ;;  %v5541_v27 = vld [vmem:[%s8342_s3 + $0x3e0] ss:$16 sps:$4 sm:$0xff]  }
 0x19e   : > { %4401 = vperm.xlu1 %5412, %v4259_v14   ;;  %4396 = vperm.xlu0 %5411, %v4258_v24   ;;  %v5544_v14 = vld [vmem:[%s8342_s3 + $0xc] ss:$16 sps:$4 sm:$0xff]   ;;  %v5542_v24 = vld [vmem:[%s8342_s3 + $0x8] ss:$16 sps:$4 sm:$0xff]  }
 0x19f   : > { %2733 = vmatmul.mubr.bf16.gmra.mrb[100].mxu0 %v5504_v45  ;;  %2821 = vmatmul.mubr.bf16.gmra.mrb[36].mxu1 %v5505_v57  ;;  %v5545_v45 = vld [vmem:[%s8342_s3 + $0x2c] ss:$16 sps:$4 sm:$0xff]   ;;  %v5547_v57 = vld [vmem:[%s8342_s3 + $0x28] ss:$16 sps:$4 sm:$0xff]  }
 0x1a0   : > { %2740 = vmatprep.mubr.bf16.mxu0 %v5506_v28  ;;  %2828 = vmatprep.mubr.bf16.mxu1 %v5508_v10  ;;  %v5548_v28 = vld [vmem:[%s8342_s3 + $0x4c] ss:$16 sps:$4 sm:$0xff]   ;;  %v5550_v10 = vld [vmem:[%s8342_s3 + $0x48] ss:$16 sps:$4 sm:$0xff]  }
 0x1a2   : > { %4411 = vperm.xlu1 %5412, %v4261_v26   ;;  %4406 = vperm.xlu0 %5411, %v4260_v31   ;;  %v5551_v26 = vld [vmem:[%s8342_s3 + $0x6c] ss:$16 sps:$4 sm:$0xff]   ;;  %v5553_v31 = vld [vmem:[%s8342_s3 + $0x68] ss:$16 sps:$4 sm:$0xff]  }
 0x1a6   : > { %4421 = vperm.xlu1 %5412, %v4263_v49   ;;  %4416 = vperm.xlu0 %5411, %v4262_v54   ;;  %v5554_v49 = vld [vmem:[%s8342_s3 + $0x8c] ss:$16 sps:$4 sm:$0xff]   ;;  %v5556_v54 = vld [vmem:[%s8342_s3 + $0x88] ss:$16 sps:$4 sm:$0xff]  }
 0x1a7   : > { %2741 = vmatmul.mubr.bf16.gmra.mrb[104].mxu0 %v5510_v55  ;;  %2829 = vmatmul.mubr.bf16.gmra.mrb[40].mxu1 %v5511_v7  ;;  %v5557_v55 = vld [vmem:[%s8342_s3 + $0xac] ss:$16 sps:$4 sm:$0xff]   ;;  %v5559_v7 = vld [vmem:[%s8342_s3 + $0xa8] ss:$16 sps:$4 sm:$0xff]  }
 0x1a8   : > { %2836 = vmatprep.mubr.bf16.mxu1 %v5512_v6  ;;  %v5560_v6 = vld [vmem:[%s8342_s3 + $0xcc] ss:$16 sps:$4 sm:$0xff]  }
 0x1aa   : > { %4496 = vperm.xlu0 %5411, %v4493_v3  }
 0x1af   : > { %2837 = vmatmul.mubr.bf16.gmra.mrb[44].mxu1 %v5514_v1 }
 0x1b0   : > { %2844 = vmatprep.mubr.bf16.mxu1 %v5515_v4  ;;  %v5562_v4 = vld [vmem:[%s8342_s3 + $0xc8] ss:$16 sps:$4 sm:$0xff]  }
 0x1b7   : > { %2845 = vmatmul.mubr.bf16.gmra.mrb[48].mxu1 %v5517_v2 }
 0x1b8   : > { %2852 = vmatprep.mubr.bf16.mxu1 %v5518_v46  ;;  %v5563_v46 = vld [vmem:[%s8342_s3 + $0xec] ss:$16 sps:$4 sm:$0xff]  }
 0x1bf   : > { %2853 = vmatmul.mubr.bf16.gmra.mrb[52].mxu1 %v5520_v53 }
 0x1c0   : > { %2860 = vmatprep.mubr.bf16.mxu1 %v5521_v41 }
 0x1c7   : > { %2861 = vmatmul.mubr.bf16.gmra.mrb[56].mxu1 %v5523_v9 }
 0x1c8   : > { %2868 = vmatprep.mubr.bf16.mxu1 %v5524_v44  ;;  %v5565_v44 = vld [vmem:[%s8342_s3 + $0xe8] ss:$16 sps:$4 sm:$0xff]  }
 0x1cf   : > { %2869 = vmatmul.mubr.bf16.gmra.mrb[60].mxu1 %v5526_v43 }
 0x1d0   : > { %2876 = vmatprep.mubr.bf16.mxu1 %v5527_v21  ;;  %v5566_v21 = vld [vmem:[%s8342_s3 + $0x10c] ss:$16 sps:$4 sm:$0xff]  }
 0x1d7   : > { %2877 = vmatmul.mubr.bf16.gmra.mrb[64].mxu1 %v5529_v59 }
 0x1d8   : > { %2884 = vmatprep.mubr.bf16.mxu1 %v5530_v50 }
 0x1df   : > { %2885 = vmatmul.mubr.bf16.gmra.mrb[68].mxu1 %v5532_v12 }
 0x1e0   : > { %2892 = vmatprep.mubr.bf16.mxu1 %v5533_v62  ;;  %v5568_v62 = vld [vmem:[%s8342_s3 + $0x108] ss:$16 sps:$4 sm:$0xff]  }
 0x1e7   : > { %2893 = vmatmul.mubr.bf16.gmra.mrb[72].mxu1 %v5535_v61 }
 0x1e8   : > { %2900 = vmatprep.mubr.bf16.mxu1 %v5536_v5  ;;  %v5569_v5 = vld [vmem:[%s8342_s3 + $0x12c] ss:$16 sps:$4 sm:$0xff]  }
 0x1ef   : > { %2901 = vmatmul.mubr.bf16.gmra.mrb[76].mxu1 %v5538_v15 }
 0x1f0   : > { %2908 = vmatprep.mubr.bf16.mxu1 %v5539_v0 }
 0x1f7   : > { %2909 = vmatmul.mubr.bf16.gmra.mrb[80].mxu1 %v5541_v27 }
 0x1f8   : > { %2949 = vmatprep.mubr.bf16.mxu1 %v5544_v14  ;;  %v5571_v14 = vld [vmem:[%s8342_s3 + $0x128] ss:$16 sps:$4 sm:$0xff]  }
 0x1ff   : > { %2950 = vmatmul.mubr.bf16.vlgmr.msra.gmra.mrb[84].mxu1 %v5542_v24 }
 0x200   : > { %2957 = vmatprep.mubr.bf16.mxu1 %v5545_v45  ;;  %v5572_v45 = vld [vmem:[%s8342_s3 + $0x14c] ss:$16 sps:$4 sm:$0xff]  }
 0x207   : > { %2958 = vmatmul.mubr.bf16.gmra.mrb[88].mxu1 %v5547_v57 }
 0x208   : > { %2965 = vmatprep.mubr.bf16.mxu1 %v5548_v28 }
 0x20f   : > { %2966 = vmatmul.mubr.bf16.gmra.mrb[92].mxu1 %v5550_v10 }
 0x210   : > { %2973 = vmatprep.mubr.bf16.mxu1 %v5551_v26  ;;  %v5574_v26 = vld [vmem:[%s8342_s3 + $0x148] ss:$16 sps:$4 sm:$0xff]  }
 0x217   : > { %2974 = vmatmul.mubr.bf16.gmra.mrb[96].mxu1 %v5553_v31 }
 0x218   : > { %2981 = vmatprep.mubr.bf16.mxu1 %v5554_v49  ;;  %v5575_v49 = vld [vmem:[%s8342_s3 + $0x16c] ss:$16 sps:$4 sm:$0xff]  }
 0x21f   : > { %2982 = vmatmul.mubr.bf16.gmra.mrb[100].mxu1 %v5556_v54 }
 0x220   : > { %2989 = vmatprep.mubr.bf16.mxu1 %v5557_v55 }
 0x227   : > { %2990 = vmatmul.mubr.bf16.gmra.mrb[104].mxu1 %v5559_v7 }
 0x228   : > { %2997 = vmatprep.mubr.bf16.mxu1 %v5560_v6  ;;  %v5577_v6 = vld [vmem:[%s8342_s3 + $0x168] ss:$16 sps:$4 sm:$0xff]  }
 0x22a   : > { %v7470_v3 = vpop.f32.mrb[64].mxu0 }
 0x22b   : > { %v2664_v1 = vpop.f32.mrb[65].mxu0 }
 0x22c   : > { %v7475_v2 = vpop.f32.mrb[66].mxu0 }
 0x22d   : > { %v2667_v53 = vpop.f32.mrb[67].mxu0 }
 0x22f   : > { %2998 = vmatmul.mubr.bf16.gmra.mrb[108].mxu1 %v5562_v4  ;;  %v5578_v4 = vld [vmem:[%s8342_s3 + $0x18c] ss:$16 sps:$4 sm:$0xff]  }
 0x230   : > { %3005 = vmatprep.mubr.bf16.mxu1 %v5563_v46 }
 0x232   : > { %v7480_v41 = vpop.f32.mrb[68].mxu0 }
 0x233   : > { %v2672_v9 = vpop.f32.mrb[69].mxu0 }
 0x234   : > { %v7485_v43 = vpop.f32.mrb[70].mxu0 }
 0x235   : > { %v2675_v59 = vpop.f32.mrb[71].mxu0 }
 0x236   : > { %v5581_v59 = vld [vmem:[%s8342_s3 + $0x1ac] ss:$16 sps:$4 sm:$0xff]  }
 0x237   : > { %3006 = vmatmul.mubr.bf16.gmra.mrb[112].mxu1 %v5565_v44  ;;  %v5580_v44 = vld [vmem:[%s8342_s3 + $0x188] ss:$16 sps:$4 sm:$0xff]  }
 0x238   : > { %3013 = vmatprep.mubr.bf16.mxu1 %v5566_v21 }
 0x23a   : > { %v7490_v50 = vpop.f32.mrb[72].mxu0 }
 0x23b   : > { %v2680_v12 = vpop.f32.mrb[73].mxu0 }
 0x23c   : > { %v7495_v61 = vpop.f32.mrb[74].mxu0 }
 0x23d   : > { %v2683_v15 = vpop.f32.mrb[75].mxu0 }
 0x23e   : > { %v5583_v15 = vld [vmem:[%s8342_s3 + $0x1a8] ss:$16 sps:$4 sm:$0xff]  }
 0x23f   : > { %3014 = vmatmul.mubr.bf16.gmra.mrb[116].mxu1 %v5568_v62 }
 0x240   : > { %3021 = vmatprep.mubr.bf16.mxu1 %v5569_v5 }
 0x242   : > { %v7500_v0 = vpop.f32.mrb[76].mxu0 }
 0x243   : > { %v2688_v27 = vpop.f32.mrb[77].mxu0 }
 0x244   : > { %v7505_v24 = vpop.f32.mrb[78].mxu0 }
 0x245   : > { %v2691_v57 = vpop.f32.mrb[79].mxu0 }
 0x247   : > { %3022 = vmatmul.mubr.bf16.gmra.mrb[120].mxu1 %v5571_v14  ;;  %v5584_v14 = vld [vmem:[%s8342_s3 + $0x1cc] ss:$16 sps:$4 sm:$0xff]  }
 0x248   : > { %3029 = vmatprep.mubr.bf16.mxu1 %v5572_v45 }
 0x24a   : > { %v7510_v28 = vpop.f32.mrb[80].mxu0 }
 0x24b   : > { %v2696_v10 = vpop.f32.mrb[81].mxu0 }
 0x24c   : > { %v7515_v31 = vpop.f32.mrb[82].mxu0 }
 0x24d   : > { %v2699_v54 = vpop.f32.mrb[83].mxu0 }
 0x24e   : > { %v5587_v54 = vld [vmem:[%s8342_s3 + $0x1ec] ss:$16 sps:$4 sm:$0xff]  }
 0x24f   : > { %3030 = vmatmul.mubr.bf16.gmra.mrb[124].mxu1 %v5574_v26  ;;  %v5586_v26 = vld [vmem:[%s8342_s3 + $0x1c8] ss:$16 sps:$4 sm:$0xff]  }
 0x250   : > { %3037 = vmatprep.mubr.bf16.mxu1 %v5575_v49 }
 0x252   : > { %v7520_v55 = vpop.f32.mrb[84].mxu0 }
 0x253   : > { %v2704_v7 = vpop.f32.mrb[85].mxu0 }
 0x254   : > { %v7525_v1 = vpop.f32.mrb[86].mxu0 }
 0x255   : > { %v2707_v46 = vpop.f32.mrb[87].mxu0 }
 0x256   : > { %v5589_v46 = vld [vmem:[%s8342_s3 + $0x1e8] ss:$16 sps:$4 sm:$0xff]  }
 0x257   : > { %3038 = vmatmul.mubr.bf16.gmra.mrb[0].mxu1 %v5577_v6 }
 0x258   : > { %3045 = vmatprep.mubr.bf16.mxu1 %v5578_v4 }
 0x25a   : > { %v7530_v53 = vpop.f32.mrb[88].mxu0 }
 0x25b   : > { %v2712_v9 = vpop.f32.mrb[89].mxu0 }
 0x25c   : > { %v7535_v21 = vpop.f32.mrb[90].mxu0 }
 0x25d   : > { %v2715_v12 = vpop.f32.mrb[91].mxu0 }
 0x25f   : > { %3046 = vmatmul.mubr.bf16.gmra.mrb[4].mxu1 %v5580_v44  ;;  %v5590_v44 = vld [vmem:[%s8342_s3 + $0x20c] ss:$16 sps:$4 sm:$0xff]  }
 0x260   : > { %3053 = vmatprep.mubr.bf16.mxu1 %v5581_v59 }
 0x262   : > { %v7540_v62 = vpop.f32.mrb[92].mxu0 }
 0x263   : > { %v2720_v5 = vpop.f32.mrb[93].mxu0 }
 0x264   : > { %v7545_v27 = vpop.f32.mrb[94].mxu0 }
 0x265   : > { %v2723_v45 = vpop.f32.mrb[95].mxu0 }
 0x266   : > { %v5593_v45 = vld [vmem:[%s8342_s3 + $0x22c] ss:$16 sps:$4 sm:$0xff]  }
 0x267   : > { %3054 = vmatmul.mubr.bf16.gmra.mrb[8].mxu1 %v5583_v15  ;;  %v5592_v15 = vld [vmem:[%s8342_s3 + $0x208] ss:$16 sps:$4 sm:$0xff]  }
 0x268   : > { %3061 = vmatprep.mubr.bf16.mxu1 %v5584_v14 }
 0x26a   : > { %v7550_v57 = vpop.f32.mrb[96].mxu0 }
 0x26b   : > { %v2728_v10 = vpop.f32.mrb[97].mxu0 }
 0x26c   : > { %v7555_v49 = vpop.f32.mrb[98].mxu0 }
 0x26d   : > { %v2731_v7 = vpop.f32.mrb[99].mxu0 }
 0x26e   : > { %v5598_v7 = vld [vmem:[%s8342_s3 + $0x248] ss:$16 sps:$4 sm:$0xff]  }
 0x26f   : > { %3062 = vmatmul.mubr.bf16.gmra.mrb[12].mxu1 %v5586_v26  ;;  %v5595_v26 = vld [vmem:[%s8342_s3 + $0x228] ss:$16 sps:$4 sm:$0xff]  }
 0x270   : > { %3069 = vmatprep.mubr.bf16.mxu1 %v5587_v54  ;;  %v5596_v54 = vld [vmem:[%s8342_s3 + $0x24c] ss:$16 sps:$4 sm:$0xff]  }
 0x272   : > { %v7560_v6 = vpop.f32.mrb[100].mxu0 }
 0x273   : > { %v2736_v4 = vpop.f32.mrb[101].mxu0 }
 0x274   : > { %v7565_v9 = vpop.f32.mrb[102].mxu0  ;;  %v5599_v4 = vld [vmem:[%s8342_s3 + $0x26c] ss:$16 sps:$4 sm:$0xff]  }
 0x275   : > { %v2739_v59 = vpop.f32.mrb[103].mxu0 }
 0x276   : > { %v5604_v59 = vld [vmem:[%s8342_s3 + $0x288] ss:$16 sps:$4 sm:$0xff]  }
 0x277   : > { %3070 = vmatmul.mubr.bf16.gmra.mrb[16].mxu1 %v5589_v46  ;;  %v5601_v46 = vld [vmem:[%s8342_s3 + $0x268] ss:$16 sps:$4 sm:$0xff]  }
 0x278   : > { %3077 = vmatprep.mubr.bf16.mxu1 %v5590_v44  ;;  %v5602_v44 = vld [vmem:[%s8342_s3 + $0x28c] ss:$16 sps:$4 sm:$0xff]  }
 0x27a   : > { %v7570_v12 = vpop.f32.mrb[104].mxu0 }
 0x27b   : > { %v2744_v5 = vpop.f32.mrb[105].mxu0 }
 0x27c   : > { %v7575_v14 = vpop.f32.mrb[106].mxu0  ;;  %v5605_v5 = vld [vmem:[%s8342_s3 + $0x2ac] ss:$16 sps:$4 sm:$0xff]  }
 0x27d   : > { %v2747_v10 = vpop.f32.mrb[107].mxu0 }
 0x27e   : > { %v5610_v10 = vld [vmem:[%s8342_s3 + $0x2c8] ss:$16 sps:$4 sm:$0xff]  }
 0x27f   : > { %3078 = vmatmul.mubr.bf16.gmra.mrb[20].mxu1 %v5592_v15  ;;  %v5607_v15 = vld [vmem:[%s8342_s3 + $0x2a8] ss:$16 sps:$4 sm:$0xff]  }
 0x280   : > { %3085 = vmatprep.mubr.bf16.mxu1 %v5593_v45  ;;  %v5608_v45 = vld [vmem:[%s8342_s3 + $0x2cc] ss:$16 sps:$4 sm:$0xff]  }
 0x287   : > { %3086 = vmatmul.mubr.bf16.gmra.mrb[24].mxu1 %v5595_v26  ;;  %v5611_v26 = vld [vmem:[%s8342_s3 + $0x2ec] ss:$16 sps:$4 sm:$0xff]  }
 0x288   : > { %3093 = vmatprep.mubr.bf16.mxu1 %v5596_v54  ;;  %v5613_v54 = vld [vmem:[%s8342_s3 + $0x2e8] ss:$16 sps:$4 sm:$0xff]  }
 0x28f   : > { %3094 = vmatmul.mubr.bf16.gmra.mrb[28].mxu1 %v5598_v7  ;;  %v5614_v7 = vld [vmem:[%s8342_s3 + $0x30c] ss:$16 sps:$4 sm:$0xff]  }
 0x290   : > { %3101 = vmatprep.mubr.bf16.mxu1 %v5599_v4  ;;  %v5616_v4 = vld [vmem:[%s8342_s3 + $0x308] ss:$16 sps:$4 sm:$0xff]  }
 0x297   : > { %3102 = vmatmul.mubr.bf16.gmra.mrb[32].mxu1 %v5601_v46  ;;  %v5617_v46 = vld [vmem:[%s8342_s3 + $0x32c] ss:$16 sps:$4 sm:$0xff]  }
 0x298   : > { %3109 = vmatprep.mubr.bf16.mxu1 %v5602_v44  ;;  %v5619_v44 = vld [vmem:[%s8342_s3 + $0x328] ss:$16 sps:$4 sm:$0xff]  }
 0x29f   : > { %3110 = vmatmul.mubr.bf16.gmra.mrb[36].mxu1 %v5604_v59  ;;  %v5620_v59 = vld [vmem:[%s8342_s3 + $0x34c] ss:$16 sps:$4 sm:$0xff]  }
 0x2a0   : > { %3117 = vmatprep.mubr.bf16.mxu1 %v5605_v5  ;;  %v5622_v5 = vld [vmem:[%s8342_s3 + $0x348] ss:$16 sps:$4 sm:$0xff]  }
 0x2a7   : > { %3118 = vmatmul.mubr.bf16.gmra.mrb[40].mxu1 %v5607_v15  ;;  %v5623_v15 = vld [vmem:[%s8342_s3 + $0x36c] ss:$16 sps:$4 sm:$0xff]  }
 0x2a8   : > { %3125 = vmatprep.mubr.bf16.mxu1 %v5608_v45  ;;  %v2663_v45 = vadd.f32 %v7470_v3, %v7036_v16  ;;  %v2671_v16 = vadd.f32 %v7480_v41, %v7087_v38  ;;  %v2674_v3 = vadd.f32 %v7485_v43, %v7097_v19  ;;  %v5640_v38 = vld [vmem:[%s8344_s5 + $0x4] ss:$16 sps:$4 sm:$0xff]   ;;  %v2679_v43 = vadd.f32 %v7490_v50, %v7142_v20 }
 0x2a9   : > { %3910 = vmatprep.mubr.bf16.mxu0 %v5640_v38 }
 0x2af   : > { %3126 = vmatmul.mubr.bf16.gmra.mrb[44].mxu1 %v5610_v10 }
 0x2b0   : > { %3133 = vmatprep.mubr.bf16.mxu1 %v5611_v26  ;;  %v2666_v26 = vadd.f32 %v7475_v2, %v7049_v34 }
 0x2b7   : > { %3134 = vmatmul.mubr.bf16.gmra.mrb[48].mxu1 %v5613_v54 }
 0x2b8   : > { %3141 = vmatprep.mubr.bf16.mxu1 %v5614_v7 }
 0x2bf   : > { %3142 = vmatmul.mubr.bf16.gmra.mrb[52].mxu1 %v5616_v4  ;;  %v5625_v4 = vld [vmem:[%s8342_s3 + $0x368] ss:$16 sps:$4 sm:$0xff]  }
 0x2c0   : > { %3149 = vmatprep.mubr.bf16.mxu1 %v5617_v46 }
 0x2c7   : > { %3150 = vmatmul.mubr.bf16.gmra.mrb[56].mxu1 %v5619_v44  ;;  %v5626_v44 = vld [vmem:[%s8342_s3 + $0x38c] ss:$16 sps:$4 sm:$0xff]  }
 0x2c8   : > { %3157 = vmatprep.mubr.bf16.mxu1 %v5620_v59 }
 0x2cf   : > { %3158 = vmatmul.mubr.bf16.gmra.mrb[60].mxu1 %v5622_v5 }
 0x2d0   : > { %3165 = vmatprep.mubr.bf16.mxu1 %v5623_v15 }
 0x2d2   : > { %v2951_v10 = vpop.f32.mrb[84].mxu1 }
 0x2d3   : > { %v2952_v54 = vadd.f32 %v2951_v10, %v2663_v45  ;;  %v2953_v7 = vpop.f32.mrb[85].mxu1  ;;  %v5628_v45 = vld [vmem:[%s8342_s3 + $0x388] ss:$16 sps:$4 sm:$0xff]  }
 0x2d4   : > { %v2954_v46 = vpop.f32.mrb[86].mxu1 }
 0x2d5   : > { %v2955_v59 = vadd.f32 %v2954_v46, %v2666_v26  ;;  %v2956_v5 = vpop.f32.mrb[87].mxu1  ;;  %5862 = vtanh.f32 %v2952_v54  ;;  %v5629_v26 = vld [vmem:[%s8342_s3 + $0x3ac] ss:$16 sps:$4 sm:$0xff]  }
 0x2d7   : > { %5864 = vtanh.f32 %v2955_v59  ;;  %3166 = vmatmul.mubr.bf16.gmra.mrb[64].mxu1 %v5625_v4 }
 0x2d8   : > { %3173 = vmatprep.mubr.bf16.mxu1 %v5626_v44  ;;  %v2682_v44 = vadd.f32 %v7495_v61, %v7155_v60  ;;  %v2687_v61 = vadd.f32 %v7500_v0, %v7167_v13 }
 0x2da   : > { %v2959_v34 = vpop.f32.mrb[88].mxu1 }
 0x2db   : > { %v2960_v2 = vadd.f32 %v2959_v34, %v2671_v16  ;;  %v2961_v15 = vpop.f32.mrb[89].mxu1  ;;  %v5631_v16 = vld [vmem:[%s8342_s3 + $0x3a8] ss:$16 sps:$4 sm:$0xff]  }
 0x2dc   : > { %v2962_v10 = vpop.f32.mrb[90].mxu1 }
 0x2dd   : > { %v2963_v54 = vadd.f32 %v2962_v10, %v2674_v3  ;;  %v2964_v7 = vpop.f32.mrb[91].mxu1  ;;  %5866 = vtanh.f32 %v2960_v2  ;;  %v5632_v3 = vld [vmem:[%s8342_s3 + $0x3cc] ss:$16 sps:$4 sm:$0xff]   ;;  %v2690_v10 = vadd.f32 %v7505_v24, %v7178_v30  ;;  %v2695_v24 = vadd.f32 %v7510_v28, %v7225_v11 }
 0x2de   : > { %v5634_v7 = vld [vmem:[%s8342_s3 + $0x3c8] ss:$16 sps:$4 sm:$0xff]  }
 0x2df   : > { %5868 = vtanh.f32 %v2963_v54  ;;  %3174 = vmatmul.mubr.bf16.gmra.mrb[68].mxu1 %v5628_v45  ;;  %v7663_v19 = vpop.eup %5862 }
 0x2e0   : > { %3181 = vmatprep.mubr.bf16.mxu1 %v5629_v26 }
 0x2e1   : > { %v7665_v41 = vpop.eup %5864 }
 0x2e2   : > { %v2967_v4 = vpop.f32.mrb[92].mxu1  ;;  %v3270_v46 = vpack.c.bf16 %v7665_v41, %v7663_v19  ;;  %v7772_v41 = vpop.permute.xlu0 %1910 }
 0x2e3   : > { %v2968_v59 = vadd.f32 %v2967_v4, %v2679_v43  ;;  %v2969_v5 = vpop.f32.mrb[93].mxu1  ;;  %v5635_v43 = vld [vmem:[%s8342_s3 + $0x3ec] ss:$16 sps:$4 sm:$0xff]  }
 0x2e4   : > { %v2970_v34 = vpop.f32.mrb[94].mxu1  ;;  %v2698_v5 = vadd.f32 %v7515_v31, %v7229_v32 }
 0x2e5   : > { %v2971_v2 = vadd.f32 %v2970_v34, %v2682_v44  ;;  %v2972_v20 = vpop.f32.mrb[95].mxu1  ;;  %5870 = vtanh.f32 %v2968_v59 }
 0x2e7   : > { %5872 = vtanh.f32 %v2971_v2  ;;  %3182 = vmatmul.mubr.bf16.gmra.mrb[72].mxu1 %v5631_v16  ;;  %v7679_v50 = vpop.eup %5866 }
 0x2e8   : > { %3189 = vmatprep.mubr.bf16.mxu1 %v5632_v3  ;;  %v5637_v3 = vld [vmem:[%s8342_s3 + $0x3e8] ss:$16 sps:$4 sm:$0xff]  }
 0x2e9   : > { %v7681_v60 = vpop.eup %5868 }
 0x2ea   : > { %v2975_v15 = vpop.f32.mrb[96].mxu1  ;;  %v3271_v45 = vpack.c.bf16 %v7681_v60, %v7679_v50  ;;  %v1831_v50 = vpop.permute.xlu0 %1830 }
 0x2eb   : > { %v2976_v26 = vadd.f32 %v2975_v15, %v2687_v61  ;;  %v2977_v54 = vpop.f32.mrb[97].mxu1  ;;  %v2703_v15 = vadd.f32 %v7520_v55, %v7269_v33  ;;  %v2711_v33 = vadd.f32 %v7530_v53, %v7321_v29  ;;  %v2719_v29 = vadd.f32 %v7540_v62, %v7359_v48 }
 0x2ec   : > { %v2978_v38 = vpop.f32.mrb[98].mxu1  ;;  %v2727_v48 = vadd.f32 %v7550_v57, %v7012_v18  ;;  %v2735_v18 = vadd.f32 %v7560_v6, %v7061_v42 }
 0x2ed   : > { %v2979_v4 = vadd.f32 %v2978_v38, %v2690_v10  ;;  %v2980_v13 = vpop.f32.mrb[99].mxu1  ;;  %5874 = vtanh.f32 %v2976_v26  ;;  %v2706_v10 = vadd.f32 %v7525_v1, %v7280_v36  ;;  %v2714_v36 = vadd.f32 %v7535_v21, %v7323_v8 }
 0x2ee   : > { %v2722_v8 = vadd.f32 %v7545_v27, %v7370_v35  ;;  %v2730_v35 = vadd.f32 %v7555_v49, %v7016_v17  ;;  %v2738_v17 = vadd.f32 %v7565_v9, %v7072_v40 }
 0x2ef   : > { %5876 = vtanh.f32 %v2979_v4  ;;  %3190 = vmatmul.mubr.bf16.gmra.mrb[76].mxu1 %v5634_v7  ;;  %v7695_v0 = vpop.eup %5870 }
 0x2f0   : > { %3197 = vmatprep.mubr.bf16.mxu1 %v5635_v43 }
 0x2f1   : > { %v7697_v30 = vpop.eup %5872 }
 0x2f2   : > { %v2983_v44 = vpop.f32.mrb[100].mxu1  ;;  %v3272_v59 = vpack.c.bf16 %v7697_v30, %v7695_v0 }
 0x2f3   : > { %v2984_v16 = vadd.f32 %v2983_v44, %v2695_v24  ;;  %v2985_v34 = vpop.f32.mrb[101].mxu1 }
 0x2f4   : > { %v2986_v2 = vpop.f32.mrb[102].mxu1 }
 0x2f5   : > { %v2987_v20 = vadd.f32 %v2986_v2, %v2698_v5  ;;  %v2988_v61 = vpop.f32.mrb[103].mxu1  ;;  %5878 = vtanh.f32 %v2984_v16 }
 0x2f7   : > { %5880 = vtanh.f32 %v2987_v20  ;;  %3198 = vmatmul.mubr.bf16.gmra.mrb[80].mxu1 %v5637_v3  ;;  %v7708_v11 = vpop.eup %5874 }
 0x2f9   : > { %v7710_v28 = vpop.eup %5876 }
 0x2fa   : > { %v2991_v32 = vpop.f32.mrb[104].mxu1  ;;  %v3273_v31 = vpack.c.bf16 %v7710_v28, %v7708_v11 }
 0x2fb   : > { %v2992_v26 = vadd.f32 %v2991_v32, %v2703_v15  ;;  %v2993_v54 = vpop.f32.mrb[105].mxu1 }
 0x2fc   : > { %v2994_v7 = vpop.f32.mrb[106].mxu1 }
 0x2fd   : > { %v2995_v38 = vadd.f32 %v2994_v7, %v2706_v10  ;;  %v2996_v43 = vpop.f32.mrb[107].mxu1  ;;  %5882 = vtanh.f32 %v2992_v26 }
 0x2ff   : > { %5884 = vtanh.f32 %v2995_v38  ;;  %v7718_v4 = vpop.eup %5878 }
 0x301   : > { %v7720_v13 = vpop.eup %5880 }
 0x302   : > { %v2999_v55 = vpop.f32.mrb[108].mxu1  ;;  %v3274_v24 = vpack.c.bf16 %v7720_v13, %v7718_v4 }
 0x303   : > { %v3000_v1 = vadd.f32 %v2999_v55, %v2711_v33  ;;  %v3001_v44 = vpop.f32.mrb[109].mxu1 }
 0x304   : > { %v3002_v5 = vpop.f32.mrb[110].mxu1 }
 0x305   : > { %v3003_v16 = vadd.f32 %v3002_v5, %v2714_v36  ;;  %v3004_v34 = vpop.f32.mrb[111].mxu1  ;;  %5886 = vtanh.f32 %v3000_v1 }
 0x307   : > { %5888 = vtanh.f32 %v3003_v16  ;;  %v7728_v3 = vpop.eup %5882 }
 0x309   : > { %v7730_v2 = vpop.eup %5884 }
 0x30a   : > { %v3007_v53 = vpop.f32.mrb[112].mxu1  ;;  %v3275_v20 = vpack.c.bf16 %v7730_v2, %v7728_v3 }
 0x30b   : > { %v3008_v21 = vadd.f32 %v3007_v53, %v2719_v29  ;;  %v3009_v61 = vpop.f32.mrb[113].mxu1 }
 0x30c   : > { %v3010_v15 = vpop.f32.mrb[114].mxu1  ;;  %v2746_v61 = vadd.f32 %v7575_v14, %v7123_v47  ;;  %v7766_v47 = vpop.permute.xlu1 %1825 }
 0x30d   : > { %v3011_v32 = vadd.f32 %v3010_v15, %v2722_v8  ;;  %v3012_v10 = vpop.f32.mrb[115].mxu1  ;;  %5890 = vtanh.f32 %v3008_v21  ;;  %v2743_v21 = vadd.f32 %v7570_v12, %v7119_v58 }
 0x30f   : > { %5892 = vtanh.f32 %v3011_v32  ;;  %v7738_v26 = vpop.eup %5886 }
 0x311   : > { %v7740_v54 = vpop.eup %5888 }
 0x312   : > { %v3015_v62 = vpop.f32.mrb[116].mxu1  ;;  %v3276_v7 = vpack.c.bf16 %v7740_v54, %v7738_v26 }
 0x313   : > { %v3016_v27 = vadd.f32 %v3015_v62, %v2727_v48  ;;  %v3017_v38 = vpop.f32.mrb[117].mxu1 }
 0x314   : > { %v3018_v43 = vpop.f32.mrb[118].mxu1 }
 0x315   : > { %v3019_v33 = vadd.f32 %v3018_v43, %v2730_v35  ;;  %v3020_v55 = vpop.f32.mrb[119].mxu1  ;;  %5894 = vtanh.f32 %v3016_v27 }
 0x317   : > { %5896 = vtanh.f32 %v3019_v33  ;;  %v7748_v36 = vpop.eup %5890  ;;  %v7774_v33 = vpop.permute.xlu1 %1915 }
 0x319   : > { %v7750_v1 = vpop.eup %5892 }
 0x31a   : > { %v3023_v57 = vpop.f32.mrb[120].mxu1  ;;  %v3277_v44 = vpack.c.bf16 %v7750_v1, %v7748_v36 }
 0x31b   : > { %v3024_v49 = vadd.f32 %v3023_v57, %v2735_v18  ;;  %v3025_v5 = vpop.f32.mrb[121].mxu1 }
 0x31c   : > { %v3026_v16 = vpop.f32.mrb[122].mxu1 }
 0x31d   : > { %v3027_v34 = vadd.f32 %v3026_v16, %v2738_v17  ;;  %v3028_v29 = vpop.f32.mrb[123].mxu1  ;;  %5898 = vtanh.f32 %v3024_v49 }
 0x31f   : > { %5900 = vtanh.f32 %v3027_v34  ;;  %v5895_v53 = vpop.eup %5894 }
 0x321   : > { %v5897_v8 = vpop.eup %5896 }
 0x322   : > { %v3031_v42 = vpop.f32.mrb[124].mxu1  ;;  %v3278_v6 = vpack.c.bf16 %v5897_v8, %v5895_v53  ;;  %v7782_v53 = vpop.permute.xlu0 %1920 }
 0x323   : > { %v3032_v15 = vadd.f32 %v3031_v42, %v2743_v21  ;;  %v3033_v32 = vpop.f32.mrb[125].mxu1 }
 0x324   : > { %v3034_v40 = vpop.f32.mrb[126].mxu1  ;;  %4879 = vmatprep.subr.bf16.mxu0 %v3278_v6 }
 0x325   : > { %v3035_v9 = vadd.f32 %v3034_v40, %v2746_v61  ;;  %v3036_v10 = vpop.f32.mrb[127].mxu1  ;;  %4880 = vmatpush3.bf16.msra.mxu0 %v3270_v46  ;;  %5902 = vtanh.f32 %v3032_v15 }
 0x326   : > { %v1841_v42 = vpop.permute.xlu0 %1840 }
 0x327   : > { %5904 = vtanh.f32 %v3035_v9  ;;  %v5899_v48 = vpop.eup %5898 }
 0x329   : > { %v5901_v62 = vpop.eup %5900 }
 0x32a   : > { %v3039_v58 = vpop.f32.mrb[0].mxu1  ;;  %v3279_v12 = vpack.c.bf16 %v5901_v62, %v5899_v48  ;;  %v7795_v28 = vpop.permute.xlu0 %1930 }
 0x32b   : > { %v5245_v35 = vadd.f32 %v3039_v58, %v7193_v52  ;;  %v3041_v27 = vpop.f32.mrb[1].mxu1 }
 0x32c   : > { %v3042_v14 = vpop.f32.mrb[2].mxu1  ;;  %4881 = vmatprep.subr.bf16.mxu0 %v3279_v12 }
 0x32d   : > { %v5246_v38 = vadd.f32 %v3042_v14, %v7203_v22  ;;  %v3044_v43 = vpop.f32.mrb[3].mxu1  ;;  %4882 = vmatpush3.bf16.msra.mxu0 %v3271_v45  ;;  %5906 = vtanh.f32 %v5245_v35  ;;  %v1836_v45 = vpop.permute.xlu1 %1835 }
 0x32e   : > { %v1851_v4 = vpop.permute.xlu0 %1850 }
 0x32f   : > { %5908 = vtanh.f32 %v5246_v38  ;;  %v5903_v19 = vpop.eup %5902 }
 0x331   : > { %v5905_v46 = vpop.eup %5904  ;;  %v7788_v0 = vpop.permute.xlu1 %1925 }
 0x332   : > { %v3047_v52 = vpop.f32.mrb[4].mxu1  ;;  %v3280_v55 = vpack.c.bf16 %v5905_v46, %v5903_v19  ;;  %v7804_v19 = vpop.permute.xlu0 %1940 }
 0x333   : > { %v5247_v18 = vadd.f32 %v3047_v52, %v7248_v63  ;;  %v3049_v57 = vpop.f32.mrb[5].mxu1 }
 0x334   : > { %v3050_v17 = vpop.f32.mrb[6].mxu1  ;;  %4883 = vmatprep.subr.bf16.mxu0 %v3280_v55 }
 0x335   : > { %v5248_v22 = vadd.f32 %v3050_v17, %v7260_v51  ;;  %v3052_v49 = vpop.f32.mrb[7].mxu1  ;;  %4884 = vmatpush3.bf16.msra.mxu0 %v3272_v59  ;;  %5910 = vtanh.f32 %v5247_v18  ;;  %v1846_v32 = vpop.permute.xlu1 %1845 }
 0x336   : > { %v1861_v55 = vpop.permute.xlu0 %1860 }
 0x337   : > { %5912 = vtanh.f32 %v5248_v22  ;;  %v5907_v60 = vpop.eup %5906 }
 0x339   : > { %v5909_v5 = vpop.eup %5908  ;;  %v7797_v10 = vpop.permute.xlu1 %1935 }
 0x33a   : > { %v3055_v16 = vpop.f32.mrb[8].mxu1  ;;  %v3281_v34 = vpack.c.bf16 %v5909_v5, %v5907_v60  ;;  %v5638_v60 = vld [vmem:[%s8344_s5] ss:$16 sps:$4 sm:$0xff]   ;;  %v7822_v5 = vpop.permute.xlu0 %1950 }
 0x33b   : > { %v5249_v63 = vadd.f32 %v3055_v16, %v7292_v37  ;;  %v3057_v29 = vpop.f32.mrb[9].mxu1 }
 0x33c   : > { %v3058_v8 = vpop.f32.mrb[10].mxu1  ;;  %4885 = vmatprep.subr.bf16.mxu0 %v3281_v34 }
 0x33d   : > { %v5250_v51 = vadd.f32 %v3058_v8, %v7301_v25  ;;  %v3060_v21 = vpop.f32.mrb[11].mxu1  ;;  %4886 = vmatpush3.bf16.msra.mxu0 %v3273_v31  ;;  %5914 = vtanh.f32 %v5249_v63  ;;  %v5643_v8 = vld [vmem:[%s8344_s5 + $0x20] ss:$16 sps:$4 sm:$0xff]  }
 0x33f   : > { %5916 = vtanh.f32 %v5250_v51  ;;  %v5911_v30 = vpop.eup %5910 }
 0x341   : > { %v5913_v59 = vpop.eup %5912 }
 0x342   : > { %v3063_v37 = vpop.f32.mrb[12].mxu1  ;;  %v3282_v6 = vpack.c.bf16 %v5913_v59, %v5911_v30  ;;  %v5644_v30 = vld [vmem:[%s8344_s5 + $0x44] ss:$16 sps:$4 sm:$0xff]   ;;  %v1871_v59 = vpop.permute.xlu0 %1870 }
 0x343   : > { %v5251_v61 = vadd.f32 %v3063_v37, %v7343_v56  ;;  %v3065_v15 = vpop.f32.mrb[13].mxu1 }
 0x344   : > { %v3066_v40 = vpop.f32.mrb[14].mxu1  ;;  %4887 = vmatprep.subr.bf16.mxu0 %v3282_v6 }
 0x345   : > { %v5252_v25 = vadd.f32 %v3066_v40, %v7351_v23  ;;  %v3068_v9 = vpop.f32.mrb[15].mxu1  ;;  %4888 = vmatpush3.bf16.msra.mxu0 %v3274_v24  ;;  %5918 = vtanh.f32 %v5251_v61  ;;  %v1856_v24 = vpop.permute.xlu1 %1855 }
 0x347   : > { %5920 = vtanh.f32 %v5252_v25  ;;  %v5915_v11 = vpop.eup %5914  ;;  %v7842_v25 = vpop.permute.xlu0 %1960 }
 0x349   : > { %v5917_v31 = vpop.eup %5916  ;;  %v7809_v3 = vpop.permute.xlu1 %1945 }
 0x34a   : > { %v3071_v56 = vpop.f32.mrb[16].mxu1  ;;  %v3283_v48 = vpack.c.bf16 %v5917_v31, %v5915_v11  ;;  %v5646_v11 = vld [vmem:[%s8344_s5 + $0x40] ss:$16 sps:$4 sm:$0xff]  }
 0x34b   : > { %v5253_v62 = vadd.f32 %v3071_v56, %v7372_v39  ;;  %v3073_v58 = vpop.f32.mrb[17].mxu1 }
 0x34c   : > { %v3074_v12 = vpop.f32.mrb[18].mxu1  ;;  %4889 = vmatprep.subr.bf16.mxu0 %v3283_v48  ;;  %v5647_v48 = vld [vmem:[%s8344_s5 + $0x64] ss:$16 sps:$4 sm:$0xff]  }
 0x34d   : > { %v5254_v23 = vadd.f32 %v3074_v12, %v7766_v47  ;;  %v3076_v35 = vpop.f32.mrb[19].mxu1  ;;  %4890 = vmatpush3.bf16.msra.mxu0 %v3275_v20  ;;  %5922 = vtanh.f32 %v5253_v62  ;;  %v1866_v49 = vpop.permute.xlu1 %1865 }
 0x34f   : > { %5924 = vtanh.f32 %v5254_v23  ;;  %v5919_v13 = vpop.eup %5918  ;;  %v1881_v23 = vpop.permute.xlu0 %1880 }
 0x351   : > { %v5921_v27 = vpop.eup %5920  ;;  %v7826_v34 = vpop.permute.xlu1 %1955 }
 0x352   : > { %v3079_v14 = vpop.f32.mrb[20].mxu1  ;;  %v3284_v38 = vpack.c.bf16 %v5921_v27, %v5919_v13 }
 0x353   : > { %v5255_v43 = vadd.f32 %v3079_v14, %v1831_v50  ;;  %v3081_v39 = vpop.f32.mrb[21].mxu1 }
 0x354   : > { %v3082_v46 = vpop.f32.mrb[22].mxu1  ;;  %4891 = vmatprep.subr.bf16.mxu0 %v3284_v38  ;;  %v5649_v38 = vld [vmem:[%s8344_s5 + $0x60] ss:$16 sps:$4 sm:$0xff]  }
 0x355   : > { %v5256_v47 = vadd.f32 %v3082_v46, %v1836_v45  ;;  %v3084_v52 = vpop.f32.mrb[23].mxu1  ;;  %4892 = vmatpush3.bf16.msra.mxu0 %v3276_v7  ;;  %5926 = vtanh.f32 %v5255_v43  ;;  %v5641_v7 = vld [vmem:[%s8344_s5 + $0x24] ss:$16 sps:$4 sm:$0xff]   ;;  %v1876_v37 = vpop.permute.xlu1 %1875 }
 0x356   : > { %v5650_v46 = vld [vmem:[%s8344_s5 + $0x84] ss:$16 sps:$4 sm:$0xff]   ;;  %v7866_v52 = vpop.permute.xlu0 %1970 }
 0x357   : > { %5928 = vtanh.f32 %v5256_v47  ;;  %v5923_v2 = vpop.eup %5922 }
 0x359   : > { %v5925_v20 = vpop.eup %5924  ;;  %v7850_v62 = vpop.permute.xlu1 %1965 }
 0x35a   : > { %v3087_v18 = vpop.f32.mrb[24].mxu1  ;;  %v3285_v57 = vpack.c.bf16 %v5925_v20, %v5923_v2 }
 0x35b   : > { %v5257_v17 = vadd.f32 %v3087_v18, %v1841_v42  ;;  %v3089_v22 = vpop.f32.mrb[25].mxu1 }
 0x35c   : > { %v3090_v50 = vpop.f32.mrb[26].mxu1  ;;  %4893 = vmatprep.subr.bf16.mxu0 %v3285_v57 }
 0x35d   : > { %v5258_v26 = vadd.f32 %v3090_v50, %v1846_v32  ;;  %v3092_v54 = vpop.f32.mrb[27].mxu1  ;;  %4894 = vmatpush3.bf16.msra.mxu0 %v3277_v44  ;;  %5930 = vtanh.f32 %v5257_v17  ;;  %v1886_v27 = vpop.permute.xlu1 %1885 }
 0x35e   : > { %v1891_v54 = vpop.permute.xlu0 %1890 }
 0x35f   : > { %5932 = vtanh.f32 %v5258_v26  ;;  %v7820_v45 = vpop.eup %5926  ;;  %v5653_v26 = vld [vmem:[%s8344_s5 + $0xa4] ss:$16 sps:$4 sm:$0xff]  }
 0x360   : > { %3911 = vmatmul.mubr.bf16.vlgmr.msra.gmra.mrb[108].mxu0 %v5638_v60 }
 0x361   : > { %v7824_v16 = vpop.eup %5928  ;;  %3918 = vmatprep.mubr.bf16.mxu0 %v5641_v7  ;;  %v7870_v20 = vpop.permute.xlu1 %1975 }
 0x362   : > { %v3095_v63 = vpop.f32.mrb[28].mxu1  ;;  %v3286_v36 = vpack.c.bf16 %v7824_v16, %v7820_v45  ;;  %v5670_v45 = vld [vmem:[%s8344_s5 + $0x140] ss:$16 sps:$4 sm:$0xff]  }
 0x363   : > { %v5259_v1 = vadd.f32 %v3095_v63, %v1851_v4  ;;  %v3097_v44 = vpop.f32.mrb[29].mxu1 }
 0x364   : > { %v3098_v29 = vpop.f32.mrb[30].mxu1 }
 0x365   : > { %v5260_v51 = vadd.f32 %v3098_v29, %v1856_v24  ;;  %v3100_v21 = vpop.f32.mrb[31].mxu1  ;;  %5934 = vtanh.f32 %v5259_v1  ;;  %v1896_v63 = vpop.permute.xlu1 %1895 }
 0x366   : > { %v7886_v21 = vpop.permute.xlu0 %1980 }
 0x367   : > { %5936 = vtanh.f32 %v5260_v51  ;;  %v7836_v42 = vpop.eup %5930 }
 0x368   : > { %3919 = vmatmul.mubr.bf16.gmra.mrb[112].mxu0 %v5643_v8 }
 0x369   : > { %v7838_v6 = vpop.eup %5932  ;;  %3926 = vmatprep.mubr.bf16.mxu0 %v5644_v30 }
 0x36a   : > { %v3103_v61 = vpop.f32.mrb[32].mxu1  ;;  %v3287_v15 = vpack.c.bf16 %v7838_v6, %v7836_v42  ;;  %v5673_v42 = vld [vmem:[%s8344_s5 + $0x160] ss:$16 sps:$4 sm:$0xff]  }
 0x36b   : > { %v5261_v32 = vadd.f32 %v3103_v61, %v1861_v55  ;;  %v3105_v40 = vpop.f32.mrb[33].mxu1 }
 0x36c   : > { %v3106_v9 = vpop.f32.mrb[34].mxu1  ;;  %v7894_v40 = vpop.permute.xlu1 %1985 }
 0x36d   : > { %v5262_v31 = vadd.f32 %v3106_v9, %v1866_v49  ;;  %v3108_v56 = vpop.f32.mrb[35].mxu1  ;;  %5938 = vtanh.f32 %v5261_v32  ;;  %v5652_v49 = vld [vmem:[%s8344_s5 + $0x80] ss:$16 sps:$4 sm:$0xff]   ;;  %v5656_v32 = vld [vmem:[%s8344_s5 + $0xc4] ss:$16 sps:$4 sm:$0xff]  }
 0x36f   : > { %5940 = vtanh.f32 %v5262_v31  ;;  %v7852_v58 = vpop.eup %5934  ;;  %v1901_v31 = vpop.permute.xlu0 %1900 }
 0x370   : > { %3927 = vmatmul.mubr.bf16.gmra.mrb[116].mxu0 %v5646_v11 }
 0x371   : > { %v7854_v12 = vpop.eup %5936  ;;  %3934 = vmatprep.mubr.bf16.mxu0 %v5647_v48 }
 0x372   : > { %v3111_v35 = vpop.f32.mrb[36].mxu1  ;;  %v3288_v4 = vpack.c.bf16 %v7854_v12, %v7852_v58  ;;  %v5676_v58 = vld [vmem:[%s8344_s5 + $0x180] ss:$16 sps:$4 sm:$0xff]  }
 0x373   : > { %v5263_v13 = vadd.f32 %v3111_v35, %v1871_v59  ;;  %v3113_v24 = vpop.f32.mrb[37].mxu1  ;;  %v5655_v59 = vld [vmem:[%s8344_s5 + $0xa0] ss:$16 sps:$4 sm:$0xff]  }
 0x374   : > { %v3114_v14 = vpop.f32.mrb[38].mxu1 }
 0x375   : > { %v5264_v43 = vadd.f32 %v3114_v14, %v1876_v37  ;;  %v3116_v39 = vpop.f32.mrb[39].mxu1  ;;  %5942 = vtanh.f32 %v5263_v13  ;;  %v1906_v13 = vpop.permute.xlu1 %1905 }
 0x377   : > { %5944 = vtanh.f32 %v5264_v43  ;;  %v7864_v47 = vpop.eup %5938  ;;  %v5659_v43 = vld [vmem:[%s8344_s5 + $0xe4] ss:$16 sps:$4 sm:$0xff]  }
 0x378   : > { %3935 = vmatmul.mubr.bf16.gmra.mrb[120].mxu0 %v5649_v38 }
 0x379   : > { %v7868_v2 = vpop.eup %5940  ;;  %3942 = vmatprep.mubr.bf16.mxu0 %v5650_v46 }
 0x37a   : > { %v3119_v55 = vpop.f32.mrb[40].mxu1  ;;  %v3289_v18 = vpack.c.bf16 %v7868_v2, %v7864_v47  ;;  %v5679_v47 = vld [vmem:[%s8344_s5 + $0x1a0] ss:$16 sps:$4 sm:$0xff]  }
 0x37b   : > { %v5265_v57 = vadd.f32 %v3119_v55, %v1881_v23  ;;  %v3121_v17 = vpop.f32.mrb[41].mxu1 }
 0x37c   : > { %v3122_v22 = vpop.f32.mrb[42].mxu1 }
 0x37d   : > { %v5266_v50 = vadd.f32 %v3122_v22, %v1886_v27  ;;  %v3124_v60 = vpop.f32.mrb[43].mxu1  ;;  %5946 = vtanh.f32 %v5265_v57  ;;  %v5658_v27 = vld [vmem:[%s8344_s5 + $0xc0] ss:$16 sps:$4 sm:$0xff]  }
 0x37f   : > { %5948 = vtanh.f32 %v5266_v50  ;;  %v7880_v7 = vpop.eup %5942  ;;  %v5661_v50 = vld [vmem:[%s8344_s5 + $0xe0] ss:$16 sps:$4 sm:$0xff]  }
 0x380   : > { %3943 = vmatmul.mubr.bf16.gmra.mrb[124].mxu0 %v5652_v49 }
 0x381   : > { %v7882_v1 = vpop.eup %5944  ;;  %3950 = vmatprep.mubr.bf16.mxu0 %v5653_v26 }
 0x382   : > { %v3127_v44 = vpop.f32.mrb[44].mxu1  ;;  %v3290_v29 = vpack.c.bf16 %v7882_v1, %v7880_v7  ;;  %v5682_v7 = vld [vmem:[%s8344_s5 + $0x1c0] ss:$16 sps:$4 sm:$0xff]  }
 0x383   : > { %v5267_v8 = vadd.f32 %v3127_v44, %v1891_v54  ;;  %v3129_v51 = vpop.f32.mrb[45].mxu1  ;;  %v5662_v54 = vld [vmem:[%s8344_s5 + $0x104] ss:$16 sps:$4 sm:$0xff]  }
 0x384   : > { %v3130_v30 = vpop.f32.mrb[46].mxu1 }
 0x385   : > { %v5268_v37 = vadd.f32 %v3130_v30, %v1896_v63  ;;  %v3132_v61 = vpop.f32.mrb[47].mxu1  ;;  %5950 = vtanh.f32 %v5267_v8 }
 0x387   : > { %5952 = vtanh.f32 %v5268_v37  ;;  %v7896_v9 = vpop.eup %5946 }
 0x388   : > { %3951 = vmatmul.mubr.bf16.gmra.mrb[128].mxu0 %v5655_v59  ;;  %v5664_v59 = vld [vmem:[%s8344_s5 + $0x100] ss:$16 sps:$4 sm:$0xff]  }
 0x389   : > { %v7898_v11 = vpop.eup %5948  ;;  %3958 = vmatprep.mubr.bf16.mxu0 %v5656_v32  ;;  %v5665_v32 = vld [vmem:[%s8344_s5 + $0x124] ss:$16 sps:$4 sm:$0xff]  }
 0x38a   : > { %v3135_v56 = vpop.f32.mrb[48].mxu1  ;;  %v3291_v48 = vpack.c.bf16 %v7898_v11, %v7896_v9  ;;  %v5688_v9 = vld [vmem:[%s8344_s5 + $0xc] ss:$16 sps:$4 sm:$0xff]  }
 0x38b   : > { %v5269_v23 = vadd.f32 %v3135_v56, %v1901_v31  ;;  %v3137_v35 = vpop.f32.mrb[49].mxu1 }
 0x38c   : > { %v3138_v24 = vpop.f32.mrb[50].mxu1 }
 0x38d   : > { %v5270_v14 = vadd.f32 %v3138_v24, %v1906_v13  ;;  %v3140_v38 = vpop.f32.mrb[51].mxu1  ;;  %5954 = vtanh.f32 %v5269_v23 }
 0x38e   : > { %v5668_v38 = vld [vmem:[%s8344_s5 + $0x144] ss:$16 sps:$4 sm:$0xff]  }
 0x38f   : > { %5956 = vtanh.f32 %v5270_v14  ;;  %v7908_v39 = vpop.eup %5950 }
 0x390   : > { %3959 = vmatmul.mubr.bf16.gmra.mrb[132].mxu0 %v5658_v27 }
 0x391   : > { %v7910_v46 = vpop.eup %5952  ;;  %3966 = vmatprep.mubr.bf16.mxu0 %v5659_v43 }
 0x392   : > { %v3143_v55 = vpop.f32.mrb[52].mxu1  ;;  %v3292_v57 = vpack.c.bf16 %v7910_v46, %v7908_v39  ;;  %v5689_v39 = vld [vmem:[%s8344_s5 + $0x2c] ss:$16 sps:$4 sm:$0xff]   ;;  %v5691_v46 = vld [vmem:[%s8344_s5 + $0x28] ss:$16 sps:$4 sm:$0xff]  }
 0x393   : > { %v5271_v17 = vadd.f32 %v3143_v55, %v7772_v41  ;;  %v3145_v22 = vpop.f32.mrb[53].mxu1 }
 0x394   : > { %v3146_v49 = vpop.f32.mrb[54].mxu1 }
 0x395   : > { %v5272_v60 = vadd.f32 %v3146_v49, %v7774_v33  ;;  %v3148_v26 = vpop.f32.mrb[55].mxu1  ;;  %5958 = vtanh.f32 %v5271_v17 }
 0x397   : > { %5960 = vtanh.f32 %v5272_v60  ;;  %v7922_v63 = vpop.eup %5954 }
 0x398   : > { %3967 = vmatmul.mubr.bf16.gmra.mrb[136].mxu0 %v5661_v50  ;;  %v5671_v50 = vld [vmem:[%s8344_s5 + $0x164] ss:$16 sps:$4 sm:$0xff]  }
 0x399   : > { %v7924_v44 = vpop.eup %5956  ;;  %3974 = vmatprep.mubr.bf16.mxu0 %v5662_v54 }
 0x39a   : > { %v3151_v41 = vpop.f32.mrb[56].mxu1  ;;  %v3293_v8 = vpack.c.bf16 %v7924_v44, %v7922_v63  ;;  %v5694_v63 = vld [vmem:[%s8344_s5 + $0x48] ss:$16 sps:$4 sm:$0xff]   ;;  %v5695_v44 = vld [vmem:[%s8344_s5 + $0x6c] ss:$16 sps:$4 sm:$0xff]  }
 0x39b   : > { %v5273_v51 = vadd.f32 %v3151_v41, %v7782_v53  ;;  %v3153_v33 = vpop.f32.mrb[57].mxu1 }
 0x39c   : > { %v3154_v30 = vpop.f32.mrb[58].mxu1  ;;  %v5674_v33 = vld [vmem:[%s8344_s5 + $0x184] ss:$16 sps:$4 sm:$0xff]  }
 0x39d   : > { %v5274_v37 = vadd.f32 %v3154_v30, %v7788_v0  ;;  %v3156_v61 = vpop.f32.mrb[59].mxu1  ;;  %5962 = vtanh.f32 %v5273_v51  ;;  %v5667_v0 = vld [vmem:[%s8344_s5 + $0x120] ss:$16 sps:$4 sm:$0xff]  }
 0x39f   : > { %5964 = vtanh.f32 %v5274_v37  ;;  %v5959_v31 = vpop.eup %5958 }
 0x3a0   : > { %3975 = vmatmul.mubr.bf16.gmra.mrb[140].mxu0 %v5664_v59 }
 0x3a1   : > { %v5961_v56 = vpop.eup %5960  ;;  %3982 = vmatprep.mubr.bf16.mxu0 %v5665_v32 }
 0x3a2   : > { %v3159_v53 = vpop.f32.mrb[60].mxu1  ;;  %v3294_v23 = vpack.c.bf16 %v5961_v56, %v5959_v31  ;;  %v5677_v31 = vld [vmem:[%s8344_s5 + $0x1a4] ss:$16 sps:$4 sm:$0xff]  }
 0x3a3   : > { %v5275_v35 = vadd.f32 %v3159_v53, %v7795_v28  ;;  %v3161_v13 = vpop.f32.mrb[61].mxu1 }
 0x3a4   : > { %v3162_v24 = vpop.f32.mrb[62].mxu1  ;;  %4991 = vmatprep.subr.bf16.mxu0 %v3294_v23 }
 0x3a5   : > { %v5276_v27 = vadd.f32 %v3162_v24, %v7797_v10  ;;  %v3164_v14 = vpop.f32.mrb[63].mxu1  ;;  %4992 = vmatpush3.bf16.msra.mxu0 %v3286_v36  ;;  %5966 = vtanh.f32 %v5275_v35  ;;  %v5680_v24 = vld [vmem:[%s8344_s5 + $0x1c4] ss:$16 sps:$4 sm:$0xff]  }
 0x3a7   : > { %5968 = vtanh.f32 %v5276_v27  ;;  %v5963_v28 = vpop.eup %5962 }
 0x3a8   : > { %3983 = vmatmul.mubr.bf16.gmra.mrb[144].mxu0 %v5667_v0 }
 0x3a9   : > { %v5965_v43 = vpop.eup %5964  ;;  %3990 = vmatprep.mubr.bf16.mxu0 %v5668_v38 }
 0x3aa   : > { %v3167_v55 = vpop.f32.mrb[64].mxu1  ;;  %v3295_v17 = vpack.c.bf16 %v5965_v43, %v5963_v28  ;;  %v5683_v43 = vld [vmem:[%s8344_s5 + $0x1e4] ss:$16 sps:$4 sm:$0xff]  }
 0x3ab   : > { %v5277_v22 = vadd.f32 %v3167_v55, %v7804_v19  ;;  %v3169_v10 = vpop.f32.mrb[65].mxu1 }
 0x3ac   : > { %v3170_v49 = vpop.f32.mrb[66].mxu1  ;;  %4993 = vmatprep.subr.bf16.mxu0 %v3295_v17  ;;  %v5686_v10 = vld [vmem:[%s8344_s5 + $0x8] ss:$16 sps:$4 sm:$0xff]  }
 0x3ad   : > { %v5278_v16 = vadd.f32 %v3170_v49, %v7809_v3  ;;  %v3172_v36 = vpop.f32.mrb[67].mxu1  ;;  %4994 = vmatpush3.bf16.msra.mxu0 %v3287_v15  ;;  %5970 = vtanh.f32 %v5277_v22  ;;  %v5698_v49 = vld [vmem:[%s8344_s5 + $0x8c] ss:$16 sps:$4 sm:$0xff]  }
 0x3ae   : > { %v5703_v36 = vld [vmem:[%s8344_s5 + $0xa8] ss:$16 sps:$4 sm:$0xff]  }
 0x3af   : > { %5972 = vtanh.f32 %v5278_v16  ;;  %v5967_v19 = vpop.eup %5966  ;;  %v5701_v16 = vld [vmem:[%s8344_s5 + $0xac] ss:$16 sps:$4 sm:$0xff]  }
 0x3b0   : > { %3991 = vmatmul.mubr.bf16.gmra.mrb[148].mxu0 %v5670_v45  ;;  %v5700_v45 = vld [vmem:[%s8344_s5 + $0x88] ss:$16 sps:$4 sm:$0xff]  }
 0x3b1   : > { %v5969_v60 = vpop.eup %5968  ;;  %3998 = vmatprep.mubr.bf16.mxu0 %v5671_v50  ;;  %v5704_v50 = vld [vmem:[%s8344_s5 + $0xcc] ss:$16 sps:$4 sm:$0xff]  }
 0x3b2   : > { %v3175_v26 = vpop.f32.mrb[68].mxu1  ;;  %v3296_v54 = vpack.c.bf16 %v5969_v60, %v5967_v19  ;;  %v5706_v19 = vld [vmem:[%s8344_s5 + $0xc8] ss:$16 sps:$4 sm:$0xff]   ;;  %v5707_v60 = vld [vmem:[%s8344_s5 + $0xec] ss:$16 sps:$4 sm:$0xff]  }
 0x3b3   : > { %v5279_v41 = vadd.f32 %v3175_v26, %v7822_v5  ;;  %v3177_v3 = vpop.f32.mrb[69].mxu1  ;;  %v5709_v26 = vld [vmem:[%s8344_s5 + $0xe8] ss:$16 sps:$4 sm:$0xff]  }
 0x3b4   : > { %v3178_v51 = vpop.f32.mrb[70].mxu1  ;;  %4995 = vmatprep.subr.bf16.mxu0 %v3296_v54  ;;  %v5710_v54 = vld [vmem:[%s8344_s5 + $0x10c] ss:$16 sps:$4 sm:$0xff]  }
 0x3b5   : > { %v5280_v6 = vadd.f32 %v3178_v51, %v7826_v34  ;;  %v3180_v15 = vpop.f32.mrb[71].mxu1  ;;  %4996 = vmatpush3.bf16.msra.mxu0 %v3288_v4  ;;  %5974 = vtanh.f32 %v5279_v41  ;;  %v5712_v41 = vld [vmem:[%s8344_s5 + $0x108] ss:$16 sps:$4 sm:$0xff]   ;;  %v5713_v3 = vld [vmem:[%s8344_s5 + $0x12c] ss:$16 sps:$4 sm:$0xff]  }
 0x3b6   : > { %v5715_v51 = vld [vmem:[%s8344_s5 + $0x128] ss:$16 sps:$4 sm:$0xff]   ;;  %v5719_v15 = vld [vmem:[%s8344_s5 + $0x16c] ss:$16 sps:$4 sm:$0xff]  }
 0x3b7   : > { %5976 = vtanh.f32 %v5280_v6  ;;  %v5971_v5 = vpop.eup %5970  ;;  %v5718_v6 = vld [vmem:[%s8344_s5 + $0x148] ss:$16 sps:$4 sm:$0xff]  }
 0x3b8   : > { %3999 = vmatmul.mubr.bf16.gmra.mrb[152].mxu0 %v5673_v42  ;;  %v5716_v42 = vld [vmem:[%s8344_s5 + $0x14c] ss:$16 sps:$4 sm:$0xff]  }
 0x3b9   : > { %v5973_v30 = vpop.eup %5972  ;;  %4006 = vmatprep.mubr.bf16.mxu0 %v5674_v33 }
 0x3ba   : > { %v3183_v59 = vpop.f32.mrb[72].mxu1  ;;  %v3297_v37 = vpack.c.bf16 %v5973_v30, %v5971_v5  ;;  %v5721_v30 = vld [vmem:[%s8344_s5 + $0x168] ss:$16 sps:$4 sm:$0xff]  }
 0x3bb   : > { %v5281_v61 = vadd.f32 %v3183_v59, %v7842_v25  ;;  %v3185_v34 = vpop.f32.mrb[73].mxu1 }
 0x3bc   : > { %v3186_v32 = vpop.f32.mrb[74].mxu1  ;;  %4997 = vmatprep.subr.bf16.mxu0 %v3297_v37 }
 0x3bd   : > { %v5282_v12 = vadd.f32 %v3186_v32, %v7850_v62  ;;  %v3188_v4 = vpop.f32.mrb[75].mxu1  ;;  %4998 = vmatpush3.bf16.msra.mxu0 %v3289_v18  ;;  %5978 = vtanh.f32 %v5281_v61  ;;  %v5722_v61 = vld [vmem:[%s8344_s5 + $0x18c] ss:$16 sps:$4 sm:$0xff]  }
 0x3be   : > { %v5724_v4 = vld [vmem:[%s8344_s5 + $0x188] ss:$16 sps:$4 sm:$0xff]  }
 0x3bf   : > { %5980 = vtanh.f32 %v5282_v12  ;;  %v5975_v25 = vpop.eup %5974 }
 0x3c0   : > { %4007 = vmatmul.mubr.bf16.gmra.mrb[156].mxu0 %v5676_v58 }
 0x3c1   : > { %v5977_v56 = vpop.eup %5976  ;;  %4014 = vmatprep.mubr.bf16.mxu0 %v5677_v31 }
 0x3c2   : > { %v3191_v53 = vpop.f32.mrb[76].mxu1  ;;  %v3298_v23 = vpack.c.bf16 %v5977_v56, %v5975_v25  ;;  %v5725_v56 = vld [vmem:[%s8344_s5 + $0x1ac] ss:$16 sps:$4 sm:$0xff]  }
 0x3c3   : > { %v5283_v35 = vadd.f32 %v3191_v53, %v7866_v52  ;;  %v3193_v62 = vpop.f32.mrb[77].mxu1 }
 0x3c4   : > { %v3194_v13 = vpop.f32.mrb[78].mxu1  ;;  %4999 = vmatprep.subr.bf16.mxu0 %v3298_v23 }
 0x3c5   : > { %v5284_v2 = vadd.f32 %v3194_v13, %v7870_v20  ;;  %v3196_v18 = vpop.f32.mrb[79].mxu1  ;;  %5000 = vmatpush3.bf16.msra.mxu0 %v3290_v29  ;;  %5982 = vtanh.f32 %v5283_v35  ;;  %v5727_v13 = vld [vmem:[%s8344_s5 + $0x1a8] ss:$16 sps:$4 sm:$0xff]  }
 0x3c6   : > { %v5728_v18 = vld [vmem:[%s8344_s5 + $0x1cc] ss:$16 sps:$4 sm:$0xff]  }
 0x3c7   : > { %5984 = vtanh.f32 %v5284_v2  ;;  %v5979_v52 = vpop.eup %5978 }
 0x3c8   : > { %4015 = vmatmul.mubr.bf16.gmra.mrb[160].mxu0 %v5679_v47 }
 0x3c9   : > { %v5981_v0 = vpop.eup %5980  ;;  %4022 = vmatprep.mubr.bf16.mxu0 %v5680_v24 }
 0x3ca   : > { %v3199_v27 = vpop.f32.mrb[80].mxu1  ;;  %v3299_v14 = vpack.c.bf16 %v5981_v0, %v5979_v52 }
 0x3cb   : > { %v5285_v38 = vadd.f32 %v3199_v27, %v7886_v21  ;;  %v3201_v20 = vpop.f32.mrb[81].mxu1 }
 0x3cc   : > { %v3202_v28 = vpop.f32.mrb[82].mxu1  ;;  %5001 = vmatprep.subr.bf16.mxu0 %v3299_v14  ;;  %v5730_v14 = vld [vmem:[%s8344_s5 + $0x1c8] ss:$16 sps:$4 sm:$0xff]  }
 0x3cd   : > { %v5286_v1 = vadd.f32 %v3202_v28, %v7894_v40  ;;  %v3204_v29 = vpop.f32.mrb[83].mxu1  ;;  %5002 = vmatpush3.bf16.msra.mxu0 %v3291_v48  ;;  %5986 = vtanh.f32 %v5285_v38  ;;  %v5685_v40 = vld [vmem:[%s8344_s5 + $0x1e0] ss:$16 sps:$4 sm:$0xff]   ;;  %v5731_v28 = vld [vmem:[%s8344_s5 + $0x1ec] ss:$16 sps:$4 sm:$0xff]  }
 0x3cf   : > { %5988 = vtanh.f32 %v5286_v1  ;;  %v5983_v21 = vpop.eup %5982 }
 0x3d0   : > { %4023 = vmatmul.mubr.bf16.gmra.mrb[164].mxu0 %v5682_v7 }
 0x3d1   : > { %v5985_v55 = vpop.eup %5984  ;;  %4030 = vmatprep.mubr.bf16.mxu0 %v5683_v43 }
 0x3d2   : > { %v3300_v17 = vpack.c.bf16 %v5985_v55, %v5983_v21  ;;  %v5733_v21 = vld [vmem:[%s8344_s5 + $0x1e8] ss:$16 sps:$4 sm:$0xff]  }
 0x3d4   : > { %5003 = vmatprep.subr.bf16.mxu0 %v3300_v17 }
 0x3d5   : > { %5004 = vmatpush3.bf16.msra.mxu0 %v3292_v57  ;;  %v5692_v57 = vld [vmem:[%s8344_s5 + $0x4c] ss:$16 sps:$4 sm:$0xff]  }
 0x3d7   : > { %v5987_v11 = vpop.eup %5986 }
 0x3d8   : > { %4031 = vmatmul.mubr.bf16.gmra.mrb[168].mxu0 %v5685_v40 }
 0x3d9   : > { %v5989_v48 = vpop.eup %5988  ;;  %4071 = vmatprep.mubr.bf16.mxu0 %v5688_v9 }
 0x3da   : > { %v3301_v22 = vpack.c.bf16 %v5989_v48, %v5987_v11 }
 0x3dc   : > { %5005 = vmatprep.subr.bf16.mxu0 %v3301_v22 }
 0x3dd   : > { %5006 = vmatpush3.bf16.msra.mxu0 %v3293_v8  ;;  %v5697_v8 = vld [vmem:[%s8344_s5 + $0x68] ss:$16 sps:$4 sm:$0xff]  }
 0x3e0   : > { %4072 = vmatmul.mubr.bf16.vlgmr.msra.gmra.mrb[172].mxu0 %v5686_v10 }
 0x3e1   : > { %4079 = vmatprep.mubr.bf16.mxu0 %v5689_v39 }
 0x3e8   : > { %4080 = vmatmul.mubr.bf16.gmra.mrb[176].mxu0 %v5691_v46 }
 0x3e9   : > { %4087 = vmatprep.mubr.bf16.mxu0 %v5692_v57 }
 0x3f0   : > { %4088 = vmatmul.mubr.bf16.gmra.mrb[180].mxu0 %v5694_v63 }
 0x3f1   : > { %4095 = vmatprep.mubr.bf16.mxu0 %v5695_v44 }
 0x3f8   : > { %4096 = vmatmul.mubr.bf16.gmra.mrb[184].mxu0 %v5697_v8 }
 0x3f9   : > { %4103 = vmatprep.mubr.bf16.mxu0 %v5698_v49 }
 0x400   : > { %4104 = vmatmul.mubr.bf16.gmra.mrb[188].mxu0 %v5700_v45 }
 0x401   : > { %4111 = vmatprep.mubr.bf16.mxu0 %v5701_v16  ;;  %v8135_v16 = vpop.permute.xlu0 %3400 }
 0x408   : > { %4112 = vmatmul.mubr.bf16.gmra.mrb[192].mxu0 %v5703_v36 }
 0x409   : > { %4119 = vmatprep.mubr.bf16.mxu0 %v5704_v50 }
 0x410   : > { %4120 = vmatmul.mubr.bf16.gmra.mrb[196].mxu0 %v5706_v19 }
 0x411   : > { %4127 = vmatprep.mubr.bf16.mxu0 %v5707_v60 }
 0x418   : > { %4128 = vmatmul.mubr.bf16.gmra.mrb[200].mxu0 %v5709_v26 }
 0x419   : > { %4135 = vmatprep.mubr.bf16.mxu0 %v5710_v54 }
 0x420   : > { %4136 = vmatmul.mubr.bf16.gmra.mrb[204].mxu0 %v5712_v41  ;;  %v8141_v41 = vpop.permute.xlu1 %3405 }
 0x421   : > { %4143 = vmatprep.mubr.bf16.mxu0 %v5713_v3  ;;  %v8143_v3 = vpop.permute.xlu0 %3410 }
 0x428   : > { %4144 = vmatmul.mubr.bf16.gmra.mrb[208].mxu0 %v5715_v51 }
 0x429   : > { %4151 = vmatprep.mubr.bf16.mxu0 %v5716_v42 }
 0x430   : > { %4152 = vmatmul.mubr.bf16.gmra.mrb[212].mxu0 %v5718_v6 }
 0x431   : > { %4159 = vmatprep.mubr.bf16.mxu0 %v5719_v15 }
 0x433   : > { %v4895_v33 = vpop.f32.mrb[108].mxu0 }
 0x434   : > { %v4896_v5 = vpop.f32.mrb[109].mxu0 }
 0x435   : > { %v8083_v59 = vadd.f32 %v4896_v5, %v4895_v33  ;;  %v4898_v37 = vpop.f32.mrb[110].mxu0  ;;  %v8147_v33 = vpop.permute.xlu1 %3415 }
 0x436   : > { %v4899_v34 = vpop.f32.mrb[111].mxu0 }
 0x437   : > { %v8088_v32 = vadd.f32 %v4899_v34, %v4898_v37 }
 0x438   : > { %4160 = vmatmul.mubr.bf16.gmra.mrb[216].mxu0 %v5721_v30  ;;  %v8149_v30 = vpop.permute.xlu0 %3420 }
 0x439   : > { %4167 = vmatprep.mubr.bf16.mxu0 %v5722_v61  ;;  %v8153_v34 = vpop.permute.xlu1 %3425 }
 0x43b   : > { %v4901_v58 = vpop.f32.mrb[112].mxu0 }
 0x43c   : > { %v4902_v12 = vpop.f32.mrb[113].mxu0 }
 0x43d   : > { %v8093_v31 = vadd.f32 %v4902_v12, %v4901_v58  ;;  %v4904_v25 = vpop.f32.mrb[114].mxu0  ;;  %v8155_v12 = vpop.permute.xlu0 %3430 }
 0x43e   : > { %v4905_v53 = vpop.f32.mrb[115].mxu0 }
 0x43f   : > { %v8098_v23 = vadd.f32 %v4905_v53, %v4904_v25 }
 0x440   : > { %4168 = vmatmul.mubr.bf16.gmra.mrb[220].mxu0 %v5724_v4 }
 0x441   : > { %4175 = vmatprep.mubr.bf16.mxu0 %v5725_v56 }
 0x443   : > { %v4907_v35 = vpop.f32.mrb[116].mxu0 }
 0x444   : > { %v4908_v62 = vpop.f32.mrb[117].mxu0 }
 0x445   : > { %v8103_v47 = vadd.f32 %v4908_v62, %v4907_v35  ;;  %v4910_v2 = vpop.f32.mrb[118].mxu0  ;;  %v8161_v35 = vpop.permute.xlu1 %3435 }
 0x446   : > { %v4911_v24 = vpop.f32.mrb[119].mxu0  ;;  %v8163_v62 = vpop.permute.xlu0 %3440 }
 0x447   : > { %v8108_v52 = vadd.f32 %v4911_v24, %v4910_v2 }
 0x448   : > { %4176 = vmatmul.mubr.bf16.gmra.mrb[224].mxu0 %v5727_v13 }
 0x449   : > { %4183 = vmatprep.mubr.bf16.mxu0 %v5728_v18 }
 0x44b   : > { %v4913_v0 = vpop.f32.mrb[120].mxu0 }
 0x44c   : > { %v4914_v27 = vpop.f32.mrb[121].mxu0 }
 0x44d   : > { %v8113_v38 = vadd.f32 %v4914_v27, %v4913_v0  ;;  %v4916_v20 = vpop.f32.mrb[122].mxu0 }
 0x44e   : > { %v4917_v7 = vpop.f32.mrb[123].mxu0 }
 0x44f   : > { %v8118_v1 = vadd.f32 %v4917_v7, %v4916_v20  ;;  %v8171_v20 = vpop.permute.xlu0 %3450 }
 0x450   : > { %4184 = vmatmul.mubr.bf16.gmra.mrb[228].mxu0 %v5730_v14  ;;  %v8169_v14 = vpop.permute.xlu1 %3445 }
 0x451   : > { %4191 = vmatprep.mubr.bf16.mxu0 %v5731_v28 }
 0x453   : > { %v4919_v29 = vpop.f32.mrb[124].mxu0 }
 0x454   : > { %v4920_v43 = vpop.f32.mrb[125].mxu0 }
 0x455   : > { %v8123_v55 = vadd.f32 %v4920_v43, %v4919_v29  ;;  %v4922_v17 = vpop.f32.mrb[126].mxu0 }
 0x456   : > { %v4923_v40 = vpop.f32.mrb[127].mxu0 }
 0x457   : > { %v8125_v9 = vadd.f32 %v4923_v40, %v4922_v17  ;;  %v8177_v40 = vpop.permute.xlu0 %3460 }
 0x458   : > { %4192 = vmatmul.mubr.bf16.gmra.mrb[232].mxu0 %v5733_v21  ;;  %v8175_v21 = vpop.permute.xlu1 %3455 }
 0x45b   : > { %v4925_v11 = vpop.f32.mrb[128].mxu0 }
 0x45c   : > { %v4926_v48 = vpop.f32.mrb[129].mxu0 }
 0x45d   : > { %v8127_v22 = vadd.f32 %v4926_v48, %v4925_v11  ;;  %v4928_v10 = vpop.f32.mrb[130].mxu0 }
 0x45e   : > { %v4929_v39 = vpop.f32.mrb[131].mxu0 }
 0x45f   : > { %v8129_v46 = vadd.f32 %v4929_v39, %v4928_v10  ;;  %v8181_v10 = vpop.permute.xlu1 %3465 }
 0x463   : > { %v4931_v57 = vpop.f32.mrb[132].mxu0 }
 0x464   : > { %v4932_v63 = vpop.f32.mrb[133].mxu0 }
 0x465   : > { %v8131_v44 = vadd.f32 %v4932_v63, %v4931_v57  ;;  %v4934_v8 = vpop.f32.mrb[134].mxu0  ;;  %v8183_v57 = vpop.permute.xlu0 %3470 }
 0x466   : > { %v4935_v49 = vpop.f32.mrb[135].mxu0 }
 0x467   : > { %v8133_v45 = vadd.f32 %v4935_v49, %v4934_v8 }
 0x46b   : > { %v4937_v36 = vpop.f32.mrb[136].mxu0 }
 0x46c   : > { %v4938_v50 = vpop.f32.mrb[137].mxu0 }
 0x46d   : > { %v8137_v19 = vadd.f32 %v4938_v50, %v4937_v36  ;;  %v4940_v60 = vpop.f32.mrb[138].mxu0  ;;  %v8189_v50 = vpop.permute.xlu1 %3475 }
 0x46e   : > { %v4941_v26 = vpop.f32.mrb[139].mxu0 }
 0x46f   : > { %v8139_v54 = vadd.f32 %v4941_v26, %v4940_v60  ;;  %v8191_v60 = vpop.permute.xlu0 %3480 }
 0x473   : > { %v4943_v51 = vpop.f32.mrb[140].mxu0 }
 0x474   : > { %v4944_v42 = vpop.f32.mrb[141].mxu0 }
 0x475   : > { %v8145_v6 = vadd.f32 %v4944_v42, %v4943_v51  ;;  %v4946_v15 = vpop.f32.mrb[142].mxu0 }
 0x476   : > { %v4947_v5 = vpop.f32.mrb[143].mxu0 }
 0x477   : > { %v8151_v37 = vadd.f32 %v4947_v5, %v4946_v15 }
 0x47b   : > { %v4949_v61 = vpop.f32.mrb[144].mxu0 }
 0x47c   : > { %v4950_v58 = vpop.f32.mrb[145].mxu0 }
 0x47d   : > { %v8157_v4 = vadd.f32 %v4950_v58, %v4949_v61  ;;  %v4952_v25 = vpop.f32.mrb[146].mxu0  ;;  %v8197_v58 = vpop.permute.xlu1 %3485 }
 0x47e   : > { %v4953_v56 = vpop.f32.mrb[147].mxu0 }
 0x47f   : > { %v8159_v53 = vadd.f32 %v4953_v56, %v4952_v25  ;;  %v8199_v25 = vpop.permute.xlu0 %3490 }
 0x483   : > { %v4955_v13 = vpop.f32.mrb[148].mxu0 }
 0x484   : > { %v4956_v2 = vpop.f32.mrb[149].mxu0 }
 0x485   : > { %v8165_v18 = vadd.f32 %v4956_v2, %v4955_v13  ;;  %v4958_v24 = vpop.f32.mrb[150].mxu0 }
 0x486   : > { %v4959_v0 = vpop.f32.mrb[151].mxu0 }
 0x487   : > { %v8167_v27 = vadd.f32 %v4959_v0, %v4958_v24  ;;  %v8203_v0 = vpop.permute.xlu1 %3495 }
 0x48b   : > { %v4961_v28 = vpop.f32.mrb[152].mxu0 }
 0x48c   : > { %v4962_v7 = vpop.f32.mrb[153].mxu0 }
 0x48d   : > { %v8173_v29 = vadd.f32 %v4962_v7, %v4961_v28  ;;  %v4964_v43 = vpop.f32.mrb[154].mxu0  ;;  %v8205_v7 = vpop.permute.xlu0 %3500 }
 0x48e   : > { %v4965_v17 = vpop.f32.mrb[155].mxu0 }
 0x48f   : > { %v8179_v11 = vadd.f32 %v4965_v17, %v4964_v43 }
 0x493   : > { %v4967_v48 = vpop.f32.mrb[156].mxu0 }
 0x494   : > { %v4968_v39 = vpop.f32.mrb[157].mxu0 }
 0x495   : > { %v8185_v63 = vadd.f32 %v4968_v39, %v4967_v48  ;;  %v4970_v8 = vpop.f32.mrb[158].mxu0  ;;  %v8209_v48 = vpop.permute.xlu1 %3505 }
 0x496   : > { %v4971_v49 = vpop.f32.mrb[159].mxu0 }
 0x497   : > { %8351 = vst [vmem:[#allocation7_spill] sm:$0xff] %v8185_v63  ;;  %v8187_v36 = vadd.f32 %v4971_v49, %v4970_v8  ;;  %v8211_v8 = vpop.permute.xlu0 %3510 }
 0x499   : > { %8352 = vst [vmem:[#allocation8_spill] sm:$0xff] %v8187_v36 }
 0x49b   : > { %v4973_v26 = vpop.f32.mrb[160].mxu0 }
 0x49c   : > { %v4974_v51 = vpop.f32.mrb[161].mxu0 }
 0x49d   : > { %v8193_v42 = vadd.f32 %v4974_v51, %v4973_v26  ;;  %v4976_v15 = vpop.f32.mrb[162].mxu0 }
 0x49e   : > { %v4977_v5 = vpop.f32.mrb[163].mxu0 }
 0x49f   : > { %8353 = vst [vmem:[#allocation9_spill] sm:$0xff] %v8193_v42  ;;  %v8195_v61 = vadd.f32 %v4977_v5, %v4976_v15  ;;  %v8217_v5 = vpop.permute.xlu1 %3515 }
 0x4a1   : > { %8354 = vst [vmem:[#allocation10_spill] sm:$0xff] %v8195_v61 }
 0x4a3   : > { %v4979_v56 = vpop.f32.mrb[164].mxu0  ;;  %v8225_v42 = vpop.permute.xlu1 %3525 }
 0x4a4   : > { %v4980_v13 = vpop.f32.mrb[165].mxu0 }
 0x4a5   : > { %v8201_v2 = vadd.f32 %v4980_v13, %v4979_v56  ;;  %v4982_v24 = vpop.f32.mrb[166].mxu0  ;;  %v8219_v56 = vpop.permute.xlu0 %3520 }
 0x4a6   : > { %v4983_v28 = vpop.f32.mrb[167].mxu0 }
 0x4a7   : > { %8355 = vst [vmem:[#allocation11_spill] sm:$0xff] %v8201_v2  ;;  %v8207_v43 = vadd.f32 %v4983_v28, %v4982_v24  ;;  %v3913_v24 = vadd.f32 %v8083_v59, %v8135_v16  ;;  %v3921_v59 = vadd.f32 %v8093_v31, %v8143_v3 }
 0x4a9   : > { %8356 = vst [vmem:[#allocation12_spill] sm:$0xff] %v8207_v43 }
 0x4ab   : > { %v4985_v17 = vpop.f32.mrb[168].mxu0 }
 0x4ac   : > { %v4986_v39 = vpop.f32.mrb[169].mxu0 }
 0x4ad   : > { %v8213_v49 = vadd.f32 %v4986_v39, %v4985_v17  ;;  %v4988_v26 = vpop.f32.mrb[170].mxu0  ;;  %v3916_v17 = vadd.f32 %v8088_v32, %v8141_v41  ;;  %v3924_v41 = vadd.f32 %v8098_v23, %v8147_v33  ;;  %v3932_v23 = vadd.f32 %v8108_v52, %v8153_v34 }
 0x4ae   : > { %v4989_v51 = vpop.f32.mrb[171].mxu0 }
 0x4af   : > { %8357 = vst [vmem:[#allocation13_spill] sm:$0xff] %v8213_v49  ;;  %v8215_v15 = vadd.f32 %v4989_v51, %v4988_v26  ;;  %v8227_v26 = vpop.permute.xlu0 %3530 }
 0x4b0   : > { %8359 = vst [vmem:[#allocation15_spill] sm:$0xff] %v8227_v26 }
 0x4b1   : > { %8358 = vst [vmem:[#allocation14_spill] sm:$0xff] %v8215_v15 }
 0x4b3   : > { %v5007_v13 = vpop.f32.mrb[172].mxu0  ;;  %v8233_v32 = vpop.permute.xlu0 %3540 }
 0x4b4   : > { %v5008_v2 = vpop.f32.mrb[173].mxu0  ;;  %8361 = vst [vmem:[#allocation17_spill] sm:$0xff] %v8233_v32 }
 0x4b5   : > { %v5009_v28 = vadd.f32 %v5008_v2, %v5007_v13  ;;  %v5010_v43 = vpop.f32.mrb[174].mxu0  ;;  %v8231_v13 = vpop.permute.xlu1 %3535 }
 0x4b6   : > { %v5011_v61 = vpop.f32.mrb[175].mxu0  ;;  %8360 = vst [vmem:[#allocation16_spill] sm:$0xff] %v8231_v13 }
 0x4b7   : > { %v4074_v39 = vadd.f32 %v5009_v28, %v3913_v24  ;;  %v5012_v49 = vadd.f32 %v5011_v61, %v5010_v43  ;;  %v4272_v3 = vpop.permute.xlu0 %4271 }
 0x4b9   : > { %5990 = vtanh.f32 %v4074_v39  ;;  %v4077_v51 = vadd.f32 %v5012_v49, %v3916_v17  ;;  %v4267_v17 = vpop.permute.xlu1 %4266 }
 0x4bb   : > { %5992 = vtanh.f32 %v4077_v51  ;;  %v5013_v15 = vpop.f32.mrb[176].mxu0 }
 0x4bc   : > { %v5014_v36 = vpop.f32.mrb[177].mxu0 }
 0x4bd   : > { %v5015_v16 = vadd.f32 %v5014_v36, %v5013_v15  ;;  %v5016_v2 = vpop.f32.mrb[178].mxu0  ;;  %v3929_v36 = vadd.f32 %v8103_v47, %v8149_v30  ;;  %v4282_v30 = vpop.permute.xlu0 %4281 }
 0x4be   : > { %v5017_v63 = vpop.f32.mrb[179].mxu0 }
 0x4bf   : > { %v4082_v61 = vadd.f32 %v5015_v16, %v3921_v59  ;;  %v5018_v43 = vadd.f32 %v5017_v63, %v5016_v2 }
 0x4c1   : > { %5994 = vtanh.f32 %v4082_v61  ;;  %v4085_v49 = vadd.f32 %v5018_v43, %v3924_v41  ;;  %v4277_v41 = vpop.permute.xlu1 %4276 }
 0x4c3   : > { %v5991_v24 = vpop.eup %5990  ;;  %5996 = vtanh.f32 %v4085_v49  ;;  %v5019_v28 = vpop.f32.mrb[180].mxu0 }
 0x4c4   : > { %v5020_v39 = vpop.f32.mrb[181].mxu0  ;;  %v4424_v32 = vmul.f32 %v5991_v24, %v4267_v17  ;;  %v3937_v24 = vadd.f32 %v8113_v38, %v8155_v12  ;;  %v4292_v12 = vpop.permute.xlu0 %4291 }
 0x4c5   : > { %v5993_v31 = vpop.eup %5992  ;;  %v5021_v15 = vadd.f32 %v5020_v39, %v5019_v28  ;;  %v5022_v51 = vpop.f32.mrb[182].mxu0 }
 0x4c6   : > { %v4425_v13 = vmul.f32 %v5993_v31, %v4272_v3  ;;  %v5023_v26 = vpop.f32.mrb[183].mxu0 }
 0x4c7   : > { %v4090_v33 = vadd.f32 %v5021_v15, %v3929_v36  ;;  %v5024_v63 = vadd.f32 %v5023_v26, %v5022_v51  ;;  %v3940_v26 = vadd.f32 %v8118_v1, %v8161_v35  ;;  %v4287_v15 = vpop.permute.xlu1 %4286 }
 0x4c8   : > { %v4456_v59 = vadd.f32 %v4425_v13, %v4424_v32 }
 0x4c9   : > { %5998 = vtanh.f32 %v4090_v33  ;;  %v4093_v16 = vadd.f32 %v5024_v63, %v3932_v23  ;;  %v3945_v63 = vadd.f32 %v8123_v55, %v8163_v62  ;;  %v4302_v62 = vpop.permute.xlu0 %4301 }
 0x4cb   : > { %v5995_v2 = vpop.eup %5994  ;;  %6000 = vtanh.f32 %v4093_v16  ;;  %v5025_v61 = vpop.f32.mrb[184].mxu0 }
 0x4cc   : > { %v4426_v43 = vmul.f32 %v5995_v2, %v4277_v41  ;;  %v5026_v49 = vpop.f32.mrb[185].mxu0  ;;  %v3948_v41 = vadd.f32 %v8125_v9, %v8169_v14 }
 0x4cd   : > { %v5997_v47 = vpop.eup %5996  ;;  %v5027_v28 = vadd.f32 %v5026_v49, %v5025_v61  ;;  %v5028_v17 = vpop.f32.mrb[186].mxu0 }
 0x4ce   : > { %v4457_v39 = vadd.f32 %v4456_v59, %v4426_v43  ;;  %v4427_v52 = vmul.f32 %v5997_v47, %v4282_v30  ;;  %v5029_v34 = vpop.f32.mrb[187].mxu0 }
 0x4cf   : > { %v4098_v13 = vadd.f32 %v5027_v28, %v3937_v24  ;;  %v5030_v32 = vadd.f32 %v5029_v34, %v5028_v17  ;;  %v4297_v24 = vpop.permute.xlu1 %4296 }
 0x4d0   : > { %v4458_v31 = vadd.f32 %v4457_v39, %v4427_v52  ;;  %v3953_v52 = vadd.f32 %v8127_v22, %v8171_v20  ;;  %v4312_v20 = vpop.permute.xlu0 %4311 }
 0x4d1   : > { %6002 = vtanh.f32 %v4098_v13  ;;  %v4101_v3 = vadd.f32 %v5030_v32, %v3940_v26  ;;  %v3956_v32 = vadd.f32 %v8129_v46, %v8175_v21 }
 0x4d3   : > { %v5999_v36 = vpop.eup %5998  ;;  %6004 = vtanh.f32 %v4101_v3  ;;  %v5031_v51 = vpop.f32.mrb[188].mxu0 }
 0x4d4   : > { %v4428_v23 = vmul.f32 %v5999_v36, %v4287_v15  ;;  %v5032_v33 = vpop.f32.mrb[189].mxu0 }
 0x4d5   : > { %v6001_v38 = vpop.eup %6000  ;;  %v5033_v59 = vadd.f32 %v5032_v33, %v5031_v51  ;;  %v5034_v16 = vpop.f32.mrb[190].mxu0 }
 0x4d6   : > { %v4459_v2 = vadd.f32 %v4458_v31, %v4428_v23  ;;  %v4429_v1 = vmul.f32 %v6001_v38, %v4292_v12  ;;  %v5035_v35 = vpop.f32.mrb[191].mxu0  ;;  %v4307_v23 = vpop.permute.xlu1 %4306 }
 0x4d7   : > { %v4106_v61 = vadd.f32 %v5033_v59, %v3945_v63  ;;  %v5036_v43 = vadd.f32 %v5035_v35, %v5034_v16  ;;  %v3961_v63 = vadd.f32 %v8131_v44, %v8177_v40  ;;  %v4322_v40 = vpop.permute.xlu0 %4321 }
 0x4d8   : > { %v4460_v49 = vadd.f32 %v4459_v2, %v4429_v1  ;;  %v3964_v1 = vadd.f32 %v8133_v45, %v8181_v10 }
 0x4d9   : > { %6006 = vtanh.f32 %v4106_v61  ;;  %v4109_v47 = vadd.f32 %v5036_v43, %v3948_v41 }
 0x4db   : > { %v6003_v30 = vpop.eup %6002  ;;  %6008 = vtanh.f32 %v4109_v47  ;;  %v5037_v28 = vpop.f32.mrb[192].mxu0 }
 0x4dc   : > { %v4430_v17 = vmul.f32 %v6003_v30, %v4297_v24  ;;  %v5038_v39 = vpop.f32.mrb[193].mxu0  ;;  %v4317_v47 = vpop.permute.xlu1 %4316 }
 0x4dd   : > { %v6005_v55 = vpop.eup %6004  ;;  %v5039_v34 = vadd.f32 %v5038_v39, %v5037_v28  ;;  %v5040_v26 = vpop.f32.mrb[194].mxu0 }
 0x4de   : > { %v4461_v13 = vadd.f32 %v4460_v49, %v4430_v17  ;;  %v4431_v9 = vmul.f32 %v6005_v55, %v4302_v62  ;;  %v5041_v14 = vpop.f32.mrb[195].mxu0  ;;  %v3969_v17 = vadd.f32 %v8137_v19, %v8183_v57  ;;  %v4332_v57 = vpop.permute.xlu0 %4331 }
 0x4df   : > { %v4114_v31 = vadd.f32 %v5039_v34, %v3953_v52  ;;  %v5042_v3 = vadd.f32 %v5041_v14, %v5040_v26  ;;  %v3972_v52 = vadd.f32 %v8139_v54, %v8189_v50 }
 0x4e0   : > { %v4462_v36 = vadd.f32 %v4461_v13, %v4431_v9 }
 0x4e1   : > { %6010 = vtanh.f32 %v4114_v31  ;;  %v4117_v15 = vadd.f32 %v5042_v3, %v3956_v32  ;;  %v4327_v32 = vpop.permute.xlu1 %4326 }
 0x4e3   : > { %v6007_v51 = vpop.eup %6006  ;;  %6012 = vtanh.f32 %v4117_v15  ;;  %v5043_v33 = vpop.f32.mrb[196].mxu0  ;;  %v3977_v15 = vadd.f32 %v8145_v6, %v8191_v60 }
 0x4e4   : > { %v4432_v38 = vmul.f32 %v6007_v51, %v4307_v23  ;;  %v5044_v12 = vpop.f32.mrb[197].mxu0  ;;  %v4342_v60 = vpop.permute.xlu0 %4341 }
 0x4e5   : > { %v6009_v22 = vpop.eup %6008  ;;  %v5045_v59 = vadd.f32 %v5044_v12, %v5043_v33  ;;  %v5046_v16 = vpop.f32.mrb[198].mxu0 }
 0x4e6   : > { %v4463_v2 = vadd.f32 %v4462_v36, %v4432_v38  ;;  %v4433_v46 = vmul.f32 %v6009_v22, %v4312_v20  ;;  %v5047_v21 = vpop.f32.mrb[199].mxu0  ;;  %v3980_v38 = vadd.f32 %v8151_v37, %v8197_v58 }
 0x4e7   : > { %v4122_v35 = vadd.f32 %v5045_v59, %v3961_v63  ;;  %v5048_v41 = vadd.f32 %v5047_v21, %v5046_v16  ;;  %v4337_v16 = vpop.permute.xlu1 %4336 }
 0x4e8   : > { %v4464_v61 = vadd.f32 %v4463_v2, %v4433_v46 }
 0x4e9   : > { %6014 = vtanh.f32 %v4122_v35  ;;  %v4125_v43 = vadd.f32 %v5048_v41, %v3964_v1  ;;  %v3985_v1 = vadd.f32 %v8157_v4, %v8199_v25  ;;  %v4352_v25 = vpop.permute.xlu0 %4351 }
 0x4eb   : > { %v6011_v49 = vpop.eup %6010  ;;  %6016 = vtanh.f32 %v4125_v43  ;;  %v5049_v30 = vpop.f32.mrb[200].mxu0  ;;  %v3988_v43 = vadd.f32 %v8159_v53, %v8203_v0 }
 0x4ec   : > { %v4434_v24 = vmul.f32 %v6011_v49, %v4317_v47  ;;  %v5050_v28 = vpop.f32.mrb[201].mxu0 }
 0x4ed   : > { %v6013_v44 = vpop.eup %6012  ;;  %v5051_v39 = vadd.f32 %v5050_v28, %v5049_v30  ;;  %v5052_v55 = vpop.f32.mrb[202].mxu0 }
 0x4ee   : > { %v4465_v62 = vadd.f32 %v4464_v61, %v4434_v24  ;;  %v4435_v45 = vmul.f32 %v6013_v44, %v4322_v40  ;;  %v5053_v10 = vpop.f32.mrb[203].mxu0  ;;  %v4347_v24 = vpop.permute.xlu1 %4346 }
 0x4ef   : > { %v4130_v34 = vadd.f32 %v5051_v39, %v3969_v17  ;;  %v5054_v26 = vadd.f32 %v5053_v10, %v5052_v55  ;;  %v3993_v55 = vadd.f32 %v8165_v18, %v8205_v7 }
 0x4f0   : > { %v4466_v13 = vadd.f32 %v4465_v62, %v4435_v45 }
 0x4f1   : > { %6018 = vtanh.f32 %v4130_v34  ;;  %v4133_v9 = vadd.f32 %v5054_v26, %v3972_v52  ;;  %v3996_v34 = vadd.f32 %v8167_v27, %v8209_v48 }
 0x4f2   : > { %v4357_v52 = vpop.permute.xlu1 %4356 }
 0x4f3   : > { %v6015_v14 = vpop.eup %6014  ;;  %6020 = vtanh.f32 %v4133_v9  ;;  %v5055_v31 = vpop.f32.mrb[204].mxu0 }
 0x4f4   : > { %v4436_v3 = vmul.f32 %v6015_v14, %v4327_v32  ;;  %v5056_v36 = vpop.f32.mrb[205].mxu0 }
 0x4f5   : > { %v6017_v19 = vpop.eup %6016  ;;  %v5057_v51 = vadd.f32 %v5056_v36, %v5055_v31  ;;  %v5058_v23 = vpop.f32.mrb[206].mxu0 }
 0x4f6   : > { %v4467_v33 = vadd.f32 %v4466_v13, %v4436_v3  ;;  %v4437_v54 = vmul.f32 %v6017_v19, %v4332_v57  ;;  %v5059_v50 = vpop.f32.mrb[207].mxu0  ;;  %v4362_v31 = vpop.permute.xlu0 %4361  ;;  %v4001_v57 = vadd.f32 %v8173_v29, %v8211_v8 }
 0x4f7   : > { %v4138_v12 = vadd.f32 %v5057_v51, %v3977_v15  ;;  %v5060_v22 = vadd.f32 %v5059_v50, %v5058_v23  ;;  %v4367_v19 = vpop.permute.xlu1 %4366 }
 0x4f8   : > { %v4468_v20 = vadd.f32 %v4467_v33, %v4437_v54  ;;  %v4004_v33 = vadd.f32 %v8179_v11, %v8217_v5 }
 0x4f9   : > { %6022 = vtanh.f32 %v4138_v12  ;;  %v4141_v63 = vadd.f32 %v5060_v22, %v3980_v38 }
 0x4fa   : > { %v4372_v12 = vpop.permute.xlu0 %4371 }
 0x4fb   : > { %v6019_v59 = vpop.eup %6018  ;;  %6024 = vtanh.f32 %v4141_v63  ;;  %v5061_v2 = vpop.f32.mrb[208].mxu0 }
 0x4fc   : > { %v4438_v46 = vmul.f32 %v6019_v59, %v4337_v16  ;;  %v5062_v21 = vpop.f32.mrb[209].mxu0  ;;  %v3546_v63 = vpop.permute.xlu1 %3545 }
 0x4fd   : > { %v6021_v6 = vpop.eup %6020  ;;  %v5063_v35 = vadd.f32 %v5062_v21, %v5061_v2  ;;  %v5064_v41 = vpop.f32.mrb[210].mxu0  ;;  %v8362_v2 = vld [vmem:[#allocation7_spill] sm:$0xff] }
 0x4fe   : > { %v4469_v61 = vadd.f32 %v4468_v20, %v4438_v46  ;;  %v4439_v37 = vmul.f32 %v6021_v6, %v4342_v60  ;;  %v5065_v58 = vpop.f32.mrb[211].mxu0  ;;  %v4009_v46 = vadd.f32 %v8362_v2, %v8219_v56 }
 0x4ff   : > { %v4146_v49 = vadd.f32 %v5063_v35, %v3985_v1  ;;  %v5066_v47 = vadd.f32 %v5065_v58, %v5064_v41  ;;  %v4377_v1 = vpop.permute.xlu0 %4376  ;;  %v8363_v35 = vld [vmem:[#allocation8_spill] sm:$0xff] }
 0x500   : > { %v4470_v30 = vadd.f32 %v4469_v61, %v4439_v37  ;;  %v4012_v41 = vadd.f32 %v8363_v35, %v8225_v42  ;;  %v8372_v35 = vld [vmem:[#allocation14_spill] sm:$0xff] }
 0x501   : > { %6026 = vtanh.f32 %v4146_v49  ;;  %v4149_v28 = vadd.f32 %v5066_v47, %v3988_v43  ;;  %v3551_v43 = vpop.permute.xlu1 %3550 }
 0x503   : > { %v6023_v44 = vpop.eup %6022  ;;  %6028 = vtanh.f32 %v4149_v28  ;;  %v5067_v40 = vpop.f32.mrb[212].mxu0 }
 0x504   : > { %v4440_v17 = vmul.f32 %v6023_v44, %v4347_v24  ;;  %v5068_v39 = vpop.f32.mrb[213].mxu0  ;;  %v4382_v44 = vpop.permute.xlu0 %4381 }
 0x505   : > { %v6025_v4 = vpop.eup %6024  ;;  %v5069_v62 = vadd.f32 %v5068_v39, %v5067_v40  ;;  %v5070_v45 = vpop.f32.mrb[214].mxu0  ;;  %v8364_v40 = vld [vmem:[#allocation15_spill] sm:$0xff] }
 0x506   : > { %v4471_v10 = vadd.f32 %v4470_v30, %v4440_v17  ;;  %v4441_v53 = vmul.f32 %v6025_v4, %v4352_v25  ;;  %v5071_v0 = vpop.f32.mrb[215].mxu0  ;;  %v8365_v17 = vld [vmem:[#allocation9_spill] sm:$0xff] }
 0x507   : > { %v4154_v26 = vadd.f32 %v5069_v62, %v3993_v55  ;;  %v5072_v13 = vadd.f32 %v5071_v0, %v5070_v45  ;;  %v4017_v39 = vadd.f32 %v8365_v17, %v8364_v40  ;;  %v3556_v45 = vpop.permute.xlu1 %3555 }
 0x508   : > { %v4472_v9 = vadd.f32 %v4471_v10, %v4441_v53  ;;  %v8366_v10 = vld [vmem:[#allocation16_spill] sm:$0xff]  ;;  %v8367_v53 = vld [vmem:[#allocation10_spill] sm:$0xff] }
 0x509   : > { %6030 = vtanh.f32 %v4154_v26  ;;  %v4157_v14 = vadd.f32 %v5072_v13, %v3996_v34  ;;  %v4020_v0 = vadd.f32 %v8367_v53, %v8366_v10 }
 0x50b   : > { %v6027_v32 = vpop.eup %6026  ;;  %6032 = vtanh.f32 %v4157_v14  ;;  %v5073_v3 = vpop.f32.mrb[216].mxu0 }
 0x50c   : > { %v4442_v36 = vmul.f32 %v6027_v32, %v4357_v52  ;;  %v5074_v18 = vpop.f32.mrb[217].mxu0  ;;  %v4387_v14 = vpop.permute.xlu0 %4386 }
 0x50d   : > { %v6029_v7 = vpop.eup %6028  ;;  %v5075_v15 = vadd.f32 %v5074_v18, %v5073_v3  ;;  %v5076_v51 = vpop.f32.mrb[218].mxu0 }
 0x50e   : > { %v4473_v23 = vadd.f32 %v4472_v9, %v4442_v36  ;;  %v4443_v27 = vmul.f32 %v6029_v7, %v4362_v31  ;;  %v5077_v48 = vpop.f32.mrb[219].mxu0  ;;  %v4392_v18 = vpop.permute.xlu1 %4391  ;;  %v8368_v7 = vld [vmem:[#allocation17_spill] sm:$0xff] }
 0x50f   : > { %v4162_v54 = vadd.f32 %v5075_v15, %v4001_v57  ;;  %v5078_v50 = vadd.f32 %v5077_v48, %v5076_v51 }
 0x510   : > { %v4474_v38 = vadd.f32 %v4473_v23, %v4443_v27 }
 0x511   : > { %6034 = vtanh.f32 %v4162_v54  ;;  %v4165_v22 = vadd.f32 %v5078_v50, %v4004_v33  ;;  %v8370_v33 = vld [vmem:[#allocation12_spill] sm:$0xff] }
 0x512   : > { %v4028_v54 = vadd.f32 %v8370_v33, %v3546_v63 }
 0x513   : > { %v6031_v20 = vpop.eup %6030  ;;  %6036 = vtanh.f32 %v4165_v22  ;;  %v5079_v59 = vpop.f32.mrb[220].mxu0 }
 0x514   : > { %v4444_v16 = vmul.f32 %v6031_v20, %v4367_v19  ;;  %v5080_v29 = vpop.f32.mrb[221].mxu0  ;;  %v8369_v19 = vld [vmem:[#allocation11_spill] sm:$0xff] }
 0x515   : > { %v6033_v8 = vpop.eup %6032  ;;  %v5081_v21 = vadd.f32 %v5080_v29, %v5079_v59  ;;  %v5082_v6 = vpop.f32.mrb[222].mxu0  ;;  %v4025_v57 = vadd.f32 %v8369_v19, %v8368_v7 }
 0x516   : > { %v4475_v60 = vadd.f32 %v4474_v38, %v4444_v16  ;;  %v4445_v11 = vmul.f32 %v6033_v8, %v4372_v12  ;;  %v5083_v5 = vpop.f32.mrb[223].mxu0  ;;  %v4397_v59 = vpop.permute.xlu0 %4396 }
 0x517   : > { %v4170_v61 = vadd.f32 %v5081_v21, %v4009_v46  ;;  %v5084_v37 = vadd.f32 %v5083_v5, %v5082_v6  ;;  %v4402_v46 = vpop.permute.xlu1 %4401  ;;  %v8371_v21 = vld [vmem:[#allocation13_spill] sm:$0xff] }
 0x518   : > { %v4476_v58 = vadd.f32 %v4475_v60, %v4445_v11  ;;  %v4033_v6 = vadd.f32 %v8371_v21, %v3551_v43 }
 0x519   : > { %6038 = vtanh.f32 %v4170_v61  ;;  %v4173_v49 = vadd.f32 %v5084_v37, %v4012_v41  ;;  %v4036_v41 = vadd.f32 %v8372_v35, %v3556_v45  ;;  %v4499_v45 = vlaneseq }
 0x51b   : > { %v6035_v47 = vpop.eup %6034  ;;  %6040 = vtanh.f32 %v4173_v49  ;;  %v5085_v30 = vpop.f32.mrb[224].mxu0 }
 0x51c   : > { %v4446_v24 = vmul.f32 %v6035_v47, %v4377_v1  ;;  %v5086_v56 = vpop.f32.mrb[225].mxu0 }
 0x51d   : > { %v6037_v28 = vpop.eup %6036  ;;  %v5087_v4 = vadd.f32 %v5086_v56, %v5085_v30  ;;  %v5088_v25 = vpop.f32.mrb[226].mxu0 }
 0x51e   : > { %v4477_v55 = vadd.f32 %v4476_v58, %v4446_v24  ;;  %v4447_v42 = vmul.f32 %v6037_v28, %v4382_v44  ;;  %v5089_v62 = vpop.f32.mrb[227].mxu0  ;;  %v4407_v30 = vpop.permute.xlu0 %4406 }
 0x51f   : > { %v4178_v52 = vadd.f32 %v5087_v4, %v4017_v39  ;;  %v5090_v34 = vadd.f32 %v5089_v62, %v5088_v25  ;;  %v4412_v28 = vpop.permute.xlu1 %4411 }
 0x520   : > { %v4478_v26 = vadd.f32 %v4477_v55, %v4447_v42 }
 0x521   : > { %6042 = vtanh.f32 %v4178_v52  ;;  %v4181_v13 = vadd.f32 %v5090_v34, %v4020_v0  ;;  %v4500_v0 = vshrl.u32 %v4499_v45, 7 }
 0x522   : > { %v4417_v39 = vpop.permute.xlu0 %4416 }
 0x523   : > { %v6039_v9 = vpop.eup %6038  ;;  %6044 = vtanh.f32 %v4181_v13  ;;  %v5091_v32 = vpop.f32.mrb[228].mxu0 }
 0x524   : > { %v4448_v31 = vmul.f32 %v6039_v9, %v4387_v14  ;;  %v5092_v3 = vpop.f32.mrb[229].mxu0  ;;  %v4422_v55 = vpop.permute.xlu1 %4421 }
 0x525   : > { %v6041_v36 = vpop.eup %6040  ;;  %v5093_v15 = vadd.f32 %v5092_v3, %v5091_v32  ;;  %v5094_v51 = vpop.f32.mrb[230].mxu0 }
 0x526   : > { %v4479_v23 = vadd.f32 %v4478_v26, %v4448_v31  ;;  %v4449_v27 = vmul.f32 %v6041_v36, %v4392_v18  ;;  %v5095_v48 = vpop.f32.mrb[231].mxu0  ;;  %v4501_v26 = vsub.s32 0, %v4500_v0  ;;  %v4497_v9 = vpop.permute.xlu0 %4496 }
 0x527   : > { %v4186_v50 = vadd.f32 %v5093_v15, %v4025_v57  ;;  %v5096_v38 = vadd.f32 %v5095_v48, %v5094_v51 }
 0x528   : > { %v4480_v12 = vadd.f32 %v4479_v23, %v4449_v27  ;;  %v4502_v32 = vrot.slane %v4497_v9, %v4501_v26 }
 0x529   : > { %6046 = vtanh.f32 %v4186_v50  ;;  %v4189_v22 = vadd.f32 %v5096_v38, %v4028_v54 }
 0x52b   : > { %v6043_v20 = vpop.eup %6042  ;;  %6048 = vtanh.f32 %v4189_v22  ;;  %v5097_v16 = vpop.f32.mrb[232].mxu0 }
 0x52c   : > { %v4450_v29 = vmul.f32 %v6043_v20, %v4397_v59  ;;  %v5098_v8 = vpop.f32.mrb[233].mxu0 }
 0x52d   : > { %v6045_v2 = vpop.eup %6044  ;;  %v5099_v60 = vadd.f32 %v5098_v8, %v5097_v16  ;;  %v5100_v11 = vpop.f32.mrb[234].mxu0 }
 0x52e   : > { %v4481_v5 = vadd.f32 %v4480_v12, %v4450_v29  ;;  %v4451_v1 = vmul.f32 %v6045_v2, %v4402_v46  ;;  %v5101_v63 = vpop.f32.mrb[235].mxu0 }
 0x52f   : > { %v4194_v61 = vadd.f32 %v5099_v60, %v4033_v6  ;;  %v5102_v37 = vadd.f32 %v5101_v63, %v5100_v11 }
 0x530   : > { %v4482_v58 = vadd.f32 %v4481_v5, %v4451_v1 }
 0x531   : > { %6050 = vtanh.f32 %v4194_v61  ;;  %v4197_v49 = vadd.f32 %v5102_v37, %v4036_v41 }
 0x533   : > { %v6047_v47 = vpop.eup %6046  ;;  %6052 = vtanh.f32 %v4197_v49 }
 0x534   : > { %v4452_v24 = vmul.f32 %v6047_v47, %v4407_v30 }
 0x535   : > { %v6049_v56 = vpop.eup %6048 }
 0x536   : > { %v4483_v44 = vadd.f32 %v4482_v58, %v4452_v24  ;;  %v4453_v43 = vmul.f32 %v6049_v56, %v4412_v28 }
 0x538   : > { %v4484_v40 = vadd.f32 %v4483_v44, %v4453_v43 }
 0x53b   : > { %v6051_v17 = vpop.eup %6050 }
 0x53c   : > { %v4454_v4 = vmul.f32 %v6051_v17, %v4417_v39 }
 0x53d   : > { %v6053_v25 = vpop.eup %6052 }
 0x53e   : > { %v4455_v42 = vmul.f32 %v6053_v25, %v4422_v55  ;;  %v4485_v62 = vadd.f32 %v4484_v40, %v4454_v4 }
 0x540   : > { %v4486_v10 = vadd.f32 %v4485_v62, %v4455_v42 }
 0x542   : > { %v4487_v53 = vrot.slane %v4486_v10, 4 }
 0x544   : > { %v4488_v52 = vadd.f32 %v4487_v53, %v4486_v10 }
 0x546   : > { %v4489_v34 = vrot.slane %v4488_v52, 2 }
 0x548   : > { %v4490_v13 = vadd.f32 %v4489_v34, %v4488_v52 }
 0x54a   : > { %v4491_v14 = vrot.slane %v4490_v13, 1 }
 0x54c   : > { %v4492_v31 = vadd.f32 %v4491_v14, %v4490_v13 }
 0x54e   : > { %v4503_v3 = vadd.f32 %v4502_v32, %v4492_v31 }
 0x550   : > { %4504 = vst [vmem:[%s376_s24] sm:$0x1] %v4503_v3 }
 0x551   : > { %6067 = shalt.err (!%p6064_p5)
}
 0x552   : > { %s6068_s17 = scalar_lea.hbm %s8296_s28, 16  ;;  %s6072_s18 = scalar_lea.hbm %s8348_s9, 48 }
 0x553   : > { %p6069_p7 = scmp.ne.s32.totalorder %s8296_s28, %s6068_s17  ;;  %p6073_p11 = scmp.lt.u32.totalorder %s8296_s28, %s8348_s9 }
 0x554   : > { %p6074_p12 = scmp.lt.u32.totalorder %s6072_s18, %s6068_s17  ;;  %p6076_p0 = scmp.lt.u32.totalorder %s6068_s17, %s8296_s28 }
 0x555   : > { %p6070_p9 = pnand %p6069_p7, %p6211_p6 }
 0x556   : > { %p6075_p13 = por %p6074_p12, %p6073_p11 }
 0x557   : > { %p6071_p10 = pneg %p6070_p9 }
 0x558   : > { %p6077_p1 = por %p6076_p0, %p6075_p13 }
 0x55a   : > { %p6078_p2 = pnand %p6077_p1, %p6071_p10 }
 0x55c   : > { %6081 = shalt.err (!%p6078_p2)
}
 0x55d   : > { %5371 = dma.vmem_to_hbm [thread:$0]  (%p6211_p6), %s8298_s25, 16, %s8296_s28, %s4506_s29  }
 0x55e PF: > { %p5377_p3 = scmp.ge.s32.totalorder %s6116_s14, 2  ;;  %s4530_s27 = sand.u32 1, %s6104_s11  }
 0x55f   : > { %s4531_s30 = scalar_lea.sflag [#allocation5], %s4530_s27 }
 0x560   : > { %p5374_p4 = pnand %p5377_p3, %p6215_p8 }
 0x562   : > { %6099 = dma.done.wait (!%p5374_p4), %s4531_s30, 16  }
 0x563   : > { %6101 = vsyncadd (!%p5374_p4), %s4531_s30, 4294967280  ;;  %p21_p5 = scmp.ge.s32.totalorder %s6196_s16, 5   ;;  %s8373_s11 = smov %s6108_s12 }
 0x564   : > { %s8374_s12 = smov %s6112_s13  ;;  %s8375_s13 = smov %s6209_s19 }
 0x565   : > { %s8376_s14 = smov %s6196_s16  ;;  %23 = sbr.rel (!%p21_p5) target bundleno = 6 (0x6), region = 137 }
 0x56c   :  { %4535 = vsyncpa [#allocation5], 1 }
 0x56d   :  { %4537 = vsyncpa [#allocation5 + $0x1], 1 }

</bundles_post_ra>
